<compile_context>
chip_gen: v7x
topology: tpu7x:2x2x1
jax: 0.10.0
libtpu: 0.0.40
codegen_flags: <defaults>
</compile_context>

<pallas_src>
import jax
import jax.numpy as jnp
import numpy as np
from jax.experimental import pallas as pl
from jax.experimental.pallas import tpu as pltpu

NUM_CHANNELS = 1   # convLSTMcell(num_channels=1)
KSIZE = 5
PAD = 2
TIME_BLOCK = 4     # recurrence steps per grid iteration


# ---------------------------------------------------------------------------
# Pallas kernel: TIME_BLOCK convLSTM cell steps per grid iteration.
# ---------------------------------------------------------------------------
def convlstm_cell_sequence(x_seq, params, time_block=TIME_BLOCK):
    """x_seq: (T, 2, B, H, W) float32 -> h_seq: (T, 2, B, H, W) float32."""
    W1, b1, W2, b2, W3, b3 = params
    T, _, B, H, W = x_seq.shape
    Hp, Wp = H + 2 * PAD, W + 2 * PAD
    Fp = B * Hp * Wp                                 # flattened padded spatial extent
    Nv = Fp - (KSIZE - 1) * Wp - (KSIZE - 1)         # conv output columns (incl. junk cols)
    OFF = PAD * Wp + PAD                             # flat offset of interior pixel (0, 0)

    TB = max(1, min(time_block, T))
    n_chunks = -(-T // TB)
    T_pad = n_chunks * TB

    # Pre-pad x: time (to a multiple of TB) and space (5x5 'same' halo), then flatten.
    xp = jnp.pad(x_seq.astype(jnp.float32),
                 ((0, T_pad - T), (0, 0), (0, 0), (PAD, PAD), (PAD, PAD)))
    xp = xp.reshape(T_pad, 2, Fp)

    # Validity mask over the Nv conv-output columns: 1 where column q maps to a real
    # output pixel (q = b*Hp*Wp + h*Wp + w with h < H, w < W), 0 on cross-row junk.
    q = np.arange(Nv)
    ql = q % (Hp * Wp)
    mask_np = (((ql // Wp) < H) & ((ql % Wp) < W)).astype(np.float32)
    mask = jnp.asarray(mask_np)[None, :]             # (1, Nv)

    def kernel(x_ref, w1_ref, b1_ref, w2_ref, b2_ref, w3_ref, b3_ref, m_ref,
               out_ref, in1_ref, y1_ref, y2_ref, c_ref):
        @pl.when(pl.program_id(0) == 0)
        def _init():
            in1_ref[...] = jnp.zeros_like(in1_ref)   # [x_re, x_im, h_re, h_im], padded
            y1_ref[...] = jnp.zeros_like(y1_ref)     # padded layer-1 activations
            y2_ref[...] = jnp.zeros_like(y2_ref)     # padded layer-2 activations
            c_ref[...] = jnp.zeros_like(c_ref)       # cell state C_t

        msk = m_ref[...]                             # (1, Nv) f32
        w1, w2, w3 = w1_ref[...], w2_ref[...], w3_ref[...]
        b1, b2, b3 = b1_ref[...], b2_ref[...], b3_ref[...]

        def conv5x5(act_f32, w, b):
            # act_f32: (Cin, Fp) f32, flat zero-padded spatial layout.
            # w: (Cout, 25*Cin) bf16, b: (Cout, 1) f32.
            act = act_f32.astype(jnp.bfloat16)
            cols = []
            for kh in range(KSIZE):
                for kw in range(KSIZE):
                    o = kh * Wp + kw
                    cols.append(act[:, o:o + Nv])
            patch = jnp.concatenate(cols, axis=0)    # (25*Cin, Nv) bf16 im2col
            return jnp.dot(w, patch, preferred_element_type=jnp.float32) + b

        def sigmoid(z):
            # exp and the approximate reciprocal both run on the EUP slot.
            return pl.reciprocal(1.0 + jnp.exp(-z), approx=True)

        def step(t, carry):
            # torch.cat((x, prev_output), dim=1) in complex-channel space:
            # buffer channel order is [x_re, x_im, h_re, h_im] (weights permuted to match).
            in1_ref[0:2, :] = x_ref[t]               # x is already spatially padded

            # Fused gate stacks (order: forget, input, output, inputProc):
            #   layer1: shared input, weights concatenated (4 -> 16)
            #   layer2: block-diagonal (16 -> 16),  layer3: block-structured (16 -> 8)
            y1 = jnp.maximum(conv5x5(in1_ref[...], w1, b1), 0.0) * msk   # CReLU, (16, Nv)
            y1_ref[:, OFF:OFF + Nv] = y1
            y2 = jnp.maximum(conv5x5(y1_ref[...], w2, b2), 0.0) * msk    # CReLU, (16, Nv)
            y2_ref[:, OFF:OFF + Nv] = y2
            g = conv5x5(y2_ref[...], w3, b3)                             # (8, Nv) f32

            ft = sigmoid(g[0:2])                     # forgetGate  [re, im]
            it = sigmoid(g[2:4])                     # inputGate
            ot = sigmoid(g[4:6])                     # outputGate
            c_new = ft * c_ref[...] + it * g[6:8]    # elementwise per re/im (as in torch)
            h_new = c_new * ot                       # tanh_mode=False
            c_ref[...] = c_new
            out_ref[t] = h_new                       # lane-dense (2, Nv) full-row store
            in1_ref[2:4, OFF:OFF + Nv] = h_new * msk   # h_re, h_im for step t+1
            return carry

        jax.lax.fori_loop(0, TB, step, 0)

    def _full(a):
        nd = a.ndim
        return pl.BlockSpec(a.shape, lambda i, _nd=nd: (0,) * _nd)

    out = pl.pallas_call(
        kernel,
        out_shape=jax.ShapeDtypeStruct((T_pad, 2, Nv), jnp.float32),
        grid=(n_chunks,),
        in_specs=[pl.BlockSpec((TB, 2, Fp), lambda i: (i, 0, 0)),
                  _full(W1), _full(b1), _full(W2), _full(b2), _full(W3), _full(b3),
                  _full(mask)],
        out_specs=pl.BlockSpec((TB, 2, Nv), lambda i: (i, 0, 0)),
        scratch_shapes=[pltpu.VMEM((4, Fp), jnp.float32),    # [x_re, x_im, h_re, h_im]
                        pltpu.VMEM((16, Fp), jnp.float32),   # y1 (padded)
                        pltpu.VMEM((16, Fp), jnp.float32),   # y2 (padded)
                        pltpu.VMEM((2, Nv), jnp.float32)],   # C_t
        compiler_params=pltpu.CompilerParams(
            dimension_semantics=("arbitrary",),
            vmem_limit_bytes=64 * 1024 * 1024),
    )(xp, W1, b1, W2, b2, W3, b3, mask)

    # Un-flatten: column q = b*Hp*Wp + h*Wp + w  ->  (b, h, w), valid for h < H, w < W.
    out = jnp.pad(out[:T], ((0, 0), (0, 0), (0, Fp - Nv)))
    out = out.reshape(T, 2, B, Hp, Wp)[:, :, :, :H, :W]
    return out                                        # (T, 2, B, H, W) f32


def convlstm2_forward(fft_exp, params):
    """fft_exp: complex64 (B, T, 1, H, W) -> complex64 (B, T, 1, H, W)."""
    fft_log = jnp.log(fft_exp + 1e-8)                                   # complex log (glue)
    x = jnp.stack([jnp.real(fft_log), jnp.imag(fft_log)], axis=0)       # (2, B, T, 1, H, W)
    x = x[:, :, :, 0]                                                   # (2, B, T, H, W), C=1
    x = jnp.transpose(x, (2, 0, 1, 3, 4)).astype(jnp.float32)           # (T, 2, B, H, W)
    h_seq = convlstm_cell_sequence(x, params)                           # (T, 2, B, H, W)
    ans = jax.lax.complex(h_seq[:, 0], h_seq[:, 1])                     # (T, B, H, W)
    ans = jnp.transpose(ans, (1, 0, 2, 3))[:, :, None, :, :]            # (B, T, 1, H, W)
    return ans


# ---------------------------------------------------------------------------
# Deterministic parameter construction (synthetic weights, no checkpoint).
# ---------------------------------------------------------------------------
def init_params(key, num_channels=NUM_CHANNELS):
    C = num_channels
    # each gate stack: ComplexConv2d(2C,2C,5) -> CReLU -> ComplexConv2d(2C,2C,5)
    #                  -> CReLU -> ComplexConv2d(2C,C,5)
    layer_io = [(2 * C, 2 * C), (2 * C, 2 * C), (2 * C, C)]   # complex (in, out)
    KK = KSIZE * KSIZE

    # Layer-1 real input channels are permuted from the natural complex-conv order
    # [x_re, h_re, x_im, h_im] to the kernel's buffer order [x_re, x_im, h_re, h_im].
    perm_l1 = np.concatenate([np.arange(0, C), np.arange(2 * C, 3 * C),
                              np.arange(C, 2 * C), np.arange(3 * C, 4 * C)])

    def real_weight(Wr, Wi, br, bi, in_perm=None):
        # complex conv == real conv on channel blocks [re..., im...]
        top = jnp.concatenate([Wr, -Wi], axis=1)
        bot = jnp.concatenate([Wi, Wr], axis=1)
        Wreal = jnp.concatenate([top, bot], axis=0)            # (2cout, 2cin, 5, 5)
        if in_perm is not None:
            Wreal = Wreal[:, in_perm, :, :]
        # matmul form (Cout, 25*Cin), columns ordered (kh, kw, cin) = im2col row order
        Wmat = jnp.transpose(Wreal, (0, 2, 3, 1)).reshape(Wreal.shape[0], -1)
        breal = jnp.concatenate([br, bi])
        return Wmat, breal

    stacks = []   # stacks[s][l] = (Wmat, breal); s in [forget, input, output, inputProc]
    for _s in range(4):
        layers = []
        for li, (cin, cout) in enumerate(layer_io):
            key, k1, k2, k3, k4 = jax.random.split(key, 5)
            scale = 1.0 / np.sqrt(cin * KSIZE * KSIZE)
            Wr = jax.random.normal(k1, (cout, cin, KSIZE, KSIZE), jnp.float32) * scale
            Wi = jax.random.normal(k2, (cout, cin, KSIZE, KSIZE), jnp.float32) * scale
            br = jax.random.normal(k3, (cout,), jnp.float32) * 0.01
            bi = jax.random.normal(k4, (cout,), jnp.float32) * 0.01
            layers.append(real_weight(Wr, Wi, br, bi,
                                      in_perm=perm_l1 if li == 0 else None))
        stacks.append(layers)

    rc = 4 * C    # real hidden channels per stack (= 4)
    ro = 2 * C    # real gate-output channels per stack (= 2)

    # layer 1: shared input -> concatenate the four stacks along Cout
    W1 = jnp.concatenate([stacks[s][0][0] for s in range(4)], axis=0)      # (16, 25*4)
    b1 = jnp.concatenate([stacks[s][0][1] for s in range(4)])[:, None]     # (16, 1)

    # layer 2: block-diagonal (per-stack 4 -> 4)
    W2 = jnp.zeros((4 * rc, KK, 4 * rc), jnp.float32)
    b2l = []
    for s in range(4):
        blk = stacks[s][1][0].reshape(rc, KK, rc)
        W2 = W2.at[s * rc:(s + 1) * rc, :, s * rc:(s + 1) * rc].set(blk)
        b2l.append(stacks[s][1][1])
    W2 = W2.reshape(4 * rc, KK * 4 * rc)                                   # (16, 25*16)
    b2 = jnp.concatenate(b2l)[:, None]                                     # (16, 1)

    # layer 3: block structured (per-stack 4 -> 2)
    W3 = jnp.zeros((4 * ro, KK, 4 * rc), jnp.float32)
    b3l = []
    for s in range(4):
        blk = stacks[s][2][0].reshape(ro, KK, rc)
        W3 = W3.at[s * ro:(s + 1) * ro, :, s * rc:(s + 1) * rc].set(blk)
        b3l.append(stacks[s][2][1])
    W3 = W3.reshape(4 * ro, KK * 4 * rc)                                   # (8, 25*16)
    b3 = jnp.concatenate(b3l)[:, None]                                     # (8, 1)

    return (W1.astype(jnp.bfloat16), b1, W2.astype(jnp.bfloat16), b2,
            W3.astype(jnp.bfloat16), b3)


# ---------------------------------------------------------------------------
# Plain-JAX reference of the identical math (validates the Pallas lowering).
# ---------------------------------------------------------------------------
def reference_cell_sequence(x_seq, params):
    """x_seq: (T, 2, B, H, W) float32 -> (T, 2, B, H, W) float32."""
    W1, b1, W2, b2, W3, b3 = params
    T, _, B, H, W = x_seq.shape
    N = B * H * W

    def conv5x5(act, w, b):
        # act: (Cin, B, H, W) f32; w: (Cout, 25*Cin) bf16; b: (Cout, 1) f32
        a = act.astype(jnp.bfloat16)
        ap = jnp.pad(a, ((0, 0), (0, 0), (PAD, PAD), (PAD, PAD)))
        cin = act.shape[0]
        cols = [ap[:, :, kh:kh + H, kw:kw + W].reshape(cin, N)
                for kh in range(KSIZE) for kw in range(KSIZE)]
        patch = jnp.concatenate(cols, axis=0)
        return jnp.dot(w, patch, preferred_element_type=jnp.float32) + b

    sig = lambda z: 1.0 / (1.0 + jnp.exp(-z))
    c = jnp.zeros((2, N), jnp.float32)
    h = jnp.zeros((2, B, H, W), jnp.float32)
    outs = []
    for t in range(T):
        in1 = jnp.concatenate([x_seq[t], h], axis=0)                       # (4, B, H, W)
        y1 = jnp.maximum(conv5x5(in1, W1, b1), 0.0).reshape(-1, B, H, W)
        y2 = jnp.maximum(conv5x5(y1, W2, b2), 0.0).reshape(-1, B, H, W)
        g = conv5x5(y2, W3, b3)                                            # (8, N)
        ft, it, ot = sig(g[0:2]), sig(g[2:4]), sig(g[4:6])
        c = ft * c + it * g[6:8]
        h = (c * ot).reshape(2, B, H, W)
        outs.append(h)
    return jnp.stack(outs, axis=0)                                         # (T, 2, B, H, W)


if __name__ == "__main__":
    key = jax.random.PRNGKey(0)
    kr, ki, kp = jax.random.split(key, 3)
    B, T, H, W = 2, 8, 16, 16

    re = jax.random.normal(kr, (B, T, NUM_CHANNELS, H, W), jnp.float32)
    im = jax.random.normal(ki, (B, T, NUM_CHANNELS, H, W), jnp.float32)
    fft_exp = jax.lax.complex(re, im)            # complex64, like the torch input

    params = init_params(kp)

    ans = convlstm2_forward(fft_exp, params)
    ans = jax.block_until_ready(ans)
    assert ans.shape == (B, T, NUM_CHANNELS, H, W)
    assert ans.dtype == jnp.complex64

    # Validate the Pallas kernel against the plain-JAX reference of the same math
    # (identical bf16 matmul inputs / f32 accumulation; the tolerance budget covers the
    #  in-kernel approximate-reciprocal sigmoid compounded over the T-step recurrence).
    fft_log = jnp.log(fft_exp + 1e-8)
    x = jnp.stack([jnp.real(fft_log), jnp.imag(fft_log)], axis=0)[:, :, :, 0]
    x_seq = jnp.transpose(x, (2, 0, 1, 3, 4)).astype(jnp.float32)          # (T, 2, B, H, W)
    ref = reference_cell_sequence(x_seq, params)                           # (T, 2, B, H, W)
    ref_c = jax.lax.complex(ref[:, 0], ref[:, 1])                          # (T, B, H, W)
    ref_c = jnp.transpose(ref_c, (1, 0, 2, 3))[:, :, None, :, :]           # (B, T, 1, H, W)
    np.testing.assert_allclose(np.asarray(ans), np.asarray(ref_c), rtol=1e-2, atol=1e-2)

    print("KERNEL_OK")
</pallas_src>

<mosaic_0001>
module attributes {stable_mosaic.version = 11 : i64} {
  func.func @kernel(%arg0: i32, %arg1: memref<4x2x800xf32, #tpu.memory_space<vmem>>, %arg2: memref<16x100xbf16, #tpu.memory_space<vmem>>, %arg3: memref<16x1xf32, #tpu.memory_space<vmem>>, %arg4: memref<16x400xbf16, #tpu.memory_space<vmem>>, %arg5: memref<16x1xf32, #tpu.memory_space<vmem>>, %arg6: memref<8x400xbf16, #tpu.memory_space<vmem>>, %arg7: memref<8x1xf32, #tpu.memory_space<vmem>>, %arg8: memref<1x716xf32, #tpu.memory_space<vmem>>, %arg9: memref<4x2x716xf32, #tpu.memory_space<vmem>>, %arg10: memref<4x800xf32, #tpu.memory_space<vmem>>, %arg11: memref<16x800xf32, #tpu.memory_space<vmem>>, %arg12: memref<16x800xf32, #tpu.memory_space<vmem>>, %arg13: memref<2x716xf32, #tpu.memory_space<vmem>>) attributes {dimension_semantics = [#tpu.dimension_semantics<arbitrary>], iteration_bounds = array<i64: 2>, scalar_prefetch = 0 : i64, scratch_operands = 4 : i64, tpu.core_type = #tpu.core_type<tc>, window_params = [{transform_indices = @transform_0, window_bounds = array<i64: 4, 2, 800>}, {pipeline_mode = #tpu.pipeline_mode<synchronous>, transform_indices = @transform_1, window_bounds = array<i64: 16, 100>}, {pipeline_mode = #tpu.pipeline_mode<synchronous>, transform_indices = @transform_2, window_bounds = array<i64: 16, 1>}, {pipeline_mode = #tpu.pipeline_mode<synchronous>, transform_indices = @transform_3, window_bounds = array<i64: 16, 400>}, {pipeline_mode = #tpu.pipeline_mode<synchronous>, transform_indices = @transform_4, window_bounds = array<i64: 16, 1>}, {pipeline_mode = #tpu.pipeline_mode<synchronous>, transform_indices = @transform_5, window_bounds = array<i64: 8, 400>}, {pipeline_mode = #tpu.pipeline_mode<synchronous>, transform_indices = @transform_6, window_bounds = array<i64: 8, 1>}, {pipeline_mode = #tpu.pipeline_mode<synchronous>, transform_indices = @transform_7, window_bounds = array<i64: 1, 716>}, {transform_indices = @transform_8, window_bounds = array<i64: 4, 2, 716>}]} {
    %c0_i32 = arith.constant 0 : i32
    %0 = arith.cmpi eq, %arg0, %c0_i32 : i32
    %1 = arith.extui %0 : i1 to i32
    %c0_i32_0 = arith.constant 0 : i32
    %2 = arith.cmpi ne, %1, %c0_i32_0 : i32
    scf.if %2 {
      %cst = arith.constant 0.000000e+00 : f32
      %11 = vector.broadcast %cst : f32 to vector<4x800xf32>
      %c0_16 = arith.constant 0 : index
      %c0_17 = arith.constant 0 : index
      %12 = vector.load %arg10[%c0_16, %c0_17] : memref<4x800xf32, #tpu.memory_space<vmem>>, vector<4x800xf32>
      tpu.vector_store %arg10[%c0_16, %c0_17], %11 {strides = array<i32>} : memref<4x800xf32, #tpu.memory_space<vmem>>, vector<4x800xf32>,
      %cst_18 = arith.constant 0.000000e+00 : f32
      %13 = vector.broadcast %cst_18 : f32 to vector<16x800xf32>
      %c0_19 = arith.constant 0 : index
      %c0_20 = arith.constant 0 : index
      %14 = vector.load %arg11[%c0_19, %c0_20] : memref<16x800xf32, #tpu.memory_space<vmem>>, vector<16x800xf32>
      tpu.vector_store %arg11[%c0_19, %c0_20], %13 {strides = array<i32>} : memref<16x800xf32, #tpu.memory_space<vmem>>, vector<16x800xf32>,
      %cst_21 = arith.constant 0.000000e+00 : f32
      %15 = vector.broadcast %cst_21 : f32 to vector<16x800xf32>
      %c0_22 = arith.constant 0 : index
      %c0_23 = arith.constant 0 : index
      %16 = vector.load %arg12[%c0_22, %c0_23] : memref<16x800xf32, #tpu.memory_space<vmem>>, vector<16x800xf32>
      tpu.vector_store %arg12[%c0_22, %c0_23], %15 {strides = array<i32>} : memref<16x800xf32, #tpu.memory_space<vmem>>, vector<16x800xf32>,
      %cst_24 = arith.constant 0.000000e+00 : f32
      %17 = vector.broadcast %cst_24 : f32 to vector<2x716xf32>
      %c0_25 = arith.constant 0 : index
      %c0_26 = arith.constant 0 : index
      %18 = vector.load %arg13[%c0_25, %c0_26] : memref<2x716xf32, #tpu.memory_space<vmem>>, vector<2x716xf32>
      tpu.vector_store %arg13[%c0_25, %c0_26], %17 {strides = array<i32>} : memref<2x716xf32, #tpu.memory_space<vmem>>, vector<2x716xf32>,
    } else {
    }
    %c0 = arith.constant 0 : index
    %c0_1 = arith.constant 0 : index
    %3 = vector.load %arg8[%c0, %c0_1] : memref<1x716xf32, #tpu.memory_space<vmem>>, vector<1x716xf32>
    %c0_2 = arith.constant 0 : index
    %c0_3 = arith.constant 0 : index
    %4 = vector.load %arg2[%c0_2, %c0_3] : memref<16x100xbf16, #tpu.memory_space<vmem>>, vector<16x100xbf16>
    %c0_4 = arith.constant 0 : index
    %c0_5 = arith.constant 0 : index
    %5 = vector.load %arg4[%c0_4, %c0_5] : memref<16x400xbf16, #tpu.memory_space<vmem>>, vector<16x400xbf16>
    %c0_6 = arith.constant 0 : index
    %c0_7 = arith.constant 0 : index
    %6 = vector.load %arg6[%c0_6, %c0_7] : memref<8x400xbf16, #tpu.memory_space<vmem>>, vector<8x400xbf16>
    %c0_8 = arith.constant 0 : index
    %c0_9 = arith.constant 0 : index
    %7 = vector.load %arg3[%c0_8, %c0_9] : memref<16x1xf32, #tpu.memory_space<vmem>>, vector<16x1xf32>
    %c0_10 = arith.constant 0 : index
    %c0_11 = arith.constant 0 : index
    %8 = vector.load %arg5[%c0_10, %c0_11] : memref<16x1xf32, #tpu.memory_space<vmem>>, vector<16x1xf32>
    %c0_12 = arith.constant 0 : index
    %c0_13 = arith.constant 0 : index
    %9 = vector.load %arg7[%c0_12, %c0_13] : memref<8x1xf32, #tpu.memory_space<vmem>>, vector<8x1xf32>
    %c0_i32_14 = arith.constant 0 : i32
    %c4_i32 = arith.constant 4 : i32
    %10 = arith.addi %c0_i32_14, %c4_i32 : i32
    %c1_i32 = arith.constant 1 : i32
    scf.for %arg14 = %c0_i32_14 to %10 step %c1_i32  : i32 {
      %11 = arith.index_cast %arg14 : i32 to index
      %c0_16 = arith.constant 0 : index
      %c0_17 = arith.constant 0 : index
      %12 = vector.load %arg1[%11, %c0_16, %c0_17] : memref<4x2x800xf32, #tpu.memory_space<vmem>>, vector<1x2x800xf32>
      %13 = vector.shape_cast %12 : vector<1x2x800xf32> to vector<2x800xf32>
      %c0_18 = arith.constant 0 : index
      %c0_19 = arith.constant 0 : index
      %14 = vector.load %arg10[%c0_18, %c0_19] : memref<4x800xf32, #tpu.memory_space<vmem>>, vector<2x800xf32>
      tpu.vector_store %arg10[%c0_18, %c0_19], %13 {strides = array<i32>} : memref<4x800xf32, #tpu.memory_space<vmem>>, vector<2x800xf32>,
      %c0_20 = arith.constant 0 : index
      %c0_21 = arith.constant 0 : index
      %15 = vector.load %arg10[%c0_20, %c0_21] : memref<4x800xf32, #tpu.memory_space<vmem>>, vector<4x800xf32>
      %16 = arith.truncf %15 : vector<4x800xf32> to vector<4x800xbf16>
      %17 = vector.extract_strided_slice %16 {offsets = [0, 0], sizes = [4, 716], strides = [1, 1]} : vector<4x800xbf16> to vector<4x716xbf16>
      %18 = vector.extract_strided_slice %16 {offsets = [0, 1], sizes = [4, 716], strides = [1, 1]} : vector<4x800xbf16> to vector<4x716xbf16>
      %19 = vector.extract_strided_slice %16 {offsets = [0, 2], sizes = [4, 716], strides = [1, 1]} : vector<4x800xbf16> to vector<4x716xbf16>
      %20 = vector.extract_strided_slice %16 {offsets = [0, 3], sizes = [4, 716], strides = [1, 1]} : vector<4x800xbf16> to vector<4x716xbf16>
      %21 = vector.extract_strided_slice %16 {offsets = [0, 4], sizes = [4, 716], strides = [1, 1]} : vector<4x800xbf16> to vector<4x716xbf16>
      %22 = vector.extract_strided_slice %16 {offsets = [0, 20], sizes = [4, 716], strides = [1, 1]} : vector<4x800xbf16> to vector<4x716xbf16>
      %23 = vector.extract_strided_slice %16 {offsets = [0, 21], sizes = [4, 716], strides = [1, 1]} : vector<4x800xbf16> to vector<4x716xbf16>
      %24 = vector.extract_strided_slice %16 {offsets = [0, 22], sizes = [4, 716], strides = [1, 1]} : vector<4x800xbf16> to vector<4x716xbf16>
      %25 = vector.extract_strided_slice %16 {offsets = [0, 23], sizes = [4, 716], strides = [1, 1]} : vector<4x800xbf16> to vector<4x716xbf16>
      %26 = vector.extract_strided_slice %16 {offsets = [0, 24], sizes = [4, 716], strides = [1, 1]} : vector<4x800xbf16> to vector<4x716xbf16>
      %27 = vector.extract_strided_slice %16 {offsets = [0, 40], sizes = [4, 716], strides = [1, 1]} : vector<4x800xbf16> to vector<4x716xbf16>
      %28 = vector.extract_strided_slice %16 {offsets = [0, 41], sizes = [4, 716], strides = [1, 1]} : vector<4x800xbf16> to vector<4x716xbf16>
      %29 = vector.extract_strided_slice %16 {offsets = [0, 42], sizes = [4, 716], strides = [1, 1]} : vector<4x800xbf16> to vector<4x716xbf16>
      %30 = vector.extract_strided_slice %16 {offsets = [0, 43], sizes = [4, 716], strides = [1, 1]} : vector<4x800xbf16> to vector<4x716xbf16>
      %31 = vector.extract_strided_slice %16 {offsets = [0, 44], sizes = [4, 716], strides = [1, 1]} : vector<4x800xbf16> to vector<4x716xbf16>
      %32 = vector.extract_strided_slice %16 {offsets = [0, 60], sizes = [4, 716], strides = [1, 1]} : vector<4x800xbf16> to vector<4x716xbf16>
      %33 = vector.extract_strided_slice %16 {offsets = [0, 61], sizes = [4, 716], strides = [1, 1]} : vector<4x800xbf16> to vector<4x716xbf16>
      %34 = vector.extract_strided_slice %16 {offsets = [0, 62], sizes = [4, 716], strides = [1, 1]} : vector<4x800xbf16> to vector<4x716xbf16>
      %35 = vector.extract_strided_slice %16 {offsets = [0, 63], sizes = [4, 716], strides = [1, 1]} : vector<4x800xbf16> to vector<4x716xbf16>
      %36 = vector.extract_strided_slice %16 {offsets = [0, 64], sizes = [4, 716], strides = [1, 1]} : vector<4x800xbf16> to vector<4x716xbf16>
      %37 = vector.extract_strided_slice %16 {offsets = [0, 80], sizes = [4, 716], strides = [1, 1]} : vector<4x800xbf16> to vector<4x716xbf16>
      %38 = vector.extract_strided_slice %16 {offsets = [0, 81], sizes = [4, 716], strides = [1, 1]} : vector<4x800xbf16> to vector<4x716xbf16>
      %39 = vector.extract_strided_slice %16 {offsets = [0, 82], sizes = [4, 716], strides = [1, 1]} : vector<4x800xbf16> to vector<4x716xbf16>
      %40 = vector.extract_strided_slice %16 {offsets = [0, 83], sizes = [4, 716], strides = [1, 1]} : vector<4x800xbf16> to vector<4x716xbf16>
      %41 = vector.extract_strided_slice %16 {offsets = [0, 84], sizes = [4, 716], strides = [1, 1]} : vector<4x800xbf16> to vector<4x716xbf16>
      %42 = tpu.concatenate %17, %18, %19, %20, %21, %22, %23, %24, %25, %26, %27, %28, %29, %30, %31, %32 in 0 : vector<4x716xbf16>, vector<4x716xbf16>, vector<4x716xbf16>, vector<4x716xbf16>, vector<4x716xbf16>, vector<4x716xbf16>, vector<4x716xbf16>, vector<4x716xbf16>, vector<4x716xbf16>, vector<4x716xbf16>, vector<4x716xbf16>, vector<4x716xbf16>, vector<4x716xbf16>, vector<4x716xbf16>, vector<4x716xbf16>, vector<4x716xbf16> -> vector<64x716xbf16>
      %43 = tpu.concatenate %33, %34, %35, %36, %37, %38, %39, %40, %41 in 0 : vector<4x716xbf16>, vector<4x716xbf16>, vector<4x716xbf16>, vector<4x716xbf16>, vector<4x716xbf16>, vector<4x716xbf16>, vector<4x716xbf16>, vector<4x716xbf16>, vector<4x716xbf16> -> vector<36x716xbf16>
      %44 = tpu.concatenate %42, %43 in 0 : vector<64x716xbf16>, vector<36x716xbf16> -> vector<100x716xbf16>
      %cst = arith.constant dense<0.000000e+00> : vector<16x716xf32>
      %45 = tpu.matmul %4, %44, %cst {dimension_numbers = #tpu.dot_dimension_numbers<[1], [0], [0], [1], [0, 0, 1, 1], [], []>} : vector<16x100xbf16>, vector<100x716xbf16>, vector<16x716xf32> -> vector<16x716xf32>
      %46 = vector.broadcast %7 : vector<16x1xf32> to vector<16x716xf32>
      %47 = arith.addf %45, %46 : vector<16x716xf32>
      %cst_22 = arith.constant 0.000000e+00 : f32
      %48 = vector.broadcast %cst_22 : f32 to vector<16x716xf32>
      %49 = arith.maximumf %47, %48 : vector<16x716xf32>
      %50 = vector.broadcast %3 : vector<1x716xf32> to vector<16x716xf32>
      %51 = arith.mulf %49, %50 : vector<16x716xf32>
      %c0_23 = arith.constant 0 : index
      %c42 = arith.constant 42 : index
      %52 = vector.load %arg11[%c0_23, %c42] : memref<16x800xf32, #tpu.memory_space<vmem>>, vector<16x716xf32>
      tpu.vector_store %arg11[%c0_23, %c42], %51 {strides = array<i32>} : memref<16x800xf32, #tpu.memory_space<vmem>>, vector<16x716xf32>,
      %c0_24 = arith.constant 0 : index
      %c0_25 = arith.constant 0 : index
      %53 = vector.load %arg11[%c0_24, %c0_25] : memref<16x800xf32, #tpu.memory_space<vmem>>, vector<16x800xf32>
      %54 = arith.truncf %53 : vector<16x800xf32> to vector<16x800xbf16>
      %55 = vector.extract_strided_slice %54 {offsets = [0, 0], sizes = [16, 716], strides = [1, 1]} : vector<16x800xbf16> to vector<16x716xbf16>
      %56 = vector.extract_strided_slice %54 {offsets = [0, 1], sizes = [16, 716], strides = [1, 1]} : vector<16x800xbf16> to vector<16x716xbf16>
      %57 = vector.extract_strided_slice %54 {offsets = [0, 2], sizes = [16, 716], strides = [1, 1]} : vector<16x800xbf16> to vector<16x716xbf16>
      %58 = vector.extract_strided_slice %54 {offsets = [0, 3], sizes = [16, 716], strides = [1, 1]} : vector<16x800xbf16> to vector<16x716xbf16>
      %59 = vector.extract_strided_slice %54 {offsets = [0, 4], sizes = [16, 716], strides = [1, 1]} : vector<16x800xbf16> to vector<16x716xbf16>
      %60 = vector.extract_strided_slice %54 {offsets = [0, 20], sizes = [16, 716], strides = [1, 1]} : vector<16x800xbf16> to vector<16x716xbf16>
      %61 = vector.extract_strided_slice %54 {offsets = [0, 21], sizes = [16, 716], strides = [1, 1]} : vector<16x800xbf16> to vector<16x716xbf16>
      %62 = vector.extract_strided_slice %54 {offsets = [0, 22], sizes = [16, 716], strides = [1, 1]} : vector<16x800xbf16> to vector<16x716xbf16>
      %63 = vector.extract_strided_slice %54 {offsets = [0, 23], sizes = [16, 716], strides = [1, 1]} : vector<16x800xbf16> to vector<16x716xbf16>
      %64 = vector.extract_strided_slice %54 {offsets = [0, 24], sizes = [16, 716], strides = [1, 1]} : vector<16x800xbf16> to vector<16x716xbf16>
      %65 = vector.extract_strided_slice %54 {offsets = [0, 40], sizes = [16, 716], strides = [1, 1]} : vector<16x800xbf16> to vector<16x716xbf16>
      %66 = vector.extract_strided_slice %54 {offsets = [0, 41], sizes = [16, 716], strides = [1, 1]} : vector<16x800xbf16> to vector<16x716xbf16>
      %67 = vector.extract_strided_slice %54 {offsets = [0, 42], sizes = [16, 716], strides = [1, 1]} : vector<16x800xbf16> to vector<16x716xbf16>
      %68 = vector.extract_strided_slice %54 {offsets = [0, 43], sizes = [16, 716], strides = [1, 1]} : vector<16x800xbf16> to vector<16x716xbf16>
      %69 = vector.extract_strided_slice %54 {offsets = [0, 44], sizes = [16, 716], strides = [1, 1]} : vector<16x800xbf16> to vector<16x716xbf16>
      %70 = vector.extract_strided_slice %54 {offsets = [0, 60], sizes = [16, 716], strides = [1, 1]} : vector<16x800xbf16> to vector<16x716xbf16>
      %71 = vector.extract_strided_slice %54 {offsets = [0, 61], sizes = [16, 716], strides = [1, 1]} : vector<16x800xbf16> to vector<16x716xbf16>
      %72 = vector.extract_strided_slice %54 {offsets = [0, 62], sizes = [16, 716], strides = [1, 1]} : vector<16x800xbf16> to vector<16x716xbf16>
      %73 = vector.extract_strided_slice %54 {offsets = [0, 63], sizes = [16, 716], strides = [1, 1]} : vector<16x800xbf16> to vector<16x716xbf16>
      %74 = vector.extract_strided_slice %54 {offsets = [0, 64], sizes = [16, 716], strides = [1, 1]} : vector<16x800xbf16> to vector<16x716xbf16>
      %75 = vector.extract_strided_slice %54 {offsets = [0, 80], sizes = [16, 716], strides = [1, 1]} : vector<16x800xbf16> to vector<16x716xbf16>
      %76 = vector.extract_strided_slice %54 {offsets = [0, 81], sizes = [16, 716], strides = [1, 1]} : vector<16x800xbf16> to vector<16x716xbf16>
      %77 = vector.extract_strided_slice %54 {offsets = [0, 82], sizes = [16, 716], strides = [1, 1]} : vector<16x800xbf16> to vector<16x716xbf16>
      %78 = vector.extract_strided_slice %54 {offsets = [0, 83], sizes = [16, 716], strides = [1, 1]} : vector<16x800xbf16> to vector<16x716xbf16>
      %79 = vector.extract_strided_slice %54 {offsets = [0, 84], sizes = [16, 716], strides = [1, 1]} : vector<16x800xbf16> to vector<16x716xbf16>
      %80 = tpu.concatenate %55, %56, %57, %58, %59, %60, %61, %62, %63, %64, %65, %66, %67, %68, %69, %70 in 0 : vector<16x716xbf16>, vector<16x716xbf16>, vector<16x716xbf16>, vector<16x716xbf16>, vector<16x716xbf16>, vector<16x716xbf16>, vector<16x716xbf16>, vector<16x716xbf16>, vector<16x716xbf16>, vector<16x716xbf16>, vector<16x716xbf16>, vector<16x716xbf16>, vector<16x716xbf16>, vector<16x716xbf16>, vector<16x716xbf16>, vector<16x716xbf16> -> vector<256x716xbf16>
      %81 = tpu.concatenate %71, %72, %73, %74, %75, %76, %77, %78, %79 in 0 : vector<16x716xbf16>, vector<16x716xbf16>, vector<16x716xbf16>, vector<16x716xbf16>, vector<16x716xbf16>, vector<16x716xbf16>, vector<16x716xbf16>, vector<16x716xbf16>, vector<16x716xbf16> -> vector<144x716xbf16>
      %82 = tpu.concatenate %80, %81 in 0 : vector<256x716xbf16>, vector<144x716xbf16> -> vector<400x716xbf16>
      %cst_26 = arith.constant dense<0.000000e+00> : vector<16x716xf32>
      %83 = tpu.matmul %5, %82, %cst_26 {dimension_numbers = #tpu.dot_dimension_numbers<[1], [0], [0], [1], [0, 0, 1, 1], [], []>} : vector<16x400xbf16>, vector<400x716xbf16>, vector<16x716xf32> -> vector<16x716xf32>
      %84 = vector.broadcast %8 : vector<16x1xf32> to vector<16x716xf32>
      %85 = arith.addf %83, %84 : vector<16x716xf32>
      %cst_27 = arith.constant 0.000000e+00 : f32
      %86 = vector.broadcast %cst_27 : f32 to vector<16x716xf32>
      %87 = arith.maximumf %85, %86 : vector<16x716xf32>
      %88 = vector.broadcast %3 : vector<1x716xf32> to vector<16x716xf32>
      %89 = arith.mulf %87, %88 : vector<16x716xf32>
      %c0_28 = arith.constant 0 : index
      %c42_29 = arith.constant 42 : index
      %90 = vector.load %arg12[%c0_28, %c42_29] : memref<16x800xf32, #tpu.memory_space<vmem>>, vector<16x716xf32>
      tpu.vector_store %arg12[%c0_28, %c42_29], %89 {strides = array<i32>} : memref<16x800xf32, #tpu.memory_space<vmem>>, vector<16x716xf32>,
      %c0_30 = arith.constant 0 : index
      %c0_31 = arith.constant 0 : index
      %91 = vector.load %arg12[%c0_30, %c0_31] : memref<16x800xf32, #tpu.memory_space<vmem>>, vector<16x800xf32>
      %92 = arith.truncf %91 : vector<16x800xf32> to vector<16x800xbf16>
      %93 = vector.extract_strided_slice %92 {offsets = [0, 0], sizes = [16, 716], strides = [1, 1]} : vector<16x800xbf16> to vector<16x716xbf16>
      %94 = vector.extract_strided_slice %92 {offsets = [0, 1], sizes = [16, 716], strides = [1, 1]} : vector<16x800xbf16> to vector<16x716xbf16>
      %95 = vector.extract_strided_slice %92 {offsets = [0, 2], sizes = [16, 716], strides = [1, 1]} : vector<16x800xbf16> to vector<16x716xbf16>
      %96 = vector.extract_strided_slice %92 {offsets = [0, 3], sizes = [16, 716], strides = [1, 1]} : vector<16x800xbf16> to vector<16x716xbf16>
      %97 = vector.extract_strided_slice %92 {offsets = [0, 4], sizes = [16, 716], strides = [1, 1]} : vector<16x800xbf16> to vector<16x716xbf16>
      %98 = vector.extract_strided_slice %92 {offsets = [0, 20], sizes = [16, 716], strides = [1, 1]} : vector<16x800xbf16> to vector<16x716xbf16>
      %99 = vector.extract_strided_slice %92 {offsets = [0, 21], sizes = [16, 716], strides = [1, 1]} : vector<16x800xbf16> to vector<16x716xbf16>
      %100 = vector.extract_strided_slice %92 {offsets = [0, 22], sizes = [16, 716], strides = [1, 1]} : vector<16x800xbf16> to vector<16x716xbf16>
      %101 = vector.extract_strided_slice %92 {offsets = [0, 23], sizes = [16, 716], strides = [1, 1]} : vector<16x800xbf16> to vector<16x716xbf16>
      %102 = vector.extract_strided_slice %92 {offsets = [0, 24], sizes = [16, 716], strides = [1, 1]} : vector<16x800xbf16> to vector<16x716xbf16>
      %103 = vector.extract_strided_slice %92 {offsets = [0, 40], sizes = [16, 716], strides = [1, 1]} : vector<16x800xbf16> to vector<16x716xbf16>
      %104 = vector.extract_strided_slice %92 {offsets = [0, 41], sizes = [16, 716], strides = [1, 1]} : vector<16x800xbf16> to vector<16x716xbf16>
      %105 = vector.extract_strided_slice %92 {offsets = [0, 42], sizes = [16, 716], strides = [1, 1]} : vector<16x800xbf16> to vector<16x716xbf16>
      %106 = vector.extract_strided_slice %92 {offsets = [0, 43], sizes = [16, 716], strides = [1, 1]} : vector<16x800xbf16> to vector<16x716xbf16>
      %107 = vector.extract_strided_slice %92 {offsets = [0, 44], sizes = [16, 716], strides = [1, 1]} : vector<16x800xbf16> to vector<16x716xbf16>
      %108 = vector.extract_strided_slice %92 {offsets = [0, 60], sizes = [16, 716], strides = [1, 1]} : vector<16x800xbf16> to vector<16x716xbf16>
      %109 = vector.extract_strided_slice %92 {offsets = [0, 61], sizes = [16, 716], strides = [1, 1]} : vector<16x800xbf16> to vector<16x716xbf16>
      %110 = vector.extract_strided_slice %92 {offsets = [0, 62], sizes = [16, 716], strides = [1, 1]} : vector<16x800xbf16> to vector<16x716xbf16>
      %111 = vector.extract_strided_slice %92 {offsets = [0, 63], sizes = [16, 716], strides = [1, 1]} : vector<16x800xbf16> to vector<16x716xbf16>
      %112 = vector.extract_strided_slice %92 {offsets = [0, 64], sizes = [16, 716], strides = [1, 1]} : vector<16x800xbf16> to vector<16x716xbf16>
      %113 = vector.extract_strided_slice %92 {offsets = [0, 80], sizes = [16, 716], strides = [1, 1]} : vector<16x800xbf16> to vector<16x716xbf16>
      %114 = vector.extract_strided_slice %92 {offsets = [0, 81], sizes = [16, 716], strides = [1, 1]} : vector<16x800xbf16> to vector<16x716xbf16>
      %115 = vector.extract_strided_slice %92 {offsets = [0, 82], sizes = [16, 716], strides = [1, 1]} : vector<16x800xbf16> to vector<16x716xbf16>
      %116 = vector.extract_strided_slice %92 {offsets = [0, 83], sizes = [16, 716], strides = [1, 1]} : vector<16x800xbf16> to vector<16x716xbf16>
      %117 = vector.extract_strided_slice %92 {offsets = [0, 84], sizes = [16, 716], strides = [1, 1]} : vector<16x800xbf16> to vector<16x716xbf16>
      %118 = tpu.concatenate %93, %94, %95, %96, %97, %98, %99, %100, %101, %102, %103, %104, %105, %106, %107, %108 in 0 : vector<16x716xbf16>, vector<16x716xbf16>, vector<16x716xbf16>, vector<16x716xbf16>, vector<16x716xbf16>, vector<16x716xbf16>, vector<16x716xbf16>, vector<16x716xbf16>, vector<16x716xbf16>, vector<16x716xbf16>, vector<16x716xbf16>, vector<16x716xbf16>, vector<16x716xbf16>, vector<16x716xbf16>, vector<16x716xbf16>, vector<16x716xbf16> -> vector<256x716xbf16>
      %119 = tpu.concatenate %109, %110, %111, %112, %113, %114, %115, %116, %117 in 0 : vector<16x716xbf16>, vector<16x716xbf16>, vector<16x716xbf16>, vector<16x716xbf16>, vector<16x716xbf16>, vector<16x716xbf16>, vector<16x716xbf16>, vector<16x716xbf16>, vector<16x716xbf16> -> vector<144x716xbf16>
      %120 = tpu.concatenate %118, %119 in 0 : vector<256x716xbf16>, vector<144x716xbf16> -> vector<400x716xbf16>
      %cst_32 = arith.constant dense<0.000000e+00> : vector<8x716xf32>
      %121 = tpu.matmul %6, %120, %cst_32 {dimension_numbers = #tpu.dot_dimension_numbers<[1], [0], [0], [1], [0, 0, 1, 1], [], []>} : vector<8x400xbf16>, vector<400x716xbf16>, vector<8x716xf32> -> vector<8x716xf32>
      %122 = vector.broadcast %9 : vector<8x1xf32> to vector<8x716xf32>
      %123 = arith.addf %121, %122 : vector<8x716xf32>
      %124 = vector.extract_strided_slice %123 {offsets = [0, 0], sizes = [2, 716], strides = [1, 1]} : vector<8x716xf32> to vector<2x716xf32>
      %cst_33 = arith.constant 0.000000e+00 : f32
      %125 = vector.broadcast %cst_33 : f32 to vector<2x716xf32>
      %126 = arith.subf %125, %124 : vector<2x716xf32>
      %127 = math.exp %126 : vector<2x716xf32>
      %cst_34 = arith.constant 1.000000e+00 : f32
      %128 = vector.broadcast %cst_34 : f32 to vector<2x716xf32>
      %129 = arith.addf %128, %127 : vector<2x716xf32>
      %130 = tpu.reciprocal %129 {approx = true} : vector<2x716xf32> -> vector<2x716xf32>
      %131 = vector.extract_strided_slice %123 {offsets = [2, 0], sizes = [2, 716], strides = [1, 1]} : vector<8x716xf32> to vector<2x716xf32>
      %cst_35 = arith.constant 0.000000e+00 : f32
      %132 = vector.broadcast %cst_35 : f32 to vector<2x716xf32>
      %133 = arith.subf %132, %131 : vector<2x716xf32>
      %134 = math.exp %133 : vector<2x716xf32>
      %cst_36 = arith.constant 1.000000e+00 : f32
      %135 = vector.broadcast %cst_36 : f32 to vector<2x716xf32>
      %136 = arith.addf %135, %134 : vector<2x716xf32>
      %137 = tpu.reciprocal %136 {approx = true} : vector<2x716xf32> -> vector<2x716xf32>
      %138 = vector.extract_strided_slice %123 {offsets = [4, 0], sizes = [2, 716], strides = [1, 1]} : vector<8x716xf32> to vector<2x716xf32>
      %cst_37 = arith.constant 0.000000e+00 : f32
      %139 = vector.broadcast %cst_37 : f32 to vector<2x716xf32>
      %140 = arith.subf %139, %138 : vector<2x716xf32>
      %141 = math.exp %140 : vector<2x716xf32>
      %cst_38 = arith.constant 1.000000e+00 : f32
      %142 = vector.broadcast %cst_38 : f32 to vector<2x716xf32>
      %143 = arith.addf %142, %141 : vector<2x716xf32>
      %144 = tpu.reciprocal %143 {approx = true} : vector<2x716xf32> -> vector<2x716xf32>
      %c0_39 = arith.constant 0 : index
      %c0_40 = arith.constant 0 : index
      %145 = vector.load %arg13[%c0_39, %c0_40] : memref<2x716xf32, #tpu.memory_space<vmem>>, vector<2x716xf32>
      %146 = arith.mulf %130, %145 : vector<2x716xf32>
      %147 = vector.extract_strided_slice %123 {offsets = [6, 0], sizes = [2, 716], strides = [1, 1]} : vector<8x716xf32> to vector<2x716xf32>
      %148 = arith.mulf %137, %147 : vector<2x716xf32>
      %149 = arith.addf %146, %148 : vector<2x716xf32>
      %150 = arith.mulf %149, %144 : vector<2x716xf32>
      %c0_41 = arith.constant 0 : index
      %c0_42 = arith.constant 0 : index
      %151 = vector.load %arg13[%c0_41, %c0_42] : memref<2x716xf32, #tpu.memory_space<vmem>>, vector<2x716xf32>
      tpu.vector_store %arg13[%c0_41, %c0_42], %149 {strides = array<i32>} : memref<2x716xf32, #tpu.memory_space<vmem>>, vector<2x716xf32>,
      %152 = arith.index_cast %arg14 : i32 to index
      %c0_43 = arith.constant 0 : index
      %c0_44 = arith.constant 0 : index
      %153 = vector.load %arg9[%152, %c0_43, %c0_44] : memref<4x2x716xf32, #tpu.memory_space<vmem>>, vector<1x2x716xf32>
      %154 = vector.shape_cast %153 : vector<1x2x716xf32> to vector<2x716xf32>
      %155 = vector.shape_cast %150 : vector<2x716xf32> to vector<1x2x716xf32>
      tpu.vector_store %arg9[%152, %c0_43, %c0_44], %155 {strides = array<i32>} : memref<4x2x716xf32, #tpu.memory_space<vmem>>, vector<1x2x716xf32>,
      %156 = vector.broadcast %3 : vector<1x716xf32> to vector<2x716xf32>
      %157 = arith.mulf %150, %156 : vector<2x716xf32>
      %c2 = arith.constant 2 : index
      %c42_45 = arith.constant 42 : index
      %158 = vector.load %arg10[%c2, %c42_45] : memref<4x800xf32, #tpu.memory_space<vmem>>, vector<2x716xf32>
      tpu.vector_store %arg10[%c2, %c42_45], %157 {strides = array<i32>} : memref<4x800xf32, #tpu.memory_space<vmem>>, vector<2x716xf32>,
    }
    %c4_i32_15 = arith.constant 4 : i32
    return
  }
  func.func @transform_0(%arg0: i32) -> (i32, i32, i32) {
    %c0_i32 = arith.constant 0 : i32
    %c0_i32_0 = arith.constant 0 : i32
    %c0_i32_1 = arith.constant 0 : i32
    return %arg0, %c0_i32, %c0_i32_0 : i32, i32, i32
  }
  func.func @transform_1(%arg0: i32) -> (i32, i32) {
    %c0_i32 = arith.constant 0 : i32
    %c0_i32_0 = arith.constant 0 : i32
    %c0_i32_1 = arith.constant 0 : i32
    return %c0_i32, %c0_i32_0 : i32, i32
  }
  func.func @transform_2(%arg0: i32) -> (i32, i32) {
    %c0_i32 = arith.constant 0 : i32
    %c0_i32_0 = arith.constant 0 : i32
    %c0_i32_1 = arith.constant 0 : i32
    return %c0_i32, %c0_i32_0 : i32, i32
  }
  func.func @transform_3(%arg0: i32) -> (i32, i32) {
    %c0_i32 = arith.constant 0 : i32
    %c0_i32_0 = arith.constant 0 : i32
    %c0_i32_1 = arith.constant 0 : i32
    return %c0_i32, %c0_i32_0 : i32, i32
  }
  func.func @transform_4(%arg0: i32) -> (i32, i32) {
    %c0_i32 = arith.constant 0 : i32
    %c0_i32_0 = arith.constant 0 : i32
    %c0_i32_1 = arith.constant 0 : i32
    return %c0_i32, %c0_i32_0 : i32, i32
  }
  func.func @transform_5(%arg0: i32) -> (i32, i32) {
    %c0_i32 = arith.constant 0 : i32
    %c0_i32_0 = arith.constant 0 : i32
    %c0_i32_1 = arith.constant 0 : i32
    return %c0_i32, %c0_i32_0 : i32, i32
  }
  func.func @transform_6(%arg0: i32) -> (i32, i32) {
    %c0_i32 = arith.constant 0 : i32
    %c0_i32_0 = arith.constant 0 : i32
    %c0_i32_1 = arith.constant 0 : i32
    return %c0_i32, %c0_i32_0 : i32, i32
  }
  func.func @transform_7(%arg0: i32) -> (i32, i32) {
    %c0_i32 = arith.constant 0 : i32
    %c0_i32_0 = arith.constant 0 : i32
    %c0_i32_1 = arith.constant 0 : i32
    return %c0_i32, %c0_i32_0 : i32, i32
  }
  func.func @transform_8(%arg0: i32) -> (i32, i32, i32) {
    %c0_i32 = arith.constant 0 : i32
    %c0_i32_0 = arith.constant 0 : i32
    %c0_i32_1 = arith.constant 0 : i32
    return %arg0, %c0_i32, %c0_i32_0 : i32, i32, i32
  }
}

</mosaic_0001>

<bundles_post_ra>
// kernel: tpu_custom_call.1
= control target key start
LH: loop header
LB: loop body
LE: loop exit
PB: predicated region body
PF: predicated region fallthrough
CT: control target
= control target key end

     0   :  { %s7697_s0 = inlined_call_operand.hbm [shape: f32[8,2,800], index: 0, kind: input, shape index: {}]   ;;  %s7698_s1 = inlined_call_operand.hbm [shape: bf16[16,100], index: 1, kind: input, shape index: {}]   ;;  %s7699_s2 = inlined_call_operand.hbm [shape: f32[16,1], index: 2, kind: input, shape index: {}]   ;;  %s7700_s3 = inlined_call_operand.hbm [shape: bf16[16,400], index: 3, kind: input, shape index: {}]   ;;  %s7701_s4 = inlined_call_operand.hbm [shape: f32[16,1], index: 4, kind: input, shape index: {}]   ;;  %s7702_s5 = inlined_call_operand.hbm [shape: bf16[8,400], index: 5, kind: input, shape index: {}]   ;;  %s7703_s6 = inlined_call_operand.hbm [shape: f32[8,1], index: 6, kind: input, shape index: {}]   ;;  %s7704_s7 = inlined_call_operand.hbm [shape: f32[1,716], index: 7, kind: input, shape index: {}]   ;;  %s7705_s8 = inlined_call_operand.hbm [shape: f32[8,2,716], index: 8, kind: output, shape index: {}]  }
   0x1   :  { %7769 = sst [smem:[#allocation43_spill]] %s7697_s0 }
   0x2   :  { %7770 = sst [smem:[#allocation44_spill]] %s7698_s1 }
   0x3   :  { %7771 = sst [smem:[#allocation45_spill]] %s7699_s2 }
   0x4   :  { %7772 = sst [smem:[#allocation46_spill]] %s7700_s3 }
   0x5   :  { %7773 = sst [smem:[#allocation47_spill]] %s7701_s4 }
   0x6   :  { %7774 = sst [smem:[#allocation48_spill]] %s7702_s5 }
   0x7   :  { %7775 = sst [smem:[#allocation49_spill]] %s7703_s6 }
   0x8   :  { %7776 = sst [smem:[#allocation50_spill]] %s7704_s7 }
   0x9   :  { %13 = vsyncpa [#allocation7], 0 }
   0xa   :  { %15 = vsyncpa [#allocation7 + $0x1], 0 }
   0xb   :  { %16 = vsyncpa [#allocation10], 0 }
   0xc   :  { %17 = vsyncpa [#allocation13], 0 }
   0xd   :  { %18 = vsyncpa [#allocation16], 0 }
   0xe   :  { %19 = vsyncpa [#allocation19], 0 }
   0xf   :  { %20 = vsyncpa [#allocation8], 0 }
  0x10   :  { %22 = vsyncpa [#allocation8 + $0x1], 0  ;;  %s4591_s27 = smov 0   ;;  %s4593_s28 = smov 0  }
  0x11   :  { %s4595_s29 = smov 0   ;;  %s4597_s30 = smov 0  }
  0x12 LB: > { %s4506_s9 = smov [#allocation9]   ;;  %s4612_s11 = sadd.s32 4294967295, %s4500_s30   ;;  %s4500_s30 = sphi %s4597_s30, %s7980_s30   ;;  %s4496_s29 = sphi %s4595_s29, %s7979_s29   ;;  %s4492_s28 = sphi %s4593_s28, %s7978_s28   ;;  %s4488_s27 = sphi %s4591_s27, %s7977_s27  }
  0x13   : > { %s244_s10 = sshll.u32 %s4506_s9, 4  ;;  %p3900_p0 = scmp.ge.s32.totalorder %s4500_s30, 1  ;;  %s4618_s10 = int_to_ptr.vmem [resolvable:$true] %s244_s10 }
  0x14   : > { %p7706_p1 = scmp.eq.s32.totalorder %s4612_s11, 0  ;;  %p232_p2 = scmp.lt.s32.totalorder %s4500_s30, 3 }
  0x15   : > { %s4507_s13 = smov [#allocation12]   ;;  %s4508_s16 = smov [#allocation15]  }
  0x16   : > { %p4620_p4 = pnand %p3900_p0, %p232_p2  ;;  %s270_s14 = sshll.u32 %s4507_s13, 4  ;;  %s4633_s14 = int_to_ptr.vmem [resolvable:$true] %s270_s14 }
  0x17   : > { %s4635_s17 = sshll.u32 %s4508_s16, 4  ;;  %s7779_s1 = sld [smem:[#allocation44_spill]]  ;;  %s298_s17 = int_to_ptr.vmem [resolvable:$true] %s4635_s17 }
  0x18   : > { %s7777_s12 = scalar_select %p4620_p4, 1, 0 }
  0x19   : > { %p4034_p6 = pneg %p4620_p4 }
  0x1b   : > { %p4629_p7 = pnand %p4034_p6, %p7706_p1 }
  0x1d   : > { %s4188_s20 = scalar_lea.hbm %s7779_s1, 128  ;;  %p4645_p9 = pneg %p4629_p7 }
  0x1e   : > { %p4189_p8 = scmp.ne.s32.totalorder %s7779_s1, %s4188_s20  ;;  %p4195_p12 = scmp.lt.u32.totalorder %s4188_s20, %s7779_s1 }
  0x20   : > { %p4191_p10 = pnand %p4645_p9, %p4189_p8 }
  0x22   : > { %p4192_p11 = pneg %p4191_p10 }
  0x24   : > { %p4197_p13 = pnand %p4195_p12, %p4192_p11 }
  0x26   : > { %4200 = shalt.err (!%p4197_p13)
}
  0x27   : > { %s4201_s26 = scalar_lea.vmem %s4618_s10, 128  ;;  %p4209_p5 = scmp.lt.s32.totalorder %s4618_s10, %s4618_s10 }
  0x28   : > { %p4202_p0 = scmp.ne.s32.totalorder %s4618_s10, %s4201_s26  ;;  %p4210_p3 = scmp.lt.s32.totalorder %s4201_s26, %s4201_s26 }
  0x2a   : > { %p4204_p2 = pnand %p4202_p0, %p4645_p9  ;;  %p4211_p8 = por %p4210_p3, %p4209_p5 }
  0x2c   : > { %p4205_p6 = pneg %p4204_p2 }
  0x2e   : > { %p4212_p10 = pnand %p4211_p8, %p4205_p6 }
  0x30   : > { %4215 = shalt.err (!%p4212_p10)
}
  0x31   : > { %s4509_s9 = smov 64   ;;  %s4510_s13 = smov 4  }
  0x32   : > { %4037 = dma.hbm_to_vmem [thread:$0]  (!%p4629_p7), %s7779_s1, 128, %s4618_s10, [#allocation10], %s4509_s9, %s4509_s9, %s4510_s13  }
  0x33   : > { %s7781_s3 = sld [smem:[#allocation46_spill]] }
  0x39   : > { %s4216_s21 = scalar_lea.hbm %s7781_s3, 512 }
  0x3a   : > { %p4217_p3 = scmp.ne.s32.totalorder %s7781_s3, %s4216_s21  ;;  %p4223_p12 = scmp.lt.u32.totalorder %s4216_s21, %s7781_s3 }
  0x3c   : > { %p4219_p5 = pnand %p4217_p3, %p4645_p9 }
  0x3e   : > { %p4220_p11 = pneg %p4219_p5 }
  0x40   : > { %p4225_p13 = pnand %p4223_p12, %p4220_p11 }
  0x42   : > { %4228 = shalt.err (!%p4225_p13)
}
  0x43   : > { %s4229_s10 = scalar_lea.vmem %s4633_s14, 512  ;;  %p4237_p8 = scmp.lt.s32.totalorder %s4633_s14, %s4633_s14 }
  0x44   : > { %p4230_p0 = scmp.ne.s32.totalorder %s4633_s14, %s4229_s10  ;;  %p4238_p10 = scmp.lt.s32.totalorder %s4229_s10, %s4229_s10 }
  0x46   : > { %p4232_p2 = pnand %p4230_p0, %p4645_p9  ;;  %p4239_p3 = por %p4238_p10, %p4237_p8 }
  0x48   : > { %p4233_p6 = pneg %p4232_p2 }
  0x4a   : > { %p4240_p5 = pnand %p4239_p3, %p4233_p6 }
  0x4c   : > { %4243 = shalt.err (!%p4240_p5)
}
  0x4d   : > { %s4511_s9 = smov 256   ;;  %s4512_s13 = smov 16  }
  0x4e   : > { %4043 = dma.hbm_to_vmem [thread:$0]  (!%p4629_p7), %s7781_s3, 512, %s4633_s14, [#allocation13], %s4511_s9, %s4511_s9, %s4512_s13  }
  0x4f   : > { %s7782_s5 = sld [smem:[#allocation48_spill]] }
  0x55   : > { %s4244_s21 = scalar_lea.hbm %s7782_s5, 256 }
  0x56   : > { %p4245_p11 = scmp.ne.s32.totalorder %s7782_s5, %s4244_s21  ;;  %p4251_p0 = scmp.lt.u32.totalorder %s4244_s21, %s7782_s5 }
  0x58   : > { %p4247_p12 = pnand %p4245_p11, %p4645_p9 }
  0x5a   : > { %p4248_p13 = pneg %p4247_p12 }
  0x5c   : > { %p4253_p2 = pnand %p4251_p0, %p4248_p13 }
  0x5e   : > { %4256 = shalt.err (!%p4253_p2)
}
  0x5f   : > { %s4257_s10 = scalar_lea.vmem %s298_s17, 256  ;;  %p4265_p3 = scmp.lt.s32.totalorder %s298_s17, %s298_s17 }
  0x60   : > { %p4258_p6 = scmp.ne.s32.totalorder %s298_s17, %s4257_s10  ;;  %p4266_p5 = scmp.lt.s32.totalorder %s4257_s10, %s4257_s10 }
  0x62   : > { %p4260_p8 = pnand %p4258_p6, %p4645_p9  ;;  %p4267_p1 = por %p4266_p5, %p4265_p3 }
  0x64   : > { %p4261_p10 = pneg %p4260_p8 }
  0x66   : > { %p4268_p4 = pnand %p4267_p1, %p4261_p10 }
  0x68   : > { %4271 = shalt.err (!%p4268_p4)
}
  0x69   : > { %4049 = dma.hbm_to_vmem [thread:$0]  (!%p4629_p7), %s7782_s5, 256, %s298_s17, [#allocation16]  }
  0x6a   : > { %s4513_s13 = smov [#allocation11]   ;;  %s7783_s2 = sld [smem:[#allocation45_spill]] }
  0x6b   : > { %s257_s16 = sshll.u32 %s4513_s13, 4  ;;  %s258_s16 = int_to_ptr.vmem [resolvable:$true] %s257_s16 }
  0x70   : > { %s4272_s20 = scalar_lea.hbm %s7783_s2, 256 }
  0x71   : > { %p4273_p11 = scmp.ne.s32.totalorder %s7783_s2, %s4272_s20  ;;  %p4279_p12 = scmp.lt.u32.totalorder %s4272_s20, %s7783_s2 }
  0x73   : > { %p4275_p1 = pnand %p4273_p11, %p4645_p9 }
  0x75   : > { %p4276_p4 = pneg %p4275_p1 }
  0x77   : > { %p4281_p13 = pnand %p4279_p12, %p4276_p4 }
  0x79   : > { %4284 = shalt.err (!%p4281_p13)
}
  0x7a   : > { %s4285_s17 = scalar_lea.vmem %s258_s16, 256  ;;  %p4293_p8 = scmp.lt.s32.totalorder %s258_s16, %s258_s16 }
  0x7b   : > { %p4286_p0 = scmp.ne.s32.totalorder %s258_s16, %s4285_s17  ;;  %p4294_p10 = scmp.lt.s32.totalorder %s4285_s17, %s4285_s17 }
  0x7d   : > { %p4288_p2 = pnand %p4286_p0, %p4645_p9  ;;  %p4295_p3 = por %p4294_p10, %p4293_p8 }
  0x7f   : > { %p4289_p6 = pneg %p4288_p2 }
  0x81   : > { %p4296_p5 = pnand %p4295_p3, %p4289_p6 }
  0x83   : > { %4299 = shalt.err (!%p4296_p5)
}
  0x84   : > { %s4514_s26 = smov 128   ;;  %s4515_s10 = smov 8  }
  0x85   : > { %4040 = dma.hbm_to_vmem [thread:$0]  (!%p4629_p7), %s7783_s2, 256, %s258_s16, [#allocation10], %s4514_s26, %s4514_s26, %s4515_s10  }
  0x86   : > { %s4516_s13 = smov [#allocation14]   ;;  %s4517_s19 = smov [#allocation17]  }
  0x87   : > { %s283_s18 = sshll.u32 %s4516_s13, 4  ;;  %s308_s20 = sshll.u32 %s4517_s19, 4  ;;  %s284_s18 = int_to_ptr.vmem [resolvable:$true] %s283_s18  ;;  %s4726_s20 = int_to_ptr.vmem [resolvable:$true] %s308_s20 }
  0x88   : > { %s7784_s4 = sld [smem:[#allocation47_spill]] }
  0x8e   : > { %s4300_s24 = scalar_lea.hbm %s7784_s4, 256 }
  0x8f   : > { %p4301_p11 = scmp.ne.s32.totalorder %s7784_s4, %s4300_s24  ;;  %p4307_p12 = scmp.lt.u32.totalorder %s4300_s24, %s7784_s4 }
  0x91   : > { %p4303_p1 = pnand %p4301_p11, %p4645_p9 }
  0x93   : > { %p4304_p4 = pneg %p4303_p1 }
  0x95   : > { %p4309_p13 = pnand %p4307_p12, %p4304_p4 }
  0x97   : > { %4312 = shalt.err (!%p4309_p13)
}
  0x98   : > { %s4313_s9 = scalar_lea.vmem %s284_s18, 256  ;;  %p4321_p8 = scmp.lt.s32.totalorder %s284_s18, %s284_s18 }
  0x99   : > { %p4314_p0 = scmp.ne.s32.totalorder %s284_s18, %s4313_s9  ;;  %p4322_p10 = scmp.lt.s32.totalorder %s4313_s9, %s4313_s9 }
  0x9b   : > { %p4316_p2 = pnand %p4314_p0, %p4645_p9  ;;  %p4323_p3 = por %p4322_p10, %p4321_p8 }
  0x9d   : > { %p4317_p6 = pneg %p4316_p2 }
  0x9f   : > { %p4324_p5 = pnand %p4323_p3, %p4317_p6 }
  0xa1   : > { %4327 = shalt.err (!%p4324_p5)
}
  0xa2   : > { %4046 = dma.hbm_to_vmem [thread:$0]  (!%p4629_p7), %s7784_s4, 256, %s284_s18, [#allocation13], %s4514_s26, %s4514_s26, %s4515_s10  }
  0xa3   : > { %s7785_s6 = sld [smem:[#allocation49_spill]] }
  0xa9   : > { %s4328_s24 = scalar_lea.hbm %s7785_s6, 128 }
  0xaa   : > { %p4329_p11 = scmp.ne.s32.totalorder %s7785_s6, %s4328_s24  ;;  %p4335_p12 = scmp.lt.u32.totalorder %s4328_s24, %s7785_s6 }
  0xac   : > { %p4331_p1 = pnand %p4329_p11, %p4645_p9 }
  0xae   : > { %p4332_p4 = pneg %p4331_p1 }
  0xb0   : > { %p4337_p13 = pnand %p4335_p12, %p4332_p4 }
  0xb2   : > { %4340 = shalt.err (!%p4337_p13)
}
  0xb3   : > { %s4341_s26 = scalar_lea.vmem %s4726_s20, 128  ;;  %p4349_p8 = scmp.lt.s32.totalorder %s4726_s20, %s4726_s20 }
  0xb4   : > { %p4342_p0 = scmp.ne.s32.totalorder %s4726_s20, %s4341_s26  ;;  %p4350_p10 = scmp.lt.s32.totalorder %s4341_s26, %s4341_s26 }
  0xb6   : > { %p4344_p2 = pnand %p4342_p0, %p4645_p9  ;;  %p4351_p3 = por %p4350_p10, %p4349_p8 }
  0xb8   : > { %p4345_p6 = pneg %p4344_p2 }
  0xba   : > { %p4352_p5 = pnand %p4351_p3, %p4345_p6 }
  0xbc   : > { %4355 = shalt.err (!%p4352_p5)
}
  0xbd   : > { %4052 = dma.hbm_to_vmem [thread:$0]  (!%p4629_p7), %s7785_s6, 128, %s4726_s20, [#allocation16]  }
  0xbe   : > { %s4518_s9 = smov [#allocation18]   ;;  %s7786_s7 = sld [smem:[#allocation50_spill]] }
  0xbf   : > { %s319_s13 = sshll.u32 %s4518_s9, 4  ;;  %s320_s13 = int_to_ptr.vmem [resolvable:$true] %s319_s13 }
  0xc4   : > { %s4356_s22 = scalar_lea.hbm %s7786_s7, 96 }
  0xc5   : > { %p4357_p11 = scmp.ne.s32.totalorder %s7786_s7, %s4356_s22  ;;  %p4363_p12 = scmp.lt.u32.totalorder %s4356_s22, %s7786_s7 }
  0xc7   : > { %p4359_p1 = pnand %p4357_p11, %p4645_p9 }
  0xc9   : > { %p4360_p4 = pneg %p4359_p1 }
  0xcb   : > { %p4365_p13 = pnand %p4363_p12, %p4360_p4 }
  0xcd   : > { %4368 = shalt.err (!%p4365_p13)
}
  0xce   : > { %s4369_s20 = scalar_lea.vmem %s320_s13, 96  ;;  %p4377_p8 = scmp.lt.s32.totalorder %s320_s13, %s320_s13 }
  0xcf   : > { %p4370_p0 = scmp.ne.s32.totalorder %s320_s13, %s4369_s20  ;;  %p4378_p10 = scmp.lt.s32.totalorder %s4369_s20, %s4369_s20 }
  0xd1   : > { %p4372_p2 = pnand %p4370_p0, %p4645_p9  ;;  %p4379_p3 = por %p4378_p10, %p4377_p8 }
  0xd3   : > { %p4373_p6 = pneg %p4372_p2 }
  0xd5   : > { %p4380_p5 = pnand %p4379_p3, %p4373_p6 }
  0xd7   : > { %4383 = shalt.err (!%p4380_p5)
}
  0xd8   : > { %4055 = dma.hbm_to_vmem [thread:$0]  (!%p4629_p7), %s7786_s7, 96, %s320_s13, [#allocation19]  }
  0xd9   : > { %s3899_s23 = sadd.s32 4294967294, %s4500_s30   ;;  %s4789_s15 = sadd.s32 1, %s4500_s30  }
  0xda   : > { %s35_s10 = sadd.s32 1, %s4496_s29  ;;  %s32_s18 = ssub.s32 %s4500_s30, %s4789_s15 }
  0xdb   : > { %p42_p9 = scmp.ne.s32.totalorder %s4496_s29, %s4492_s28  ;;  %p33_p11 = scmp.eq.s32.totalorder %s32_s18, 0 }
  0xdc   : > { %p43_p1 = scmp.eq.s32.totalorder %s4500_s30, 0  ;;  %p48_p4 = scmp.ne.s32.totalorder %s4492_s28, %s4488_s27 }
  0xdd   : > { %p219_p12 = scmp.eq.s32.totalorder %s4612_s11, 1  ;;  %p7787_p0 = scmp.eq.s32.totalorder %s4612_s11, 0 }
  0xde   : > { %s4801_s9 = scalar_select %p33_p11, %s4496_s29, %s35_s10  }
  0xdf   : > { %p44_p13 = por %p43_p1, %p42_p9  ;;  %p4805_p2 = por %p7787_p0, %p48_p4 }
  0xe0   : > { %p4809_p7 = por %p219_p12, %p42_p9  ;;  %p225_p6 = scmp.eq.s32.totalorder %s3899_s23, 1 }
  0xe1   : > { %p4071_p8 = scmp.lt.s32.totalorder %s4500_s30, 2  ;;  %s330_s21 = sand.u32 1, %s4496_s29  }
  0xe2   : > { %s7789_s13 = scalar_select %p4809_p7, 1, 0 }
  0xe3   : > { %p4815_p10 = por %p225_p6, %p48_p4  ;;  %s3997_s24 = smul.u32 56, %s330_s21 }
  0xe4   : > { %p4819_p3 = pnand %p4071_p8, %p44_p13  ;;  %s3998_s17 = smul.u32 896, %s4500_s30 }
  0xe5   : > { %s7790_s22 = scalar_select %p4815_p10, 1, 0 }
  0xe6   : > { %s7792_s0 = sld [smem:[#allocation43_spill]]  ;;  %s334_s26 = scalar_lea.vmem [#allocation6], %s3997_s24 }
  0xe7   : > { %s342_s23 = sshll.u32 %s334_s26, 4  ;;  %s4831_s10 = scalar_lea.sflag [#allocation7], %s330_s21  ;;  %s4829_s23 = int_to_ptr.vmem [resolvable:$true] %s342_s23 }
  0xe8   : > { %p4386_p9 = pneg %p4819_p3 }
  0xec   : > { %s4827_s16 = scalar_lea.hbm %s7792_s0, %s3998_s17  ;;  %s4389_s20 = scalar_lea.hbm %s7792_s0, 1792 }
  0xed   : > { %s4384_s18 = scalar_lea.hbm %s4827_s16, 896  ;;  %p4390_p4 = scmp.lt.u32.totalorder %s4827_s16, %s7792_s0 }
  0xee   : > { %p4385_p5 = scmp.ne.s32.totalorder %s4827_s16, %s4384_s18  ;;  %p4391_p12 = scmp.lt.u32.totalorder %s4389_s20, %s4384_s18 }
  0xef   : > { %p4393_p0 = scmp.lt.u32.totalorder %s4384_s18, %s4827_s16 }
  0xf0   : > { %p4387_p11 = pnand %p4386_p9, %p4385_p5  ;;  %p4392_p13 = por %p4391_p12, %p4390_p4 }
  0xf2   : > { %p4388_p1 = pneg %p4387_p11  ;;  %p4394_p6 = por %p4393_p0, %p4392_p13 }
  0xf4   : > { %p4395_p8 = pnand %p4394_p6, %p4388_p1 }
  0xf6   : > { %4398 = shalt.err (!%p4395_p8)
}
  0xf7   : > { %s4399_s21 = scalar_lea.vmem %s4829_s23, 896  ;;  %s4519_s24 = smov [#allocation6]  }
  0xf8   : > { %p4400_p5 = scmp.ne.s32.totalorder %s4829_s23, %s4399_s21  ;;  %s4404_s26 = sshll.u32 %s4519_s24, 4  ;;  %s4405_s26 = int_to_ptr.vmem [resolvable:$false] %s4404_s26 }
  0xf9   : > { %s4406_s1 = scalar_lea.vmem %s4405_s26, 1792  ;;  %p4407_p7 = scmp.lt.s32.totalorder %s4829_s23, %s4405_s26 }
  0xfa   : > { %p4402_p11 = pnand %p4400_p5, %p4386_p9  ;;  %p4408_p4 = scmp.lt.s32.totalorder %s4406_s1, %s4399_s21 }
  0xfc   : > { %p4403_p10 = pneg %p4402_p11  ;;  %p4409_p12 = por %p4408_p4, %p4407_p7 }
  0xfe   : > { %p4410_p13 = pnand %p4409_p12, %p4403_p10 }
 0x100   : > { %4413 = shalt.err (!%p4410_p13)
}
 0x101   : > { %s4520_s2 = smov 224   ;;  %s4521_s18 = smov 14  }
 0x102   : > { %4059 = dma.hbm_to_vmem [thread:$0]  (!%p4819_p3), %s4827_s16, 896, %s4829_s23, %s4831_s10, %s4520_s2, %s4520_s2, %s4521_s18  }
 0x103   : > { %p7793_p9 = scmp.ne.s32.totalorder %s7777_s12, 0 }
 0x105   : > { %354 = sbr.rel (%p7793_p9) target bundleno = 2682 (0xa7a), region = 52 }
 0x10c   : > { %s4862_s17 = sand.u32 1, %s4492_s28  }
 0x10d   : > { %s3999_s14 = smul.u32 56, %s4862_s17  ;;  %s357_s20 = scalar_lea.sflag [#allocation7], %s4862_s17 }
 0x10f   : > { %s4866_s21 = scalar_lea.vmem [#allocation6], %s3999_s14 }
 0x110   : > { %7794 = sst [smem:[#allocation27_spill]] %s4866_s21 }
 0x111   : > { %4463 = dma.done.wait (%p4805_p2), %s357_s20, 896  }
 0x112   : > { %4465 = vsyncadd (%p4805_p2), %s357_s20, 4294966400  ;;  %p7795_p7 = scmp.eq.s32.totalorder %s4612_s11, 0 }
 0x114   : > { %4467 = dma.done.wait (%p7795_p7), [#allocation10], 384   ;;  %p7796_p10 = pmov %p7795_p7 }
 0x115   : > { %p7797_p3 = pmov %p7795_p7 }
 0x116   : > { %4469 = vsyncadd (%p7796_p10), [#allocation10], 4294966912 }
 0x117   : > { %4471 = dma.done.wait (%p7797_p3), [#allocation13], 768   ;;  %p7798_p1 = pmov %p7797_p3 }
 0x119   : > { %4473 = vsyncadd (%p7798_p1), [#allocation13], 4294966528  ;;  %p7799_p0 = pmov %p7798_p1 }
 0x11b   : > { %4475 = dma.done.wait (%p7799_p0), [#allocation16], 384   ;;  %p7800_p6 = pmov %p7799_p0 }
 0x11c   : > { %p7801_p2 = pmov %p7799_p0 }
 0x11d   : > { %4477 = vsyncadd (%p7800_p6), [#allocation16], 4294966912 }
 0x11e   : > { %4479 = dma.done.wait (%p7801_p2), [#allocation19], 96   ;;  %p7802_p8 = pmov %p7799_p0 }
 0x11f   : > { %s4000_s12 = smul.u32 48, %s4862_s17  ;;  %p7803_p5 = scmp.ne.s32.totalorder %s4612_s11, 0 }
 0x120   : > { %4481 = vsyncadd (%p7802_p8), [#allocation19], 4294967200  ;;  %vm431_vm0 = vcmask (!%p7803_p5), 257024   ;;  %vm439_vm1 = vcmask (!%p7803_p5), 261120   ;;  %vm463_vm2 = vcmask (!%p7803_p5), 1041408   ;;  %v4522_v0 = vmov (!%p7803_p5), 0.0  }
 0x121   : > { %s4889_s19 = scalar_lea.vmem [#allocation20], %s4000_s12  ;;  %427 = sbr.rel (%p7803_p5) target bundleno = 299 (0x12b), region = 88  ;;  %428 = vst [vmem:[#allocation2] sm:$0xff] (!%p7803_p5), %v4522_v0  ;;  %429 = vst [vmem:[#allocation2 + $0x8] sm:$0xff] (!%p7803_p5), %v4522_v0  ;;  %vm464_vm3 = vcmask (!%p7803_p5), 617474  }
 0x122   : > { %430 = vst [vmem:[#allocation2 + $0x10] sm:$0xff] (!%p7803_p5), %v4522_v0  ;;  %433 = vst [vmem:[#allocation3] sm:$0xff] (!%p7803_p5), %v4522_v0 }
 0x123   : > { %438 = vst [vmem:[#allocation3 + $0x28] sm:$0xff] (!%p7803_p5), %v4522_v0  ;;  %441 = vst [vmem:[#allocation3 + $0x38] sm:$0xff] (!%p7803_p5), %v4522_v0 }
 0x124   : > { %446 = vst [vmem:[#allocation3 + $0x60] sm:$0xff] (!%p7803_p5), %v4522_v0  ;;  %448 = vst [vmem:[#allocation4] sm:$0xff] (!%p7803_p5), %v4522_v0 }
 0x125   : > { %453 = vst [vmem:[#allocation4 + $0x28] sm:$0xff] (!%p7803_p5), %v4522_v0  ;;  %455 = vst [vmem:[#allocation4 + $0x38] sm:$0xff] (!%p7803_p5), %v4522_v0 }
 0x126   : > { %460 = vst [vmem:[#allocation4 + $0x60] sm:$0xff] (!%p7803_p5), %v4522_v0  ;;  %462 = vst [vmem:[#allocation5] sm:$0xff] (!%p7803_p5), %v4522_v0 }
 0x127   : > { %432 = vst.msk [vmem:[#allocation2 + $0x18] sm:$0xf] (!%p7803_p5), %vm431_vm0, %v4522_v0  ;;  %vm465_vm4 = vmor (!%p7803_p5), %vm464_vm3, %vm463_vm2 }
 0x128   : > { %440 = vst.msk [vmem:[#allocation3 + $0x30] sm:$0xff] %vm439_vm1, %v4522_v0  ;;  %447 = vst.msk [vmem:[#allocation3 + $0x68] sm:$0xff] %vm439_vm1, %v4522_v0 }
 0x129   : > { %454 = vst.msk [vmem:[#allocation4 + $0x30] sm:$0xff] %vm439_vm1, %v4522_v0  ;;  %461 = vst.msk [vmem:[#allocation4 + $0x68] sm:$0xff] %vm439_vm1, %v4522_v0 }
 0x12a   : > { %466 = vst.msk [vmem:[#allocation5 + $0x8] sm:$0xf] %vm465_vm4, %v4522_v0 }
 0x12b PF: > { %v4899_v1 = vld [vmem:[#allocation18] sm:$0x3f]  ;;  %v4905_v4 = vld [vmem:[#allocation12] sm:$0xff]  ;;  %v4909_v6 = vld [vmem:[#allocation12 + $0x10] sm:$0xff]  ;;  %s4927_s25 = smov 0  }
 0x12c   : > { %7804 = vst [vmem:[#allocation28_spill] sm:$0xff] %v4899_v1  ;;  %v4901_v2 = vld [vmem:[#allocation9] sm:$0xf]  ;;  %v4903_v3 = vld [vmem:[#allocation9 + $0x4] sm:$0xf]  ;;  %7807 = vst [vmem:[#allocation31_spill] sm:$0xff] %v4905_v4 }
 0x12d   : > { %7805 = vst [vmem:[#allocation29_spill] sm:$0xff] %v4901_v2  ;;  %7806 = vst [vmem:[#allocation30_spill] sm:$0xff] %v4903_v3  ;;  %v4907_v5 = vld [vmem:[#allocation12 + $0x8] sm:$0xff]  ;;  %v4911_v7 = vld [vmem:[#allocation12 + $0x18] sm:$0xff] }
 0x12e   : > { %7808 = vst [vmem:[#allocation32_spill] sm:$0xff] %v4907_v5  ;;  %7809 = vst [vmem:[#allocation33_spill] sm:$0xff] %v4909_v6  ;;  %v4913_v8 = vld [vmem:[#allocation15] sm:$0xff]  ;;  %v4915_v9 = vld [vmem:[#allocation15 + $0x8] sm:$0xff] }
 0x12f   : > { %7810 = vst [vmem:[#allocation34_spill] sm:$0xff] %v4911_v7  ;;  %7811 = vst [vmem:[#allocation35_spill] sm:$0xff] %v4913_v8  ;;  %v4917_v10 = vld [vmem:[#allocation11] sm:$0xff]  ;;  %v4919_v11 = vld [vmem:[#allocation11 + $0x8] sm:$0xff] }
 0x130   : > { %7812 = vst [vmem:[#allocation36_spill] sm:$0xff] %v4915_v9  ;;  %7813 = vst [vmem:[#allocation37_spill] sm:$0xff] %v4917_v10  ;;  %v4921_v12 = vld [vmem:[#allocation14] sm:$0xff]  ;;  %v4923_v13 = vld [vmem:[#allocation14 + $0x8] sm:$0xff] }
 0x131   : > { %7814 = vst [vmem:[#allocation38_spill] sm:$0xff] %v4919_v11  ;;  %7815 = vst [vmem:[#allocation39_spill] sm:$0xff] %v4921_v12  ;;  %v4925_v14 = vld [vmem:[#allocation17] sm:$0xff] }
 0x132   : > { %7816 = vst [vmem:[#allocation40_spill] sm:$0xff] %v4923_v13  ;;  %7817 = vst [vmem:[#allocation41_spill] sm:$0xff] %v4925_v14 }
 0x133 LB: >> { %v7819_v4 = vld [vmem:[#allocation31_spill] sm:$0xff]  ;;  %v7820_v1 = vld [vmem:[#allocation28_spill] sm:$0xff]  ;;  %s7821_s21 = sld [smem:[#allocation27_spill]]  ;;  %v520_v15 = vlaneseq  ;;  %v4523_v16 = vmov 1983009808   ;;  %s3953_s16 = smul.u32 14, %s4504_s25  ;;  %s4504_s25 = sphi %s4927_s25, %s486_s25  }
 0x134   : >> { %v518_v17 = vunpack.c.l.s4 %v4523_v16  ;;  %vm531_vm5 = vcmask 254976   ;;  %s7747_s10 = smov 127   ;;  %s7749_s24 = smov 126   ;;  %vm577_vm6 = vcmask 1039360   ;;  %vm601_vm7 = vcmask 1031168   ;;  %v7825_v3 = vld [vmem:[#allocation30_spill] sm:$0xff] }
 0x135   : >> { %v7818_v6 = vld [vmem:[#allocation33_spill] sm:$0xff]  ;;  %v4933_v18 = vshrl.u32 %v520_v15, 7  ;;  %s7717_s26 = smov 125   ;;  %s7711_s1 = smov 108   ;;  %vm625_vm8 = vcmask 1022976   ;;  %vm7758_vm9 = vcmask 1041408  }
 0x136   : >> { %v519_v19 = vunpack.c.0.s8 %v518_v17  ;;  %s7709_s2 = smov 109   ;;  %s7719_s18 = smov 107   ;;  %vm7755_vm10 = vcmask 1043456   ;;  %vm884_vm11 = vcmask 1045504   ;;  %vm7729_vm12 = vcmask 891904   ;;  %v7826_v2 = vld [vmem:[#allocation29_spill] sm:$0xff] }
 0x137   : >> { %s7715_s14 = smov 106   ;;  %s7713_s20 = smov 105   ;;  %vm7731_vm13 = vcmask 875520   ;;  %vm7732_vm14 = vcmask 883712   ;;  %vm7730_vm15 = vcmask 867328   ;;  %vm7728_vm0 = vcmask 859136  }
 0x138   : >> { %v4937_v22 = vsub.s32 %v519_v19, %v4933_v18  ;;  %s7751_s12 = smov 124   ;;  %vm643_vm1 = vcmask 1014784   ;;  %vm733_vm2 = vcmask 850944   ;;  %vm751_vm3 = vcmask 719872   ;;  %v7823_v10 = vld [vmem:[#allocation37_spill] sm:$0xff]  ;;  %v7824_v11 = vld [vmem:[#allocation38_spill] sm:$0xff] }
 0x139   : >> { %s489_s23 = scalar_lea.vmem %s7821_s21, %s3953_s16  ;;  %s7756_s16 = smov 104   ;;  %vm769_vm4 = vcmask 711680  }
 0x13a   : >> { %v490_v20 = vld [vmem:[%s489_s23] sm:$0xff]  ;;  %v491_v21 = vld [vmem:[%s489_s23 + $0x8] sm:$0x3f]  ;;  %7822 = vst [vmem:[#allocation42_spill] sm:$0xff] %v4937_v22  ;;  %s7753_s23 = smov 88   ;;  %s7836_s0 = smov 85  }
 0x13b   : >> { %3922 = vst.sshfl [vmem:[#allocation2] sm:$0xf pattern:$0x76325410] %v490_v20  ;;  %v494_v23 = vcombine.high %v490_v20, %v490_v20  ;;  %v509_v24 = vcombine.high %v491_v21, %v491_v21  ;;  %s7837_s3 = smov 84   ;;  %s7838_s4 = smov 68  }
 0x13c   : >> { %3924 = vst.sshfl [vmem:[#allocation2 + $0x10] sm:$0xf pattern:$0x76325410] %v491_v21  ;;  %s7842_s5 = smov 124   ;;  %s7843_s6 = smov 104  }
 0x13d   : >> { %3923 = vst.sshfl [vmem:[#allocation2 + $0x8] sm:$0xf pattern:$0x76325410] %v494_v23  ;;  %v523_v25 = vrot.slane %v509_v24, %v4937_v22  ;;  %s7844_s7 = smov 88   ;;  %s7877_s21 = smov 42  }
 0x13f   : >> { %532 = vst.msk [vmem:[#allocation2 + $0x18] sm:$0x3] %vm531_vm5, %v523_v25  ;;  %vm787_vm5 = vcmask 703488  }
 0x142   : >> { %v533_v26 = vld [vmem:[#allocation2] sm:$0xff] }
 0x143   : >> { %v4940_v27 = vpack.c.bf16 %v533_v26, %v533_v26  ;;  %v540_v28 = vcombine.high %v533_v26, %v533_v26  ;;  %v535_v46 = vld [vmem:[#allocation2 + $0x10] sm:$0xff] }
 0x144   : >> { %v534_v29 = vld [vmem:[#allocation2 + $0x8] sm:$0xff]  ;;  %v542_v47 = vcombine.high %v535_v46, %v535_v46  ;;  %v5046_v49 = vpack.c.bf16 %v535_v46, %v535_v46 }
 0x145   : >> { %v4943_v30 = vrot.slane %v4940_v27, 6  ;;  %v4945_v31 = vpack.c.bf16 %v540_v28, %v540_v28  ;;  %v4947_v32 = vpack.c.bf16 %v534_v29, %v534_v29  ;;  %v4955_v34 = vrot.slane %v4940_v27, 4 }
 0x146   : >> { %v4965_v36 = vrot.slane %v4940_v27, 2  ;;  %v541_v38 = vcombine.high %v534_v29, %v534_v29  ;;  %v5042_v48 = vpack.c.bf16 %v542_v47, %v542_v47  ;;  %v5056_v51 = vrot.slane %v5046_v49, 6  ;;  %v536_v52 = vld [vmem:[#allocation2 + $0x18] sm:$0xf] }
 0x147   : >> { %565 = vrot.lane.b32.xlu1 %v4943_v30, %s7747_s10  ;;  %v4952_v33 = vrot.slane %v4945_v31, 6  ;;  %v4960_v35 = vrot.slane %v4947_v32, 6  ;;  %v4970_v37 = vrot.slane %v4945_v31, 4  ;;  %v4975_v39 = vrot.slane %v4947_v32, 4 }
 0x148   : >> { %v4980_v40 = vrot.slane %v4945_v31, 2  ;;  %v4982_v41 = vpack.c.bf16 %v541_v38, %v541_v38  ;;  %v4987_v42 = vrot.slane %v4947_v32, 2  ;;  %v5051_v50 = vrot.slane %v5042_v48, 6 }
 0x149   : >> { %567 = vrot.lane.b32.xlu0 %v4952_v33, %s7747_s10  ;;  %v5061_v53 = vrot.slane %v5042_v48, 4  ;;  %v5066_v54 = vrot.slane %v5046_v49, 4  ;;  %v5068_v55 = vpack.c.bf16 %v536_v52, %v536_v52  ;;  %v5073_v56 = vrot.slane %v5046_v49, 2 }
 0x14a   : >> { %v4992_v43 = vrot.slane %v4982_v41, 4  ;;  %v4997_v44 = vrot.slane %v4982_v41, 6  ;;  %v5002_v45 = vrot.slane %v4982_v41, 2  ;;  %v5083_v59 = vrot.slane %v5042_v48, 2 }
 0x14b   : >> { %589 = vrot.lane.b32.xlu1 %v4955_v34, %s7749_s24  ;;  %v1047_v57 = vrot.slane %v5068_v55, 6  ;;  %v1051_v58 = vrot.slane %v5068_v55, 4  ;;  %v5089_v60 = vrot.slane %v5068_v55, 2 }
 0x14d   : >> { %569 = vrot.lane.b32.xlu0 %v4960_v35, %s7747_s10 }
 0x14f   : >> { %613 = vrot.lane.b32.xlu1 %v4965_v36, %s7717_s26 }
 0x151   : >> { %591 = vrot.lane.b32.xlu0 %v4970_v37, %s7749_s24 }
 0x153   : >> { %593 = vrot.lane.b32.xlu1 %v4975_v39, %s7749_s24 }
 0x155   : >> { %615 = vrot.lane.b32.xlu0 %v4980_v40, %s7717_s26 }
 0x157   : >> { %617 = vrot.lane.b32.xlu1 %v4987_v42, %s7717_s26 }
 0x159   : >> { %595 = vrot.lane.b32.xlu0 %v4992_v43, %s7749_s24 }
 0x15b   : >> { %571 = vrot.lane.b32.xlu1 %v4997_v44, %s7747_s10 }
 0x15d   : >> { %619 = vrot.lane.b32.xlu0 %v5002_v45, %s7717_s26 }
 0x15f   : >> { %653 = vrot.lane.b32.xlu1 %v4960_v35, %s7711_s1 }
 0x161   : >> { %651 = vrot.lane.b32.xlu0 %v4952_v33, %s7711_s1 }
 0x163   : >> { %1060 = vrot.lane.b32.xlu1 %v4945_v31, %s7709_s2 }
 0x165   : >> { %655 = vrot.lane.b32.xlu0 %v4997_v44, %s7711_s1 }
 0x167   : >> { %1064 = vrot.lane.b32.xlu1 %v4982_v41, %s7709_s2 }
 0x169   : >> { %1062 = vrot.lane.b32.xlu0 %v4947_v32, %s7709_s2 }
 0x16b   : >> { %669 = vrot.lane.b32.xlu1 %v4970_v37, %s7719_s18 }
 0x16d   : >> { %649 = vrot.lane.b32.xlu0 %v4943_v30, %s7711_s1 }
 0x16f   : >> { %673 = vrot.lane.b32.xlu1 %v4992_v43, %s7719_s18 }
 0x171   : >> { %671 = vrot.lane.b32.xlu0 %v4975_v39, %s7719_s18 }
 0x173   : >> { %667 = vrot.lane.b32.xlu1 %v4955_v34, %s7719_s18 }
 0x175   : >> { %1058 = vrot.lane.b32.xlu0 %v4940_v27, %s7709_s2 }
 0x177   : >> { %689 = vrot.lane.b32.xlu1 %v4987_v42, %s7715_s14 }
 0x179   : >> { %687 = vrot.lane.b32.xlu0 %v4980_v40, %s7715_s14 }
 0x17b   : >> { %685 = vrot.lane.b32.xlu1 %v4965_v36, %s7715_s14 }
 0x17d   : >> { %691 = vrot.lane.b32.xlu0 %v5002_v45, %s7715_s14 }
 0x17f   : >> { %705 = vrot.lane.b32.xlu1 %v4945_v31, %s7713_s20 }
 0x181   : >> { %703 = vrot.lane.b32.xlu0 %v4940_v27, %s7713_s20 }
 0x183   : >> { %709 = vrot.lane.b32.xlu1 %v4982_v41, %s7713_s20 }
 0x185   : >> { %707 = vrot.lane.b32.xlu0 %v4947_v32, %s7713_s20 }
 0x187   : >> { %575 = vrot.lane.b32.xlu1 %v5051_v50, %s7747_s10 }
 0x189   : >> { %573 = vrot.lane.b32.xlu0 %v5056_v51, %s7747_s10 }
 0x18b   : >> { %599 = vrot.lane.b32.xlu1 %v5061_v53, %s7749_s24 }
 0x18d   : >> { %597 = vrot.lane.b32.xlu0 %v5066_v54, %s7749_s24 }
 0x18f   : >> { %621 = vrot.lane.b32.xlu1 %v5073_v56, %s7717_s26 }
 0x191   : >> { %1048 = vrot.lane.b32.xlu0 %v1047_v57, %s7747_s10 }
 0x193   : >> { %1052 = vrot.lane.b32.xlu1 %v1051_v58, %s7749_s24 }
 0x195   : >> { %623 = vrot.lane.b32.xlu0 %v5083_v59, %s7717_s26 }
 0x197   : >> { %657 = vrot.lane.b32.xlu1 %v5056_v51, %s7711_s1 }
 0x199   : >> { %1055 = vrot.lane.b32.xlu0 %v5089_v60, %s7717_s26  ;;  %s7735_s26 = smov 68  }
 0x19b   : >> { %1066 = vrot.lane.b32.xlu1 %v5046_v49, %s7709_s2 }
 0x19d   : >> { %659 = vrot.lane.b32.xlu0 %v5051_v50, %s7711_s1 }
 0x19f   : >> { %675 = vrot.lane.b32.xlu1 %v5066_v54, %s7719_s18 }
 0x1a1   : >> { %1068 = vrot.lane.b32.xlu0 %v5042_v48, %s7709_s2 }
 0x1a3   : >> { %1070 = vrot.lane.b32.xlu1 %v5068_v55, %s7709_s2  ;;  %s7745_s2 = smov 87  }
 0x1a5   : >> { %677 = vrot.lane.b32.xlu0 %v5061_v53, %s7719_s18 }
 0x1a7   : >> { %693 = vrot.lane.b32.xlu1 %v5073_v56, %s7715_s14 }
 0x1a9   : >> { %1079 = vrot.lane.b32.xlu0 %v1047_v57, %s7711_s1  ;;  %s7743_s1 = smov 86  }
 0x1ab   : >> { %1082 = vrot.lane.b32.xlu1 %v1051_v58, %s7719_s18  ;;  %s7733_s18 = smov 67  }
 0x1ad   : >> { %695 = vrot.lane.b32.xlu0 %v5083_v59, %s7715_s14 }
 0x1af   : >> { %711 = vrot.lane.b32.xlu1 %v5046_v49, %s7713_s20 }
 0x1b1   : >> { %1085 = vrot.lane.b32.xlu0 %v5089_v60, %s7715_s14  ;;  %s7739_s14 = smov 84  }
 0x1b3   : >> { %1088 = vrot.lane.b32.xlu1 %v5068_v55, %s7713_s20 }
 0x1b5   : >> { %713 = vrot.lane.b32.xlu0 %v5042_v48, %s7713_s20  ;;  %s7741_s20 = smov 85  }
 0x1b7   : >> { %635 = vrot.lane.b32.xlu1 %v4947_v32, %s7751_s12 }
 0x1b9   : >> { %v566_v61 = vpop.permute.xlu1 %565  ;;  %633 = vrot.lane.b32.xlu0 %v4945_v31, %s7751_s12 }
 0x1bb   : >> { %v568_v62 = vpop.permute.xlu0 %567  ;;  %723 = vrot.lane.b32.xlu1 %v4952_v33, %s7756_s16 }
 0x1bc   : >> { %v578_v20 = vsel %vm577_vm6, %v566_v61, %v568_v62 }
 0x1bd   : >> { %v590_v63 = vpop.permute.xlu1 %589  ;;  %631 = vrot.lane.b32.xlu0 %v4940_v27, %s7751_s12  ;;  %v855_v46 = vsel %vm7758_vm9, %v4940_v27, %v578_v20 }
 0x1bf   : >> { %v570_v0 = vpop.permute.xlu0 %569  ;;  %721 = vrot.lane.b32.xlu1 %v4943_v30, %s7756_s16 }
 0x1c0   : >> { %v579_v19 = vsel %vm577_vm6, %v568_v62, %v570_v0 }
 0x1c1   : >> { %v614_v15 = vpop.permute.xlu1 %613  ;;  %725 = vrot.lane.b32.xlu0 %v4960_v35, %s7756_s16  ;;  %v858_v26 = vsel %vm7758_vm9, %v4945_v31, %v579_v19 }
 0x1c3   : >> { %v592_v16 = vpop.permute.xlu0 %591  ;;  %743 = vrot.lane.b32.xlu1 %v4975_v39, %s7753_s23 }
 0x1c4   : >> { %v602_v24 = vsel %vm601_vm7, %v590_v63, %v592_v16 }
 0x1c5   : >> { %v594_v17 = vpop.permute.xlu1 %593  ;;  %741 = vrot.lane.b32.xlu0 %v4970_v37, %s7753_s23  ;;  %v873_v57 = vsel %vm7755_vm10, %v855_v46, %v602_v24 }
 0x1c6   : >> { %v603_v21 = vsel %vm601_vm7, %v592_v16, %v594_v17 }
 0x1c7   : >> { %v616_v23 = vpop.permute.xlu0 %615  ;;  %759 = vrot.lane.b32.xlu1 %v4980_v40, %s7745_s2  ;;  %v875_v38 = vsel %vm7755_vm10, %v858_v26, %v603_v21 }
 0x1c8   : >> { %v626_v28 = vsel %vm625_vm8, %v614_v15, %v616_v23 }
 0x1c9   : >> { %v618_v25 = vpop.permute.xlu1 %617  ;;  %739 = vrot.lane.b32.xlu0 %v4955_v34, %s7753_s23  ;;  %v886_v58 = vsel %vm884_vm11, %v873_v57, %v626_v28 }
 0x1ca   : >> { %v627_v29 = vsel %vm625_vm8, %v616_v23, %v618_v25 }
 0x1cb   : >> { %v5152_v47 = vpop.permute.xlu0 %595  ;;  %757 = vrot.lane.b32.xlu1 %v4965_v36, %s7745_s2  ;;  %v889_v52 = vsel %vm884_vm11, %v875_v38, %v627_v29 }
 0x1cc   : >> { %1262 = vmatprep.subr.bf16.mxu0 %v889_v52 }
 0x1cd   : >> { %1263 = vmatpush1.bf16.msra.mxu0 %v886_v58  ;;  %761 = vrot.lane.b32.xlu0 %v4987_v42, %s7745_s2  ;;  %v5161_v61 = vpop.permute.xlu1 %571 }
 0x1cf   : >> { %v5163_v62 = vpop.permute.xlu0 %619  ;;  %779 = vrot.lane.b32.xlu1 %v4947_v32, %s7743_s1 }
 0x1d1   : >> { %777 = vrot.lane.b32.xlu0 %v4945_v31, %s7743_s1  ;;  %v654_v63 = vpop.permute.xlu1 %653 }
 0x1d3   : >> { %v652_v15 = vpop.permute.xlu0 %651  ;;  %797 = vrot.lane.b32.xlu1 %v4960_v35, %s7741_s20  ;;  %v580_v35 = vsel %vm577_vm6, %v570_v0, %v5161_v61 }
 0x1d5   : >> { %795 = vrot.lane.b32.xlu0 %v4952_v33, %s7741_s20  ;;  %v1061_v16 = vpop.permute.xlu1 %1060 }
 0x1d7   : >> { %v5173_v19 = vpop.permute.xlu0 %655  ;;  %793 = vrot.lane.b32.xlu1 %v4943_v30, %s7741_s20 }
 0x1d9   : >> { %775 = vrot.lane.b32.xlu0 %v4940_v27, %s7743_s1  ;;  %v5179_v20 = vpop.permute.xlu1 %1064  ;;  %v861_v27 = vsel %vm7758_vm9, %v4947_v32, %v580_v35 }
 0x1db   : >> { %v1063_v31 = vpop.permute.xlu0 %1062  ;;  %815 = vrot.lane.b32.xlu1 %v4975_v39, %s7739_s14  ;;  %v604_v39 = vsel %vm601_vm7, %v594_v17, %v5152_v47 }
 0x1dc   : >> { %v1074_v23 = vsel %vm7729_vm12, %v1061_v16, %v1063_v31  ;;  %v1075_v29 = vsel %vm7729_vm12, %v1063_v31, %v5179_v20  ;;  %v5241_v31 = vsel %vm7732_vm14, %v654_v63, %v5173_v19 }
 0x1dd   : >> { %813 = vrot.lane.b32.xlu0 %v4970_v37, %s7739_s14  ;;  %v670_v33 = vpop.permute.xlu1 %669  ;;  %v628_v37 = vsel %vm625_vm8, %v618_v25, %v5163_v62 }
 0x1df   : >> { %v650_v21 = vpop.permute.xlu0 %649  ;;  %833 = vrot.lane.b32.xlu1 %v4980_v40, %s7735_s26  ;;  %v877_v40 = vsel %vm7755_vm10, %v861_v27, %v604_v39  ;;  %v1109_v27 = vsel %vm7758_vm9, %v1075_v29, %v5241_v31 }
 0x1e0   : >> { %v5223_v38 = vsel %vm7732_vm14, %v650_v21, %v652_v15 }
 0x1e1   : >> { %811 = vrot.lane.b32.xlu0 %v4955_v34, %s7739_s14  ;;  %v5193_v30 = vpop.permute.xlu1 %673  ;;  %v5205_v34 = vsel %vm884_vm11, %v877_v40, %v628_v37 }
 0x1e3   : >> { %v672_v0 = vpop.permute.xlu0 %671  ;;  %831 = vrot.lane.b32.xlu1 %v4965_v36, %s7735_s26 }
 0x1e4   : >> { %v5211_v36 = vsel %vm7731_vm13, %v670_v33, %v672_v0  ;;  %v5232_v57 = vsel %vm7731_vm13, %v672_v0, %v5193_v30 }
 0x1e5   : >> { %835 = vrot.lane.b32.xlu0 %v4987_v42, %s7735_s26  ;;  %v668_v32 = vpop.permute.xlu1 %667  ;;  %v5215_v42 = vsel %vm7732_vm14, %v652_v15, %v654_v63  ;;  %v1122_v63 = vsel %vm7755_vm10, %v1109_v27, %v5232_v57 }
 0x1e6   : >> { %v1107_v26 = vsel %vm7758_vm9, %v1074_v23, %v5215_v42  ;;  %v5250_v39 = vsel %vm7731_vm13, %v668_v32, %v670_v33  ;;  %v7721_v32 = vmov 0  }
 0x1e7   : >> { %v1059_v17 = vpop.permute.xlu0 %1058  ;;  %1156 = vrot.lane.b32.xlu1 %v5205_v34, %s7733_s18  ;;  %1294 = vmatprep.mubr.bf16.mxu0 %v7721_v32 }
 0x1e8   : >> { %v1073_v25 = vsel %vm7729_vm12, %v1059_v17, %v1061_v16  ;;  %1337 = vmatprep.mubr.bf16.mxu1 %v7721_v32  ;;  %4158 = vset.pattern.permute.xlu0 %v7721_v32 }
 0x1e9   : >> { %1154 = vrot.lane.b32.xlu0 %v889_v52, %s7733_s18  ;;  %v690_v24 = vpop.permute.xlu1 %689  ;;  %v1121_v52 = vsel %vm7755_vm10, %v1107_v26, %v5211_v36  ;;  %v1105_v16 = vsel %vm7758_vm9, %v1073_v25, %v5223_v38  ;;  %4159 = vset.pattern.permute.xlu1 %v7721_v32 }
 0x1ea   : >> { %v1120_v0 = vsel %vm7755_vm10, %v1105_v16, %v5250_v39 }
 0x1eb   : >> { %v688_v28 = vpop.permute.xlu0 %687 }
 0x1ec   : >> { %v5226_v46 = vsel %vm7730_vm15, %v688_v28, %v690_v24 }
 0x1ed   : >> { %1152 = vrot.lane.b32.xlu0 %v886_v58, %s7733_s18  ;;  %v686_v35 = vpop.permute.xlu1 %685  ;;  %v1130_v15 = vsel %vm884_vm11, %v1121_v52, %v5226_v46 }
 0x1ee   : >> { %v5244_v21 = vsel %vm7730_vm15, %v686_v35, %v688_v28  ;;  %1168 = vrot.lane.b32.xlu1 %v1130_v15, %s7733_s18 }
 0x1ef   : >> { %v5252_v58 = vpop.permute.xlu0 %691  ;;  %v1129_v33 = vsel %vm884_vm11, %v1120_v0, %v5244_v21 }
 0x1f0   : >> { %v5256_v37 = vsel %vm7730_vm15, %v690_v24, %v5252_v58 }
 0x1f1   : >> { %v706_v40 = vpop.permute.xlu1 %705  ;;  %v1131_v17 = vsel %vm884_vm11, %v1122_v63, %v5256_v37 }
 0x1f2   : >> { %1170 = vrot.lane.b32.xlu0 %v1131_v17, %s7733_s18  ;;  %1166 = vrot.lane.b32.xlu1 %v1129_v33, %s7733_s18 }
 0x1f3   : >> { %v704_v23 = vpop.permute.xlu0 %703 }
 0x1f4   : >> { %v5273_v24 = vsel %vm7728_vm0, %v704_v23, %v706_v40 }
 0x1f5   : >> { %v5275_v25 = vpop.permute.xlu1 %709 }
 0x1f6   : >> { %1180 = vrot.lane.b32.xlu0 %v5273_v24, %s7733_s18 }
 0x1f7   : >> { %v708_v26 = vpop.permute.xlu0 %707 }
 0x1f8   : >> { %v5280_v28 = vsel %vm7728_vm0, %v706_v40, %v708_v26  ;;  %v5284_v29 = vsel %vm7728_vm0, %v708_v26, %v5275_v25 }
 0x1f9   : >> { %1182 = vrot.lane.b32.xlu1 %v5280_v28, %s7733_s18  ;;  %v5288_v52 = vpop.permute.xlu1 %575 }
 0x1fa   : >> { %1184 = vrot.lane.b32.xlu0 %v5284_v29, %s7733_s18 }
 0x1fb   : >> { %v574_v16 = vpop.permute.xlu0 %573 }
 0x1fc   : >> { %v581_v35 = vsel %vm577_vm6, %v5161_v61, %v574_v16  ;;  %v582_v8 = vsel %vm577_vm6, %v574_v16, %v5288_v52 }
 0x1fd   : >> { %637 = vrot.lane.b32.xlu1 %v4982_v41, %s7751_s12  ;;  %v5296_v15 = vpop.permute.xlu1 %599  ;;  %v864_v0 = vsel %vm7758_vm9, %v4982_v41, %v581_v35 }
 0x1fe   : >> { %639 = vrot.lane.b32.xlu0 %v5046_v49, %s7751_s12 }
 0x1ff   : >> { %v598_v27 = vpop.permute.xlu0 %597 }
 0x200   : >> { %v605_v63 = vsel %vm601_vm7, %v5152_v47, %v598_v27  ;;  %v606_v13 = vsel %vm601_vm7, %v598_v27, %v5296_v15 }
 0x201   : >> { %641 = vrot.lane.b32.xlu1 %v5042_v48, %s7751_s12  ;;  %v622_v40 = vpop.permute.xlu1 %621  ;;  %v879_v61 = vsel %vm7755_vm10, %v864_v0, %v605_v63 }
 0x202   : >> { %727 = vrot.lane.b32.xlu0 %v4997_v44, %s7756_s16  ;;  %v629_v17 = vsel %vm625_vm8, %v5163_v62, %v622_v40 }
 0x203   : >> { %v1049_v33 = vpop.permute.xlu0 %1048  ;;  %v895_v23 = vsel %vm884_vm11, %v879_v61, %v629_v17 }
 0x204   : >> { %1305 = vmatprep.subr.bf16.mxu1 %v895_v23  ;;  %v1095_v27 = vsel %vm7758_vm9, %v5068_v55, %v1049_v33 }
 0x205   : >> { %729 = vrot.lane.b32.xlu1 %v5056_v51, %s7756_s16  ;;  %1306 = vmatpush1.bf16.msra.mxu1 %v5205_v34  ;;  %v5315_v47 = vpop.permute.xlu1 %1052 }
 0x206   : >> { %745 = vrot.lane.b32.xlu0 %v4992_v43, %s7753_s23  ;;  %v1054_v5 = vsel %vm601_vm7, %v5296_v15, %v5315_v47 }
 0x207   : >> { %v5319_v26 = vpop.permute.xlu0 %623 }
 0x209   : >> { %747 = vrot.lane.b32.xlu1 %v5066_v54, %s7753_s23  ;;  %v5323_v62 = vpop.permute.xlu1 %657 }
 0x20a   : >> { %731 = vrot.lane.b32.xlu0 %v5051_v50, %s7756_s16 }
 0x20b   : >> { %v5327_v35 = vpop.permute.xlu0 %1055 }
 0x20d   : >> { %763 = vrot.lane.b32.xlu1 %v5002_v45, %s7745_s2  ;;  %v5331_v34 = vpop.permute.xlu1 %1066 }
 0x20e   : >> { %765 = vrot.lane.b32.xlu0 %v5073_v56, %s7745_s2 }
 0x20f   : >> { %v5335_v63 = vpop.permute.xlu0 %659 }
 0x211   : >> { %749 = vrot.lane.b32.xlu1 %v5061_v53, %s7753_s23  ;;  %v5339_v0 = vpop.permute.xlu1 %675 }
 0x212   : >> { %767 = vrot.lane.b32.xlu0 %v5083_v59, %s7745_s2  ;;  %s7833_s2 = smov 109  }
 0x213   : >> { %v5343_v61 = vpop.permute.xlu0 %1068 }
 0x215   : >> { %781 = vrot.lane.b32.xlu1 %v4982_v41, %s7743_s1  ;;  %v5347_v17 = vpop.permute.xlu1 %1070 }
 0x216   : >> { %783 = vrot.lane.b32.xlu0 %v5046_v49, %s7743_s1 }
 0x217   : >> { %v5351_v32 = vpop.permute.xlu0 %677 }
 0x219   : >> { %799 = vrot.lane.b32.xlu1 %v4997_v44, %s7741_s20  ;;  %v5355_v22 = vpop.permute.xlu1 %693 }
 0x21a   : >> { %801 = vrot.lane.b32.xlu0 %v5056_v51, %s7741_s20 }
 0x21b   : >> { %v5359_v14 = vpop.permute.xlu0 %1079 }
 0x21d   : >> { %817 = vrot.lane.b32.xlu1 %v4992_v43, %s7739_s14  ;;  %v5363_v41 = vpop.permute.xlu1 %1082 }
 0x21e   : >> { %819 = vrot.lane.b32.xlu0 %v5066_v54, %s7739_s14 }
 0x21f   : >> { %v5367_v9 = vpop.permute.xlu0 %695 }
 0x221   : >> { %785 = vrot.lane.b32.xlu1 %v5042_v48, %s7743_s1  ;;  %v5371_v44 = vpop.permute.xlu1 %711  ;;  %s7832_s1 = smov 108  }
 0x222   : >> { %803 = vrot.lane.b32.xlu0 %v5051_v50, %s7741_s20  ;;  %v1050_v50 = vsel %vm577_vm6, %v5288_v52, %v1049_v33  ;;  %s7831_s20 = smov 105  }
 0x223   : >> { %v5375_v51 = vpop.permute.xlu0 %1085 }
 0x225   : >> { %837 = vrot.lane.b32.xlu1 %v5002_v45, %s7735_s26  ;;  %v5379_v43 = vpop.permute.xlu1 %1088 }
 0x226   : >> { %839 = vrot.lane.b32.xlu0 %v5073_v56, %s7735_s26  ;;  %v867_v56 = vsel %vm7758_vm9, %v5046_v49, %v582_v8  ;;  %v630_v49 = vsel %vm625_vm8, %v622_v40, %v5319_v26  ;;  %v1076_v40 = vsel %vm7729_vm12, %v5179_v20, %v5331_v34 }
 0x227   : >> { %v5383_v54 = vpop.permute.xlu0 %713 }
 0x229   : >> { %821 = vrot.lane.b32.xlu1 %v5061_v53, %s7739_s14  ;;  %v5389_v12 = vpop.permute.xlu1 %635  ;;  %v1092_v53 = vsel %vm7758_vm9, %v5042_v48, %v1050_v50  ;;  %v1057_v50 = vsel %vm625_vm8, %v5319_v26, %v5327_v35  ;;  %s7830_s14 = smov 106  }
 0x22a   : >> { %841 = vrot.lane.b32.xlu0 %v5083_v59, %s7735_s26 }
 0x22b   : >> { %v634_v45 = vpop.permute.xlu0 %633 }
 0x22c   : >> { %v645_v16 = vsel %vm643_vm1, %v634_v45, %v5389_v12 }
 0x22d   : >> { %v908_v59 = vsel %vm7758_vm9, %v645_v16, %v5215_v42  ;;  %843 = vrot.lane.b32.xlu1 %v5089_v60, %s7735_s26  ;;  %v724_v8 = vpop.permute.xlu1 %723  ;;  %v881_v16 = vsel %vm7755_vm10, %v867_v56, %v606_v13  ;;  %s7828_s26 = smov 107  }
 0x22e   : >> { %1158 = vrot.lane.b32.xlu0 %v895_v23, %s7733_s18  ;;  %v924_v7 = vsel %vm7755_vm10, %v908_v59, %v5211_v36  ;;  %v5428_v33 = vsel %vm884_vm11, %v881_v16, %v630_v49  ;;  %v1097_v23 = vsel %vm7755_vm10, %v1092_v53, %v1054_v5  ;;  %v1099_v36 = vsel %vm7755_vm10, %v1095_v27, %v5315_v47 }
 0x22f   : >> { %v632_v42 = vpop.permute.xlu0 %631  ;;  %v937_v60 = vsel %vm884_vm11, %v924_v7, %v5226_v46  ;;  %v5436_v7 = vsel %vm7731_vm13, %v5193_v30, %v5339_v0  ;;  %v1101_v46 = vsel %vm884_vm11, %v1097_v23, %v1057_v50  ;;  %v5446_v5 = vsel %vm7732_vm14, %v5173_v19, %v5323_v62 }
 0x230   : >> { %v644_v55 = vsel %vm643_vm1, %v632_v42, %v634_v45  ;;  %1264 = vmatprep.subr.bf16.mxu0 %v937_v60  ;;  %v5451_v47 = vsel %vm7730_vm15, %v5252_v58, %v5355_v22  ;;  %v1081_v30 = vsel %vm7732_vm14, %v5335_v63, %v5359_v14  ;;  %v1111_v45 = vsel %vm7758_vm9, %v1076_v40, %v5446_v5 }
 0x231   : >> { %v905_v13 = vsel %vm7758_vm9, %v644_v55, %v5223_v38  ;;  %1160 = vrot.lane.b32.xlu1 %v5428_v33, %s7733_s18  ;;  %v722_v20 = vpop.permute.xlu1 %721  ;;  %v1077_v19 = vsel %vm7729_vm12, %v5331_v34, %v5343_v61  ;;  %v1103_v53 = vsel %vm884_vm11, %v1099_v36, %v5327_v35  ;;  %v5473_v59 = vsel %vm7732_vm14, %v5323_v62, %v5335_v63 }
 0x232   : >> { %1162 = vrot.lane.b32.xlu0 %v1101_v46, %s7733_s18  ;;  %v922_v38 = vsel %vm7755_vm10, %v905_v13, %v5250_v39  ;;  %v1078_v39 = vsel %vm7729_vm12, %v5343_v61, %v5347_v17  ;;  %v5481_v34 = vsel %vm7731_vm13, %v5339_v0, %v5351_v32  ;;  %v1084_v62 = vsel %vm7731_vm13, %v5351_v32, %v5363_v41 }
 0x233   : >> { %v5464_v56 = vpop.permute.xlu0 %725  ;;  %v934_v58 = vsel %vm884_vm11, %v922_v38, %v5244_v21  ;;  %v1123_v21 = vsel %vm7755_vm10, %v1111_v45, %v5436_v7  ;;  %v1116_v35 = vsel %vm7758_vm9, %v1078_v39, %v1081_v30  ;;  %v5497_v0 = vsel %vm7730_vm15, %v5355_v22, %v5367_v9 }
 0x234   : >> { %1265 = vmatpush1.bf16.msra.mxu0 %v934_v58  ;;  %v1132_v61 = vsel %vm884_vm11, %v1123_v21, %v5451_v47  ;;  %v1113_v27 = vsel %vm7758_vm9, %v1077_v19, %v5473_v59  ;;  %v1087_v50 = vsel %vm7730_vm15, %v5367_v9, %v5375_v51  ;;  %v1119_v16 = vsel %vm7758_vm9, %v5347_v17, %v5359_v14 }
 0x235   : >> { %1164 = vrot.lane.b32.xlu1 %v1103_v53, %s7733_s18  ;;  %v5490_v49 = vpop.permute.xlu1 %743  ;;  %v1124_v60 = vsel %vm7755_vm10, %v1113_v27, %v5481_v34  ;;  %v1126_v40 = vsel %vm7755_vm10, %v1116_v35, %v1084_v62  ;;  %v1128_v36 = vsel %vm7755_vm10, %v1119_v16, %v5363_v41  ;;  %v734_v13 = vsel %vm733_vm2, %v722_v20, %v724_v8 }
 0x236   : >> { %1172 = vrot.lane.b32.xlu0 %v1132_v61, %s7733_s18  ;;  %v1133_v22 = vsel %vm884_vm11, %v1124_v60, %v5497_v0  ;;  %v1135_v23 = vsel %vm884_vm11, %v1126_v40, %v1087_v50  ;;  %v735_v17 = vsel %vm733_vm2, %v724_v8, %v5464_v56  ;;  %v1137_v30 = vsel %vm884_vm11, %v1128_v36, %v5375_v51 }
 0x237   : >> { %v742_v42 = vpop.permute.xlu0 %741  ;;  %v5530_v41 = vsel %vm7728_vm0, %v5275_v25, %v5371_v44  ;;  %v953_v8 = vsel %vm7758_vm9, %v5273_v24, %v734_v13  ;;  %v956_v51 = vsel %vm7758_vm9, %v5280_v28, %v735_v17  ;;  %v5547_v25 = vsel %vm7728_vm0, %v5371_v44, %v5383_v54 }
 0x238   : >> { %v753_v38 = vsel %vm751_vm3, %v742_v42, %v5490_v49  ;;  %v1090_v39 = vsel %vm7728_vm0, %v5383_v54, %v5379_v43  ;;  %vm805_vm0 = vcmask 695296   ;;  %vm823_vm12 = vcmask 687104  }
 0x239   : >> { %1174 = vrot.lane.b32.xlu1 %v1133_v22, %s7733_s18  ;;  %v760_v55 = vpop.permute.xlu1 %759  ;;  %v972_v24 = vsel %vm7755_vm10, %v956_v51, %v753_v38  ;;  %vm845_vm15 = vcmask 556032   ;;  %vm7763_vm13 = vcmask 547840   ;;  %vm1240_vm14 = vcmask 818176  }
 0x23a   : >> { %1176 = vrot.lane.b32.xlu0 %v1135_v23, %s7733_s18 }
 0x23b   : >> { %v740_v14 = vpop.permute.xlu0 %739 }
 0x23c   : >> { %v752_v46 = vsel %vm751_vm3, %v740_v14, %v742_v42 }
 0x23d   : >> { %1178 = vrot.lane.b32.xlu1 %v1137_v30, %s7733_s18  ;;  %v758_v45 = vpop.permute.xlu1 %757  ;;  %v970_v58 = vsel %vm7755_vm10, %v953_v8, %v752_v46 }
 0x23e   : >> { %1186 = vrot.lane.b32.xlu0 %v5530_v41, %s7733_s18  ;;  %v770_v20 = vsel %vm769_vm4, %v758_v45, %v760_v55 }
 0x23f   : >> { %v5539_v19 = vpop.permute.xlu0 %761  ;;  %v982_v35 = vsel %vm884_vm11, %v970_v58, %v770_v20 }
 0x240   : >> { %v771_v53 = vsel %vm769_vm4, %v760_v55, %v5539_v19 }
 0x241   : >> { %1188 = vrot.lane.b32.xlu1 %v5547_v25, %s7733_s18  ;;  %v5552_v28 = vpop.permute.xlu1 %779  ;;  %v985_v21 = vsel %vm884_vm11, %v972_v24, %v771_v53 }
 0x242   : >> { %1190 = vrot.lane.b32.xlu0 %v1090_v39, %s7733_s18  ;;  %1266 = vmatprep.subr.bf16.mxu0 %v985_v21 }
 0x243   : >> { %v778_v44 = vpop.permute.xlu0 %777  ;;  %1267 = vmatpush1.bf16.msra.mxu0 %v982_v35 }
 0x244   : >> { %v789_v55 = vsel %vm787_vm5, %v778_v44, %v5552_v28 }
 0x245   : >> { %1192 = vrot.lane.b32.xlu1 %v5379_v43, %s7733_s18  ;;  %v5562_v62 = vpop.permute.xlu1 %797  ;;  %s7737_s18 = smov 42  }
 0x246   : >> { %1227 = vperm.xlu0 %4158, %v7823_v10  }
 0x247   : >> { %v796_v61 = vpop.permute.xlu0 %795 }
 0x248   : >> { %v807_v23 = vsel %vm805_vm0, %v796_v61, %v5562_v62 }
 0x249   : >> { %v794_v27 = vpop.permute.xlu1 %793  ;;  %1232 = vperm.xlu1 %4159, %v7824_v11   ;;  %v1004_v46 = vsel %vm7758_vm9, %v789_v55, %v807_v23 }
 0x24a   : >> { %v806_v22 = vsel %vm805_vm0, %v794_v27, %v796_v61 }
 0x24b   : >> { %v776_v50 = vpop.permute.xlu0 %775 }
 0x24c   : >> { %v788_v43 = vsel %vm787_vm5, %v776_v50, %v778_v44 }
 0x24d   : >> { %v5566_v42 = vpop.permute.xlu1 %815  ;;  %v1001_v17 = vsel %vm7758_vm9, %v788_v43, %v806_v22  ;;  %v870_v22 = vsel %vm7758_vm9, %v5042_v48, %v5288_v52 }
 0x24f   : >> { %v814_v60 = vpop.permute.xlu0 %813 }
 0x250   : >> { %v825_v13 = vsel %vm823_vm12, %v814_v60, %v5566_v42 }
 0x251   : >> { %v834_v16 = vpop.permute.xlu1 %833  ;;  %v1020_v51 = vsel %vm7755_vm10, %v1004_v46, %v825_v13  ;;  %v883_v13 = vsel %vm7755_vm10, %v870_v22, %v5296_v15 }
 0x252   : >> { %v901_v52 = vsel %vm884_vm11, %v883_v13, %v5319_v26 }
 0x253   : >> { %v812_v40 = vpop.permute.xlu0 %811 }
 0x254   : >> { %v824_v36 = vsel %vm823_vm12, %v812_v40, %v814_v60 }
 0x255   : >> { %v832_v14 = vpop.permute.xlu1 %831  ;;  %v1018_v45 = vsel %vm7755_vm10, %v1001_v17, %v824_v36 }
 0x256   : >> { %v846_v30 = vsel %vm845_vm15, %v832_v14, %v834_v16  ;;  %v5612_v14 = vcombine.low %v7826_v2, %v7825_v3 }
 0x257   : >> { %v5580_v38 = vpop.permute.xlu0 %835  ;;  %v1030_v58 = vsel %vm884_vm11, %v1018_v45, %v846_v30 }
 0x258   : >> { %v847_v8 = vsel %vm845_vm15, %v834_v16, %v5580_v38 }
 0x259   : >> { %v1033_v20 = vsel %vm884_vm11, %v1020_v51, %v847_v8  ;;  %v5588_v53 = vpop.permute.xlu1 %1156  ;;  %v7827_v51 = vmov 0  }
 0x25a   : >> { %1268 = vmatprep.subr.bf16.mxu0 %v1033_v20 }
 0x25b   : >> { %v1155_v24 = vpop.permute.xlu0 %1154  ;;  %1269 = vmatpush1.bf16.msra.mxu0 %v1030_v58 }
 0x25c   : >> { %v1196_v39 = vsel %vm7763_vm13, %v1155_v24, %v5588_v53 }
 0x25d   : >> { %1270 = vmatprep.subr.bf16.mxu0 %v1196_v39 }
 0x25f   : >> { %v1153_v21 = vpop.permute.xlu0 %1152 }
 0x260   : >> { %v1169_v35 = vpop.permute.xlu1 %1168  ;;  %v1195_v44 = vsel %vm7763_vm13, %v1153_v21, %v1155_v24 }
 0x261   : >> { %1271 = vmatpush1.bf16.msra.mxu0 %v1195_v44 }
 0x264   : >> { %v5593_v61 = vpop.permute.xlu0 %1170  ;;  %v1167_v27 = vpop.permute.xlu1 %1166 }
 0x265   : >> { %v1202_v50 = vsel %vm7763_vm13, %v1169_v35, %v5593_v61  ;;  %v1201_v60 = vsel %vm7763_vm13, %v1167_v27, %v1169_v35 }
 0x266   : >> { %1272 = vmatprep.subr.bf16.mxu0 %v1202_v50 }
 0x267   : >> { %1273 = vmatpush1.bf16.msra.mxu0 %v1201_v60 }
 0x268   : >> { %v1181_v16 = vpop.permute.xlu0 %1180 }
 0x26b   : >> { %v1183_v43 = vpop.permute.xlu1 %1182 }
 0x26c   : >> { %v5601_v40 = vpop.permute.xlu0 %1184  ;;  %v1207_v55 = vsel %vm7763_vm13, %v1181_v16, %v1183_v43 }
 0x26d   : >> { %v1208_v23 = vsel %vm7763_vm13, %v1183_v43, %v5601_v40  ;;  %v1245_v36 = vsel %vm7758_vm9, %v1207_v55, 0 }
 0x26e   : >> { %3926 = vmatprep.subr.msk.bf16.mxu0 %vm7758_vm9, %v1208_v23 }
 0x26f   : >> { %1275 = vmatpush1.bf16.msra.mxu0 %v1245_v36  ;;  %v638_v48 = vpop.permute.xlu1 %637 }
 0x270   : >> { %v646_v17 = vsel %vm643_vm1, %v5389_v12, %v638_v48  ;;  %v640_v46 = vpop.permute.xlu0 %639  ;;  %1348 = vmatprep.subr.bf16.mxu0 %v901_v52 }
 0x271   : >> { %v911_v30 = vsel %vm7758_vm9, %v646_v17, %v5241_v31  ;;  %v647_v15 = vsel %vm643_vm1, %v638_v48, %v640_v46 }
 0x272   : >> { %v914_v45 = vsel %vm7758_vm9, %v647_v15, %v5446_v5  ;;  %3927 = vmatmul.mubr.msk.bf16.vlgmr.msra.gmra.mrb[0].mxu0 %vm1240_vm14, %v5612_v14  ;;  %v926_v26 = vsel %vm7755_vm10, %v911_v30, %v5232_v57 }
 0x273   : >> { %1349 = vmatpush1.bf16.msra.mxu0 %v5428_v33  ;;  %v642_v8 = vpop.permute.xlu1 %641  ;;  %v928_v12 = vsel %vm7755_vm10, %v914_v45, %v5436_v7  ;;  %1380 = vmatprep.mubr.bf16.mxu0 %v7827_v51  ;;  %v940_v33 = vsel %vm884_vm11, %v926_v26, %v5256_v37 }
 0x274   : >> { %v648_v31 = vsel %vm643_vm1, %v640_v46, %v642_v8  ;;  %v920_v20 = vsel %vm7758_vm9, %v642_v8, %v5335_v63  ;;  %v728_v5 = vpop.permute.xlu0 %727  ;;  %v943_v58 = vsel %vm884_vm11, %v928_v12, %v5451_v47 }
 0x275   : >> { %v917_v57 = vsel %vm7758_vm9, %v648_v31, %v5473_v59  ;;  %1307 = vmatprep.subr.bf16.mxu1 %v943_v58  ;;  %v932_v7 = vsel %vm7755_vm10, %v920_v20, %v5351_v32  ;;  %v736_v32 = vsel %vm733_vm2, %v5464_v56, %v728_v5 }
 0x276   : >> { %1308 = vmatpush1.bf16.msra.mxu1 %v940_v33  ;;  %v949_v24 = vsel %vm884_vm11, %v932_v7, %v5367_v9  ;;  %v930_v63 = vsel %vm7755_vm10, %v917_v57, %v5481_v34  ;;  %v959_v60 = vsel %vm7758_vm9, %v5284_v29, %v736_v32 }
 0x277   : >> { %1350 = vmatprep.subr.bf16.mxu0 %v949_v24  ;;  %v730_v39 = vpop.permute.xlu1 %729  ;;  %v946_v47 = vsel %vm884_vm11, %v930_v63, %v5497_v0 }
 0x278   : >> { %v746_v59 = vpop.permute.xlu0 %745  ;;  %1351 = vmatpush1.bf16.msra.mxu0 %v946_v47  ;;  %v737_v37 = vsel %vm733_vm2, %v728_v5, %v730_v39 }
 0x279   : >> { %v754_v9 = vsel %vm751_vm3, %v5490_v49, %v746_v59  ;;  %v962_v27 = vsel %vm7758_vm9, %v5530_v41, %v737_v37 }
 0x27a   : >> { %v974_v49 = vsel %vm7755_vm10, %v959_v60, %v754_v9 }
 0x27b   : >> { %v748_v21 = vpop.permute.xlu1 %747 }
 0x27c   : >> { %v732_v35 = vpop.permute.xlu0 %731  ;;  %v755_v44 = vsel %vm751_vm3, %v746_v59, %v748_v21 }
 0x27d   : >> { %v738_v16 = vsel %vm733_vm2, %v730_v39, %v732_v35  ;;  %v976_v22 = vsel %vm7755_vm10, %v962_v27, %v755_v44  ;;  %v968_v41 = vsel %vm7758_vm9, %v5383_v54, %v732_v35 }
 0x27e   : >> { %v965_v29 = vsel %vm7758_vm9, %v5547_v25, %v738_v16 }
 0x27f   : >> { %v764_v34 = vpop.permute.xlu1 %763 }
 0x280   : >> { %v772_v0 = vsel %vm769_vm4, %v5539_v19, %v764_v34  ;;  %v766_v50 = vpop.permute.xlu0 %765 }
 0x281   : >> { %v773_v56 = vsel %vm769_vm4, %v764_v34, %v766_v50  ;;  %v988_v19 = vsel %vm884_vm11, %v974_v49, %v772_v0 }
 0x282   : >> { %v991_v43 = vsel %vm884_vm11, %v976_v22, %v773_v56 }
 0x283   : >> { %1309 = vmatprep.subr.bf16.mxu1 %v991_v43  ;;  %v750_v55 = vpop.permute.xlu1 %749 }
 0x284   : >> { %v756_v23 = vsel %vm751_vm3, %v748_v21, %v750_v55  ;;  %v980_v36 = vsel %vm7755_vm10, %v968_v41, %v750_v55  ;;  %v768_v13 = vpop.permute.xlu0 %767  ;;  %1310 = vmatpush1.bf16.msra.mxu1 %v988_v19 }
 0x285   : >> { %v774_v48 = vsel %vm769_vm4, %v766_v50, %v768_v13  ;;  %v997_v52 = vsel %vm884_vm11, %v980_v36, %v768_v13  ;;  %v978_v17 = vsel %vm7755_vm10, %v965_v29, %v756_v23 }
 0x286   : >> { %1352 = vmatprep.subr.bf16.mxu0 %v997_v52  ;;  %v994_v54 = vsel %vm884_vm11, %v978_v17, %v774_v48 }
 0x287   : >> { %1353 = vmatpush1.bf16.msra.mxu0 %v994_v54  ;;  %v782_v46 = vpop.permute.xlu1 %781 }
 0x288   : >> { %v784_v30 = vpop.permute.xlu0 %783  ;;  %v790_v33 = vsel %vm787_vm5, %v5552_v28, %v782_v46 }
 0x289   : >> { %v791_v5 = vsel %vm787_vm5, %v782_v46, %v784_v30 }
 0x28b   : >> { %v800_v15 = vpop.permute.xlu1 %799 }
 0x28c   : >> { %v802_v25 = vpop.permute.xlu0 %801  ;;  %v808_v31 = vsel %vm805_vm0, %v5562_v62, %v800_v15 }
 0x28d   : >> { %v809_v51 = vsel %vm805_vm0, %v800_v15, %v802_v25  ;;  %v1007_v39 = vsel %vm7758_vm9, %v790_v33, %v808_v31  ;;  %v1406_v31 = vsub.s32 0, %v4933_v18 }
 0x28e   : >> { %v1010_v7 = vsel %vm7758_vm9, %v791_v5, %v809_v51 }
 0x28f   : >> { %v818_v45 = vpop.permute.xlu1 %817 }
 0x290   : >> { %v820_v26 = vpop.permute.xlu0 %819  ;;  %v826_v58 = vsel %vm823_vm12, %v5566_v42, %v818_v45 }
 0x291   : >> { %v827_v20 = vsel %vm823_vm12, %v818_v45, %v820_v26  ;;  %v1022_v42 = vsel %vm7755_vm10, %v1007_v39, %v826_v58 }
 0x292   : >> { %v1024_v47 = vsel %vm7755_vm10, %v1010_v7, %v827_v20  ;;  %v1410_v20 = vsub.s32 1, %v4933_v18 }
 0x293   : >> { %v786_v8 = vpop.permute.xlu1 %785 }
 0x294   : >> { %v804_v12 = vpop.permute.xlu0 %803  ;;  %v792_v21 = vsel %vm787_vm5, %v784_v30, %v786_v8  ;;  %v5734_v39 = vrot.slane %v7820_v1, %v1410_v20 }
 0x295   : >> { %v810_v28 = vsel %vm805_vm0, %v802_v25, %v804_v12  ;;  %v1016_v9 = vsel %vm7758_vm9, %v786_v8, %v804_v12 }
 0x296   : >> { %v1013_v44 = vsel %vm7758_vm9, %v792_v21, %v810_v28 }
 0x297   : >> { %v838_v57 = vpop.permute.xlu1 %837 }
 0x298   : >> { %v848_v24 = vsel %vm845_vm15, %v5580_v38, %v838_v57  ;;  %v840_v63 = vpop.permute.xlu0 %839 }
 0x299   : >> { %v849_v62 = vsel %vm845_vm15, %v838_v57, %v840_v63  ;;  %v1036_v37 = vsel %vm884_vm11, %v1022_v42, %v848_v24  ;;  %v5731_v24 = vrot.slane %v7820_v1, %v1406_v31 }
 0x29a   : >> { %v1039_v59 = vsel %vm884_vm11, %v1024_v47, %v849_v62 }
 0x29b   : >> { %1311 = vmatprep.subr.bf16.mxu1 %v1039_v59  ;;  %v822_v35 = vpop.permute.xlu1 %821 }
 0x29c   : >> { %v828_v38 = vsel %vm823_vm12, %v820_v26, %v822_v35  ;;  %v842_v32 = vpop.permute.xlu0 %841  ;;  %1312 = vmatpush1.bf16.msra.mxu1 %v1036_v37  ;;  %v1028_v50 = vsel %vm7755_vm10, %v1016_v9, %v822_v35 }
 0x29d   : >> { %v850_v34 = vsel %vm845_vm15, %v840_v63, %v842_v32  ;;  %v1026_v0 = vsel %vm7755_vm10, %v1013_v44, %v828_v38  ;;  %v1414_v38 = vsub.s32 2, %v4933_v18  ;;  %v1418_v44 = vsub.s32 3, %v4933_v18 }
 0x29e   : >> { %v1042_v22 = vsel %vm884_vm11, %v1026_v0, %v850_v34  ;;  %vm7759_vm10 = vcmask 965632  }
 0x29f   : >> { %v844_v27 = vpop.permute.xlu1 %843  ;;  %v5745_v34 = vrot.slane %v7820_v1, %v1414_v38 }
 0x2a0   : >> { %v851_v60 = vsel %vm845_vm15, %v842_v32, %v844_v27  ;;  %v1159_v16 = vpop.permute.xlu0 %1158 }
 0x2a1   : >> { %v1045_v56 = vsel %vm884_vm11, %v1028_v50, %v851_v60  ;;  %v1197_v55 = vsel %vm7763_vm13, %v5588_v53, %v1159_v16  ;;  %vm1505_vm11 = vcmask 1047888  }
 0x2a2   : >> { %1354 = vmatprep.subr.bf16.mxu0 %v1045_v56 }
 0x2a3   : >> { %1355 = vmatpush1.bf16.msra.mxu0 %v1042_v22  ;;  %v1161_v43 = vpop.permute.xlu1 %1160  ;;  %v1422_v22 = vsub.s32 4, %v4933_v18 }
 0x2a4   : >> { %v1163_v49 = vpop.permute.xlu0 %1162  ;;  %v1198_v41 = vsel %vm7763_vm13, %v1159_v16, %v1161_v43 }
 0x2a5   : >> { %1313 = vmatprep.subr.bf16.mxu1 %v1198_v41  ;;  %v1199_v36 = vsel %vm7763_vm13, %v1161_v43, %v1163_v49 }
 0x2a6   : >> { %1314 = vmatpush1.bf16.msra.mxu1 %v1197_v55 }
 0x2a7   : >> { %v1165_v19 = vpop.permute.xlu1 %1164 }
 0x2a8   : >> { %v1173_v29 = vpop.permute.xlu0 %1172  ;;  %v1200_v23 = vsel %vm7763_vm13, %v1163_v49, %v1165_v19  ;;  %v5749_v49 = vrot.slane %v7820_v1, %v1418_v44 }
 0x2a9   : >> { %1356 = vmatprep.subr.bf16.mxu0 %v1200_v23  ;;  %v1203_v17 = vsel %vm7763_vm13, %v5593_v61, %v1173_v29 }
 0x2aa   : >> { %1357 = vmatpush1.bf16.msra.mxu0 %v1199_v36 }
 0x2ab   : >> { %v1175_v13 = vpop.permute.xlu1 %1174 }
 0x2ac   : >> { %v1177_v48 = vpop.permute.xlu0 %1176  ;;  %v1204_v52 = vsel %vm7763_vm13, %v1173_v29, %v1175_v13 }
 0x2ad   : >> { %1315 = vmatprep.subr.bf16.mxu1 %v1204_v52  ;;  %v1205_v30 = vsel %vm7763_vm13, %v1175_v13, %v1177_v48 }
 0x2ae   : >> { %1316 = vmatpush1.bf16.msra.mxu1 %v1203_v17  ;;  %v5754_v17 = vrot.slane %v7820_v1, %v1422_v22 }
 0x2af   : >> { %v1179_v54 = vpop.permute.xlu1 %1178 }
 0x2b0   : >> { %v1187_v53 = vpop.permute.xlu0 %1186  ;;  %v1206_v46 = vsel %vm7763_vm13, %v1177_v48, %v1179_v54 }
 0x2b1   : >> { %1358 = vmatprep.subr.bf16.mxu0 %v1206_v46  ;;  %v1209_v15 = vsel %vm7763_vm13, %v5601_v40, %v1187_v53 }
 0x2b2   : >> { %1359 = vmatpush1.bf16.msra.mxu0 %v1205_v30  ;;  %v1251_v61 = vsel %vm7758_vm9, %v1209_v15, 0 }
 0x2b3   : >> { %v1189_v25 = vpop.permute.xlu1 %1188 }
 0x2b4   : >> { %v1191_v45 = vpop.permute.xlu0 %1190  ;;  %v1210_v26 = vsel %vm7763_vm13, %v1187_v53, %v1189_v25 }
 0x2b5   : >> { %3928 = vmatprep.subr.msk.bf16.mxu1 %vm7758_vm9, %v1210_v26  ;;  %v1211_v8 = vsel %vm7763_vm13, %v1189_v25, %v1191_v45 }
 0x2b6   : >> { %1318 = vmatpush1.bf16.msra.mxu1 %v1251_v61  ;;  %v1257_v40 = vsel %vm7758_vm9, %v1211_v8, 0 }
 0x2b7   : >> { %v1193_v12 = vpop.permute.xlu1 %1192 }
 0x2b8   : >> { %v1212_v51 = vsel %vm7763_vm13, %v1191_v45, %v1193_v12 }
 0x2b9   : >> { %3929 = vmatmul.mubr.msk.bf16.vlgmr.msra.gmra.mrb[0].mxu1 %vm1240_vm14, %v5612_v14  ;;  %3930 = vmatprep.subr.msk.bf16.mxu0 %vm7758_vm9, %v1212_v51  ;;  %v1426_v51 = vsub.s32 5, %v4933_v18  ;;  %vm7845_vm9 = vcmask 883712  }
 0x2ba   : >> { %1361 = vmatpush1.bf16.msra.mxu0 %v1257_v40 }
 0x2bd   : >> { %3931 = vmatmul.mubr.msk.bf16.vlgmr.msra.gmra.mrb[4].mxu0 %vm1240_vm14, %v5612_v14  ;;  %vm7760_vm14 = vcmask 343040  }
 0x2c5   : >> { %v1228_v5 = vpop.permute.xlu0 %1227 }
 0x2c8   : >> { %v1233_v57 = vpop.permute.xlu1 %1232 }
 0x345   : >> { %v1296_v58 = vpop.f32.mrb[0].mxu0 }
 0x346   : >> { %v1298_v33 = vpop.f32.mrb[1].mxu0  ;;  %v1297_v7 = vadd.f32 %v1296_v58, %v1228_v5 }
 0x347   : >> { %v1299_v63 = vadd.f32 %v1298_v33, %v1228_v5  ;;  %v1300_v62 = vpop.f32.mrb[2].mxu0 }
 0x348   : >> { %v1391_v47 = vmax.f32 %v1297_v7, 0.0  ;;  %v1301_v59 = vadd.f32 %v1300_v62, %v1233_v57  ;;  %v1302_v14 = vpop.f32.mrb[3].mxu0 }
 0x349   : >> { %v1392_v42 = vmax.f32 %v1299_v63, 0.0  ;;  %v1303_v43 = vadd.f32 %v1302_v14, %v1233_v57 }
 0x34a   : >> { %v1434_v21 = vmul.f32 %v5731_v24, %v1391_v47  ;;  %v1397_v28 = vmax.f32 %v1301_v59, 0.0 }
 0x34b   : >> { %v1435_v35 = vmul.f32 %v5734_v39, %v1392_v42  ;;  %v1398_v46 = vmax.f32 %v1303_v43, 0.0 }
 0x34c   : >> { %1458 = vrot.lane.b32.xlu1 %v1434_v21, %s7737_s18  ;;  %v1440_v37 = vmul.f32 %v5731_v24, %v1397_v28 }
 0x34d   : >> { %1460 = vrot.lane.b32.xlu0 %v1435_v35, %s7737_s18  ;;  %v1441_v61 = vmul.f32 %v5734_v39, %v1398_v46 }
 0x351   : >> { %1470 = vrot.lane.b32.xlu0 %v1440_v37, %s7737_s18 }
 0x38c   : >> { %v1339_v32 = vpop.f32.mrb[0].mxu1 }
 0x38d   : >> { %v1340_v9 = vadd.f32 %v1339_v32, %v1228_v5  ;;  %v1341_v27 = vpop.f32.mrb[1].mxu1 }
 0x38e   : >> { %v1342_v0 = vadd.f32 %v1341_v27, %v1228_v5  ;;  %v1343_v50 = vpop.f32.mrb[2].mxu1 }
 0x38f   : >> { %v1393_v60 = vmax.f32 %v1340_v9, 0.0  ;;  %v1344_v16 = vadd.f32 %v1343_v50, %v1233_v57  ;;  %v1345_v56 = vpop.f32.mrb[3].mxu1 }
 0x390   : >> { %v1382_v41 = vpop.f32.mrb[4].mxu0  ;;  %v1394_v19 = vmax.f32 %v1342_v0, 0.0  ;;  %v1346_v15 = vadd.f32 %v1345_v56, %v1233_v57 }
 0x391   : >> { %v1436_v55 = vmul.f32 %v5745_v34, %v1393_v60  ;;  %v1399_v29 = vmax.f32 %v1344_v16, 0.0  ;;  %v1383_v23 = vadd.f32 %v1382_v41, %v1228_v5  ;;  %v1384_v36 = vpop.f32.mrb[5].mxu0 }
 0x392   : >> { %v1386_v13 = vpop.f32.mrb[6].mxu0  ;;  %v1437_v30 = vmul.f32 %v5749_v49, %v1394_v19  ;;  %v1400_v8 = vmax.f32 %v1346_v15, 0.0  ;;  %v1385_v12 = vadd.f32 %v1384_v36, %v1228_v5 }
 0x393   : >> { %v1442_v48 = vmul.f32 %v5745_v34, %v1399_v29  ;;  %v1395_v52 = vmax.f32 %v1383_v23, 0.0  ;;  %v1387_v54 = vadd.f32 %v1386_v13, %v1233_v57  ;;  %1462 = vrot.lane.b32.xlu1 %v1436_v55, %s7737_s18  ;;  %v1388_v53 = vpop.f32.mrb[7].mxu0 }
 0x394   : >> { %v1389_v26 = vadd.f32 %v1388_v53, %v1233_v57  ;;  %v1443_v20 = vmul.f32 %v5749_v49, %v1400_v8  ;;  %v1396_v58 = vmax.f32 %v1385_v12, 0.0  ;;  %v5768_v57 = vrot.slane %v7820_v1, %v1426_v51 }
 0x395   : >> { %1474 = vrot.lane.b32.xlu0 %v1442_v48, %s7737_s18  ;;  %v1438_v25 = vmul.f32 %v5754_v17, %v1395_v52  ;;  %v1401_v45 = vmax.f32 %v1387_v54, 0.0 }
 0x396   : >> { %v1402_v31 = vmax.f32 %v1389_v26, 0.0  ;;  %v1439_v18 = vmul.f32 %v5768_v57, %v1396_v58 }
 0x397   : >> { %1464 = vrot.lane.b32.xlu1 %v1437_v30, %s7737_s18  ;;  %v1444_v40 = vmul.f32 %v5754_v17, %v1401_v45  ;;  %v5912_v30 = vcombine.high %v7819_v4, %v7818_v6 }
 0x398   : >> { %v1445_v33 = vmul.f32 %v5768_v57, %v1402_v31 }
 0x399   : >> { %1466 = vrot.lane.b32.xlu0 %v1438_v25, %s7737_s18  ;;  %2235 = vmatprep.mubr.bf16.mxu1 %v5912_v30 }
 0x39a   : >> { %2321 = vmatprep.mubr.bf16.mxu0 %v5912_v30 }
 0x39b   : >> { %1472 = vrot.lane.b32.xlu1 %v1441_v61, %s7737_s18 }
 0x39d   : >> { %1478 = vrot.lane.b32.xlu0 %v1444_v40, %s7737_s18 }
 0x39f   : >> { %1476 = vrot.lane.b32.xlu1 %v1443_v20, %s7737_s18 }
 0x3a1   : >> { %1480 = vrot.lane.b32.xlu0 %v1445_v33, %s7737_s18 }
 0x3a3   : >> { %1468 = vrot.lane.b32.xlu1 %v1439_v18, %s7737_s18  ;;  %s7829_s18 = smov 125  }
 0x3be   : >> { %v1459_v5 = vpop.permute.xlu1 %1458 }
 0x3bf   : >> { %v1461_v7 = vpop.permute.xlu0 %1460  ;;  %1506 = vst.msk [vmem:[#allocation3] sm:$0xff] %vm1505_vm11, %v1459_v5 }
 0x3c0   : >> { %v1483_v63 = vsel %vm7760_vm14, %v1459_v5, %v1461_v7 }
 0x3c3   : >> { %v1471_v62 = vpop.permute.xlu0 %1470 }
 0x3c4   : >> { %1513 = vst.msk [vmem:[#allocation3 + $0x38] sm:$0xff] %vm1505_vm11, %v1471_v62 }
 0x3c6   : >> { %v1519_v47 = vld [vmem:[#allocation3] sm:$0xff] }
 0x3cb   : >> { %v1526_v59 = vld [vmem:[#allocation3 + $0x38] sm:$0xff] }
 0x3cc   : >> { %v1533_v14 = vpack.c.bf16 %v1526_v59, %v1519_v47 }
 0x3ce   : >> { %1546 = vrot.lane.b32.xlu1 %v1533_v14, %s7747_s10  ;;  %1569 = vrot.lane.b32.xlu0 %v1533_v14, %s7749_s24  ;;  %s7834_s10 = smov 87   ;;  %s7835_s24 = smov 86  }
 0x3d2   : >> { %1661 = vrot.lane.b32.xlu1 %v1533_v14, %s7828_s26  ;;  %1592 = vrot.lane.b32.xlu0 %v1533_v14, %s7829_s18 }
 0x3d6   : >> { %1684 = vrot.lane.b32.xlu1 %v1533_v14, %s7830_s14  ;;  %1615 = vrot.lane.b32.xlu0 %v1533_v14, %s7751_s12  ;;  %s7839_s12 = smov 67  }
 0x3da   : >> { %1707 = vrot.lane.b32.xlu1 %v1533_v14, %s7831_s20  ;;  %1638 = vrot.lane.b32.xlu0 %v1533_v14, %s7832_s1 }
 0x3de   : >> { %1730 = vrot.lane.b32.xlu1 %v1533_v14, %s7756_s16  ;;  %1904 = vrot.lane.b32.xlu0 %v1533_v14, %s7833_s2  ;;  %s7841_s16 = smov 126  }
 0x3e2   : >> { %1753 = vrot.lane.b32.xlu1 %v1533_v14, %s7753_s23  ;;  %1776 = vrot.lane.b32.xlu0 %v1533_v14, %s7834_s10  ;;  %s7840_s23 = smov 127  }
 0x3e6   : >> { %1799 = vrot.lane.b32.xlu1 %v1533_v14, %s7835_s24  ;;  %1822 = vrot.lane.b32.xlu0 %v1533_v14, %s7836_s0 }
 0x3ea   : >> { %1845 = vrot.lane.b32.xlu1 %v1533_v14, %s7837_s3  ;;  %1869 = vrot.lane.b32.xlu0 %v1533_v14, %s7838_s4 }
 0x3ee   : >> { %1936 = vrot.lane.b32.xlu1 %v1533_v14, %s7839_s12 }
 0x405   : >> { %v1463_v42 = vpop.permute.xlu1 %1462 }
 0x406   : >> { %v1484_v21 = vsel %vm7760_vm14, %v1461_v7, %v1463_v42 }
 0x407   : >> { %v1475_v28 = vpop.permute.xlu0 %1474 }
 0x409   : >> { %v1465_v35 = vpop.permute.xlu1 %1464 }
 0x40a   : >> { %v1485_v37 = vsel %vm7760_vm14, %v1463_v42, %v1465_v35 }
 0x40b   : >> { %v1467_v38 = vpop.permute.xlu0 %1466 }
 0x40c   : >> { %v1486_v32 = vsel %vm7760_vm14, %v1465_v35, %v1467_v38 }
 0x40d   : >> { %v1473_v44 = vpop.permute.xlu1 %1472 }
 0x40e   : >> { %v1488_v9 = vsel %vm7760_vm14, %v1471_v62, %v1473_v44  ;;  %v1489_v27 = vsel %vm7760_vm14, %v1473_v44, %v1475_v28 }
 0x40f   : >> { %v5801_v0 = vpack.c.bf16 %v1488_v9, %v1483_v63  ;;  %v5803_v50 = vpack.c.bf16 %v1489_v27, %v1484_v21  ;;  %v1479_v60 = vpop.permute.xlu0 %1478 }
 0x411   : >> { %v1477_v16 = vpop.permute.xlu1 %1476  ;;  %1550 = vrot.lane.b32.xlu0 %v5803_v50, %s7840_s23  ;;  %1548 = vrot.lane.b32.xlu1 %v5801_v0, %s7840_s23 }
 0x412   : >> { %v1490_v56 = vsel %vm7760_vm14, %v1475_v28, %v1477_v16  ;;  %v1491_v22 = vsel %vm7760_vm14, %v1477_v16, %v1479_v60  ;;  %2203 = vmatprep.subr.bf16.mxu1 %v5801_v0 }
 0x413   : >> { %v5812_v43 = vpack.c.bf16 %v1490_v56, %v1485_v37  ;;  %v5814_v41 = vpack.c.bf16 %v1491_v22, %v1486_v32  ;;  %v1481_v55 = vpop.permute.xlu0 %1480  ;;  %2204 = vmatpush1.bf16.msra.mxu1 %v1533_v14 }
 0x414   : >> { %v1492_v19 = vsel %vm7760_vm14, %v1479_v60, %v1481_v55 }
 0x415   : >> { %1518 = vst.msk [vmem:[#allocation3 + $0x60] sm:$0xff] %vm7759_vm10, %v1492_v19  ;;  %v1469_v29 = vpop.permute.xlu1 %1468  ;;  %1573 = vrot.lane.b32.xlu1 %v5803_v50, %s7841_s16  ;;  %1552 = vrot.lane.b32.xlu0 %v5812_v43, %s7840_s23 }
 0x416   : >> { %v1487_v23 = vsel %vm7760_vm14, %v1467_v38, %v1469_v29  ;;  %2289 = vmatprep.subr.bf16.mxu0 %v5812_v43  ;;  %vm7849_vm14 = vcmask 867328  }
 0x417   : >> { %1512 = vst.msk [vmem:[#allocation3 + $0x28] sm:$0xff] %vm7759_vm10, %v1487_v23  ;;  %2290 = vmatpush1.bf16.msra.mxu0 %v5803_v50  ;;  %vm7846_vm10 = vmmov %vm7845_vm9 }
 0x419   : >> { %1575 = vrot.lane.b32.xlu1 %v5812_v43, %s7841_s16  ;;  %1571 = vrot.lane.b32.xlu0 %v5801_v0, %s7841_s16 }
 0x41c   : >> { %v1531_v37 = vld [vmem:[#allocation3 + $0x60] sm:$0xff] }
 0x41d   : >> { %1596 = vrot.lane.b32.xlu1 %v5803_v50, %s7829_s18  ;;  %1594 = vrot.lane.b32.xlu0 %v5801_v0, %s7829_s18 }
 0x41e   : >> { %v1524_v21 = vld [vmem:[#allocation3 + $0x28] sm:$0xff] }
 0x41f   : >> { %v5996_v38 = vpack.c.bf16 %v1531_v37, %v1524_v21 }
 0x421   : >> { %1598 = vrot.lane.b32.xlu1 %v5812_v43, %s7829_s18  ;;  %1617 = vrot.lane.b32.xlu0 %v5801_v0, %s7842_s5 }
 0x425   : >> { %1619 = vrot.lane.b32.xlu1 %v5803_v50, %s7842_s5  ;;  %1640 = vrot.lane.b32.xlu0 %v5801_v0, %s7832_s1 }
 0x429   : >> { %1621 = vrot.lane.b32.xlu1 %v5812_v43, %s7842_s5  ;;  %1908 = vrot.lane.b32.xlu0 %v5803_v50, %s7833_s2 }
 0x42d   : >> { %1642 = vrot.lane.b32.xlu1 %v5803_v50, %s7832_s1  ;;  %1665 = vrot.lane.b32.xlu0 %v5803_v50, %s7828_s26 }
 0x431   : >> { %1644 = vrot.lane.b32.xlu1 %v5812_v43, %s7832_s1  ;;  %1667 = vrot.lane.b32.xlu0 %v5812_v43, %s7828_s26 }
 0x435   : >> { %1906 = vrot.lane.b32.xlu1 %v5801_v0, %s7833_s2  ;;  %1688 = vrot.lane.b32.xlu0 %v5803_v50, %s7830_s14 }
 0x439   : >> { %1910 = vrot.lane.b32.xlu1 %v5812_v43, %s7833_s2  ;;  %1690 = vrot.lane.b32.xlu0 %v5812_v43, %s7830_s14 }
 0x43d   : >> { %1663 = vrot.lane.b32.xlu1 %v5801_v0, %s7828_s26  ;;  %1711 = vrot.lane.b32.xlu0 %v5803_v50, %s7831_s20 }
 0x440   : >> { %v1547_v36 = vpop.permute.xlu1 %1546  ;;  %v1570_v13 = vpop.permute.xlu0 %1569 }
 0x441   : >> { %1686 = vrot.lane.b32.xlu1 %v5801_v0, %s7830_s14  ;;  %1713 = vrot.lane.b32.xlu0 %v5812_v43, %s7831_s20 }
 0x444   : >> { %v5886_v48 = vpop.permute.xlu1 %1661  ;;  %v1593_v52 = vpop.permute.xlu0 %1592 }
 0x445   : >> { %1709 = vrot.lane.b32.xlu1 %v5801_v0, %s7831_s20  ;;  %1734 = vrot.lane.b32.xlu0 %v5803_v50, %s7843_s6 }
 0x448   : >> { %v5896_v54 = vpop.permute.xlu1 %1684  ;;  %v5902_v53 = vpop.permute.xlu0 %1615 }
 0x449   : >> { %1732 = vrot.lane.b32.xlu1 %v5801_v0, %s7843_s6  ;;  %1736 = vrot.lane.b32.xlu0 %v5812_v43, %s7843_s6 }
 0x44c   : >> { %v5904_v46 = vpop.permute.xlu1 %1707  ;;  %v5920_v15 = vpop.permute.xlu0 %1638 }
 0x44d   : >> { %1755 = vrot.lane.b32.xlu1 %v5801_v0, %s7844_s7  ;;  %1757 = vrot.lane.b32.xlu0 %v5803_v50, %s7844_s7 }
 0x450   : >> { %v5922_v25 = vpop.permute.xlu1 %1730  ;;  %v5928_v45 = vpop.permute.xlu0 %1904 }
 0x451   : >> { %1780 = vrot.lane.b32.xlu1 %v5803_v50, %s7834_s10  ;;  %1759 = vrot.lane.b32.xlu0 %v5812_v43, %s7844_s7 }
 0x454   : >> { %v5930_v26 = vpop.permute.xlu1 %1753  ;;  %v5940_v61 = vpop.permute.xlu0 %1776 }
 0x455   : >> { %1782 = vrot.lane.b32.xlu1 %v5812_v43, %s7834_s10  ;;  %1778 = vrot.lane.b32.xlu0 %v5801_v0, %s7834_s10 }
 0x458   : >> { %v5942_v8 = vpop.permute.xlu1 %1799  ;;  %v5948_v12 = vpop.permute.xlu0 %1822 }
 0x459   : >> { %1801 = vrot.lane.b32.xlu1 %v5801_v0, %s7835_s24  ;;  %1803 = vrot.lane.b32.xlu0 %v5803_v50, %s7835_s24 }
 0x45c   : >> { %v5950_v51 = vpop.permute.xlu1 %1845  ;;  %v5960_v40 = vpop.permute.xlu0 %1869 }
 0x45d   : >> { %1826 = vrot.lane.b32.xlu1 %v5803_v50, %s7836_s0  ;;  %1805 = vrot.lane.b32.xlu0 %v5812_v43, %s7835_s24 }
 0x460   : >> { %v5962_v31 = vpop.permute.xlu1 %1936 }
 0x461   : >> { %1828 = vrot.lane.b32.xlu1 %v5812_v43, %s7836_s0  ;;  %1824 = vrot.lane.b32.xlu0 %v5801_v0, %s7836_s0 }
 0x465   : >> { %1847 = vrot.lane.b32.xlu1 %v5801_v0, %s7837_s3  ;;  %1849 = vrot.lane.b32.xlu0 %v5803_v50, %s7837_s3 }
 0x469   : >> { %1873 = vrot.lane.b32.xlu1 %v5803_v50, %s7838_s4  ;;  %1851 = vrot.lane.b32.xlu0 %v5812_v43, %s7837_s3 }
 0x46d   : >> { %1875 = vrot.lane.b32.xlu1 %v5812_v43, %s7838_s4  ;;  %1871 = vrot.lane.b32.xlu0 %v5801_v0, %s7838_s4 }
 0x471   : >> { %1938 = vrot.lane.b32.xlu1 %v5801_v0, %s7839_s12  ;;  %1940 = vrot.lane.b32.xlu0 %v5803_v50, %s7839_s12 }
 0x475   : >> { %1554 = vrot.lane.b32.xlu1 %v5814_v41, %s7840_s23  ;;  %1942 = vrot.lane.b32.xlu0 %v5812_v43, %s7839_s12 }
 0x479   : >> { %1912 = vrot.lane.b32.xlu1 %v5814_v41, %s7833_s2  ;;  %1577 = vrot.lane.b32.xlu0 %v5814_v41, %s7841_s16 }
 0x47d   : >> { %1669 = vrot.lane.b32.xlu1 %v5814_v41, %s7828_s26  ;;  %1600 = vrot.lane.b32.xlu0 %v5814_v41, %s7829_s18 }
 0x481   : >> { %1692 = vrot.lane.b32.xlu1 %v5814_v41, %s7830_s14  ;;  %1623 = vrot.lane.b32.xlu0 %v5814_v41, %s7842_s5 }
 0x483   : >> { %v1551_v20 = vpop.permute.xlu0 %1550  ;;  %v1549_v58 = vpop.permute.xlu1 %1548 }
 0x484   : >> { %v1559_v33 = vsel %vm577_vm6, %v1549_v58, %v1551_v20  ;;  %v1558_v18 = vsel %vm577_vm6, %v1547_v36, %v1549_v58 }
 0x485   : >> { %1715 = vrot.lane.b32.xlu1 %v5814_v41, %s7831_s20  ;;  %1646 = vrot.lane.b32.xlu0 %v5814_v41, %s7832_s1 }
 0x486   : >> { %2205 = vmatprep.subr.bf16.mxu1 %v1559_v33 }
 0x487   : >> { %2206 = vmatpush1.bf16.msra.mxu1 %v1558_v18  ;;  %v5974_v5 = vpop.permute.xlu0 %1552  ;;  %v1574_v7 = vpop.permute.xlu1 %1573 }
 0x489   : >> { %1738 = vrot.lane.b32.xlu1 %v5814_v41, %s7843_s6  ;;  %1784 = vrot.lane.b32.xlu0 %v5814_v41, %s7834_s10 }
 0x48b   : >> { %v1572_v63 = vpop.permute.xlu0 %1571  ;;  %v5980_v62 = vpop.permute.xlu1 %1575 }
 0x48c   : >> { %v1582_v47 = vsel %vm601_vm7, %v1572_v63, %v1574_v7  ;;  %v1581_v59 = vsel %vm601_vm7, %v1570_v13, %v1572_v63  ;;  %v6042_v13 = vsel %vm577_vm6, %v1551_v20, %v5974_v5  ;;  %v6057_v20 = vsel %vm601_vm7, %v1574_v7, %v5980_v62 }
 0x48d   : >> { %1761 = vrot.lane.b32.xlu1 %v5814_v41, %s7844_s7  ;;  %1830 = vrot.lane.b32.xlu0 %v5814_v41, %s7836_s0 }
 0x48e   : >> { %2207 = vmatprep.subr.bf16.mxu1 %v1582_v47 }
 0x48f   : >> { %2208 = vmatpush1.bf16.msra.mxu1 %v1581_v59  ;;  %v1595_v14 = vpop.permute.xlu0 %1594  ;;  %v1597_v42 = vpop.permute.xlu1 %1596 }
 0x490   : >> { %v1605_v28 = vsel %vm625_vm8, %v1595_v14, %v1597_v42  ;;  %v5990_v35 = vsel %vm625_vm8, %v1593_v52, %v1595_v14 }
 0x491   : >> { %1807 = vrot.lane.b32.xlu1 %v5814_v41, %s7835_s24  ;;  %1877 = vrot.lane.b32.xlu0 %v5814_v41, %s7838_s4 }
 0x492   : >> { %2209 = vmatprep.subr.bf16.mxu1 %v1605_v28 }
 0x493   : >> { %2210 = vmatpush1.bf16.msra.mxu1 %v5990_v35  ;;  %v1618_v32 = vpop.permute.xlu0 %1617  ;;  %v5999_v44 = vpop.permute.xlu1 %1598 }
 0x494   : >> { %v1627_v50 = vsel %vm643_vm1, %v5902_v53, %v1618_v32  ;;  %v6070_v7 = vsel %vm625_vm8, %v1597_v42, %v5999_v44 }
 0x495   : >> { %1853 = vrot.lane.b32.xlu1 %v5814_v41, %s7837_s3  ;;  %1914 = vrot.lane.b32.xlu0 %v5996_v38, %s7833_s2 }
 0x497   : >> { %v1641_v9 = vpop.permute.xlu0 %1640  ;;  %v6005_v27 = vpop.permute.xlu1 %1619 }
 0x498   : >> { %v1628_v0 = vsel %vm643_vm1, %v1618_v32, %v6005_v27  ;;  %v1650_v55 = vsel %vm7846_vm10, %v5920_v15, %v1641_v9 }
 0x499   : >> { %1944 = vrot.lane.b32.xlu1 %v5814_v41, %s7839_s12  ;;  %1648 = vrot.lane.b32.xlu0 %v5996_v38, %s7832_s1 }
 0x49a   : >> { %2211 = vmatprep.subr.bf16.mxu1 %v1628_v0 }
 0x49b   : >> { %2212 = vmatpush1.bf16.msra.mxu1 %v1627_v50  ;;  %v1909_v60 = vpop.permute.xlu0 %1908  ;;  %v6015_v16 = vpop.permute.xlu1 %1621 }
 0x49d   : >> { %1671 = vrot.lane.b32.xlu0 %v5996_v38, %s7828_s26  ;;  %1556 = vrot.lane.b32.xlu1 %v5996_v38, %s7840_s23 }
 0x49f   : >> { %v6021_v56 = vpop.permute.xlu0 %1665  ;;  %v1643_v22 = vpop.permute.xlu1 %1642 }
 0x4a0   : >> { %v1651_v43 = vsel %vm7845_vm9, %v1641_v9, %v1643_v22  ;;  %vm7847_vm9 = vcmask 875520  }
 0x4a1   : >> { %1694 = vrot.lane.b32.xlu0 %v5996_v38, %s7830_s14  ;;  %1579 = vrot.lane.b32.xlu1 %v5996_v38, %s7841_s16  ;;  %vm7848_vm10 = vmmov %vm7847_vm9 }
 0x4a2   : >> { %2213 = vmatprep.subr.bf16.mxu1 %v1651_v43 }
 0x4a3   : >> { %2214 = vmatpush1.bf16.msra.mxu1 %v1650_v55  ;;  %v6030_v19 = vpop.permute.xlu0 %1667  ;;  %v6032_v29 = vpop.permute.xlu1 %1644 }
 0x4a5   : >> { %1717 = vrot.lane.b32.xlu0 %v5996_v38, %s7831_s20  ;;  %1602 = vrot.lane.b32.xlu1 %v5996_v38, %s7829_s18 }
 0x4a7   : >> { %v6038_v23 = vpop.permute.xlu0 %1688  ;;  %v1907_v36 = vpop.permute.xlu1 %1906 }
 0x4a9   : >> { %1954 = vrot.lane.b32.xlu1 %v6042_v13, %s7839_s12  ;;  %1952 = vrot.lane.b32.xlu0 %v1559_v33, %s7839_s12 }
 0x4ab   : >> { %v6047_v52 = vpop.permute.xlu0 %1690  ;;  %v6049_v53 = vpop.permute.xlu1 %1910 }
 0x4ad   : >> { %1950 = vrot.lane.b32.xlu0 %v1558_v18, %s7839_s12  ;;  %1966 = vrot.lane.b32.xlu1 %v1582_v47, %s7839_s12 }
 0x4af   : >> { %v6053_v15 = vpop.permute.xlu0 %1711  ;;  %v1664_v58 = vpop.permute.xlu1 %1663 }
 0x4b0   : >> { %v1674_v63 = vsel %vm7847_vm9, %v1664_v58, %v6021_v56  ;;  %v1673_v33 = vsel %vm7848_vm10, %v5886_v48, %v1664_v58  ;;  %vm7850_vm9 = vmmov %vm7849_vm14  ;;  %vm7851_vm10 = vcmask 891904  }
 0x4b1   : >> { %1964 = vrot.lane.b32.xlu1 %v1581_v59, %s7839_s12  ;;  %1968 = vrot.lane.b32.xlu0 %v6057_v20, %s7839_s12  ;;  %v1919_v21 = vsel %vm7851_vm10, %v1907_v36, %v1909_v60  ;;  %v1918_v9 = vsel %vm7851_vm10, %v5928_v45, %v1907_v36 }
 0x4b2   : >> { %2215 = vmatprep.subr.bf16.mxu1 %v1674_v63 }
 0x4b3   : >> { %2216 = vmatpush1.bf16.msra.mxu1 %v1673_v33  ;;  %v6066_v18 = vpop.permute.xlu0 %1713  ;;  %v1687_v47 = vpop.permute.xlu1 %1686 }
 0x4b4   : >> { %v6074_v14 = vsel %vm7849_vm14, %v1687_v47, %v6038_v23  ;;  %v6078_v48 = vsel %vm7850_vm9, %v5896_v54, %v1687_v47  ;;  %vm7852_vm14 = vcmask 859136  }
 0x4b5   : >> { %1980 = vrot.lane.b32.xlu0 %v1605_v28, %s7839_s12  ;;  %1982 = vrot.lane.b32.xlu1 %v6070_v7, %s7839_s12  ;;  %vm7853_vm9 = vmmov %vm7852_vm14 }
 0x4b6   : >> { %2217 = vmatprep.subr.bf16.mxu1 %v6074_v14 }
 0x4b7   : >> { %2218 = vmatpush1.bf16.msra.mxu1 %v6078_v48  ;;  %v6085_v59 = vpop.permute.xlu0 %1734  ;;  %v1710_v42 = vpop.permute.xlu1 %1709 }
 0x4b8   : >> { %v6090_v37 = vsel %vm7852_vm14, %v1710_v42, %v6053_v15  ;;  %v6094_v54 = vsel %vm7853_vm9, %v5904_v46, %v1710_v42  ;;  %vm7854_vm14 = vmmov %vm7851_vm10  ;;  %vm7855_vm9 = vcmask 883712   ;;  %vm7856_vm10 = vcmask 875520  }
 0x4b9   : >> { %1978 = vrot.lane.b32.xlu0 %v5990_v35, %s7839_s12  ;;  %1994 = vrot.lane.b32.xlu1 %v1919_v21, %s7839_s12  ;;  %v1920_v0 = vsel %vm7854_vm14, %v1909_v60, %v6049_v53  ;;  %v6117_v45 = vsel %vm7855_vm9, %v1643_v22, %v6032_v29  ;;  %vm7857_vm9 = vmmov %vm7856_vm10 }
 0x4ba   : >> { %2219 = vmatprep.subr.bf16.mxu1 %v6090_v37 }
 0x4bb   : >> { %2220 = vmatpush1.bf16.msra.mxu1 %v6094_v54  ;;  %v6101_v28 = vpop.permute.xlu0 %1736  ;;  %v1733_v32 = vpop.permute.xlu1 %1732 }
 0x4bc   : >> { %v1743_v46 = vsel %vm733_vm2, %v1733_v32, %v6085_v59  ;;  %v1742_v35 = vsel %vm733_vm2, %v5922_v25, %v1733_v32 }
 0x4bd   : >> { %1992 = vrot.lane.b32.xlu1 %v1918_v9, %s7839_s12  ;;  %1996 = vrot.lane.b32.xlu0 %v1920_v0, %s7839_s12 }
 0x4be   : >> { %2221 = vmatprep.subr.bf16.mxu1 %v1743_v46 }
 0x4bf   : >> { %2222 = vmatpush1.bf16.msra.mxu1 %v1742_v35  ;;  %v6113_v50 = vpop.permute.xlu0 %1757  ;;  %v1756_v58 = vpop.permute.xlu1 %1755 }
 0x4c0   : >> { %v1766_v60 = vsel %vm751_vm3, %v1756_v58, %v6113_v50  ;;  %v1765_v36 = vsel %vm751_vm3, %v5930_v26, %v1756_v58  ;;  %v6137_v26 = vsel %vm7856_vm10, %v6021_v56, %v6030_v19  ;;  %vm7858_vm10 = vcmask 883712  }
 0x4c1   : >> { %2010 = vrot.lane.b32.xlu1 %v6117_v45, %s7839_s12  ;;  %2008 = vrot.lane.b32.xlu0 %v1651_v43, %s7839_s12 }
 0x4c2   : >> { %2223 = vmatprep.subr.bf16.mxu1 %v1766_v60 }
 0x4c3   : >> { %2224 = vmatpush1.bf16.msra.mxu1 %v1765_v36  ;;  %v6126_v25 = vpop.permute.xlu0 %1759  ;;  %v6128_v47 = vpop.permute.xlu1 %1780 }
 0x4c5   : >> { %2006 = vrot.lane.b32.xlu0 %v1650_v55, %s7839_s12  ;;  %2022 = vrot.lane.b32.xlu1 %v1674_v63, %s7839_s12 }
 0x4c7   : >> { %v1779_v22 = vpop.permute.xlu0 %1778  ;;  %v6132_v42 = vpop.permute.xlu1 %1782 }
 0x4c8   : >> { %v1789_v43 = vsel %vm769_vm4, %v1779_v22, %v6128_v47  ;;  %v1788_v21 = vsel %vm769_vm4, %v5940_v61, %v1779_v22 }
 0x4c9   : >> { %2024 = vrot.lane.b32.xlu0 %v6137_v26, %s7839_s12  ;;  %2020 = vrot.lane.b32.xlu1 %v1673_v33, %s7839_s12 }
 0x4ca   : >> { %2225 = vmatprep.subr.bf16.mxu1 %v1789_v43 }
 0x4cb   : >> { %2226 = vmatpush1.bf16.msra.mxu1 %v1788_v21  ;;  %v6146_v55 = vpop.permute.xlu0 %1803  ;;  %v1802_v63 = vpop.permute.xlu1 %1801 }
 0x4cc   : >> { %v1812_v56 = vsel %vm787_vm5, %v1802_v63, %v6146_v55  ;;  %v1811_v32 = vsel %vm787_vm5, %v5942_v8, %v1802_v63 }
 0x4cd   : >> { %2227 = vmatprep.subr.bf16.mxu1 %v1812_v56 }
 0x4cf   : >> { %2228 = vmatpush1.bf16.msra.mxu1 %v1811_v32  ;;  %v6152_v9 = vpop.permute.xlu0 %1805  ;;  %v6154_v61 = vpop.permute.xlu1 %1826  ;;  %v6180_v32 = vcombine.low %v7819_v4, %v7818_v6 }
 0x4d3   : >> { %v1825_v0 = vpop.permute.xlu0 %1824  ;;  %v6156_v46 = vpop.permute.xlu1 %1828 }
 0x4d4   : >> { %v1835_v33 = vsel %vm805_vm0, %v1825_v0, %v6154_v61  ;;  %v1834_v35 = vsel %vm805_vm0, %v5948_v12, %v1825_v0 }
 0x4d5   : >> { %2229 = vmatprep.subr.bf16.mxu1 %v1835_v33 }
 0x4d6   : >> { %2230 = vmatpush1.bf16.msra.mxu1 %v1834_v35 }
 0x4d7   : >> { %v6162_v58 = vpop.permute.xlu0 %1849  ;;  %v1848_v8 = vpop.permute.xlu1 %1847 }
 0x4d8   : >> { %v1858_v60 = vsel %vm823_vm12, %v1848_v8, %v6162_v58  ;;  %v1857_v36 = vsel %vm823_vm12, %v5950_v51, %v1848_v8 }
 0x4d9   : >> { %2231 = vmatprep.subr.bf16.mxu1 %v1858_v60 }
 0x4da   : >> { %2232 = vmatpush1.bf16.msra.mxu1 %v1857_v36 }
 0x4db   : >> { %v6168_v22 = vpop.permute.xlu0 %1851  ;;  %v6170_v43 = vpop.permute.xlu1 %1873 }
 0x4df   : >> { %v1872_v21 = vpop.permute.xlu0 %1871  ;;  %v6172_v63 = vpop.permute.xlu1 %1875 }
 0x4e0   : >> { %v1884_v12 = vsel %vm845_vm15, %v1872_v21, %v6170_v43  ;;  %v1883_v56 = vsel %vm845_vm15, %v5960_v40, %v1872_v21 }
 0x4e1   : >> { %2233 = vmatprep.subr.bf16.mxu1 %v1884_v12 }
 0x4e2   : >> { %2234 = vmatpush1.bf16.msra.mxu1 %v1883_v56 }
 0x4e3   : >> { %v6182_v51 = vpop.permute.xlu0 %1940  ;;  %v1939_v0 = vpop.permute.xlu1 %1938 }
 0x4e4   : >> { %v2063_v33 = vsel %vm7763_vm13, %v1939_v0, %v6182_v51  ;;  %v2062_v35 = vsel %vm7763_vm13, %v5962_v31, %v1939_v0 }
 0x4e5   : >> { %2246 = vmatprep.subr.bf16.mxu1 %v2063_v33  ;;  %2236 = vmatmul.mubr.bf16.vlgmr.msra.gmra.mrb[4].mxu1 %v6180_v32 }
 0x4e6   : >> { %2247 = vmatpush1.bf16.msra.mxu1 %v2062_v35 }
 0x4e7   : >> { %v6189_v40 = vpop.permute.xlu0 %1942  ;;  %v6191_v8 = vpop.permute.xlu1 %1554 }
 0x4e8   : >> { %v1561_v60 = vsel %vm577_vm6, %v5974_v5, %v6191_v8 }
 0x4e9   : >> { %1956 = vrot.lane.b32.xlu1 %v1561_v60, %s7839_s12  ;;  %2291 = vmatprep.subr.bf16.mxu0 %v1561_v60 }
 0x4ea   : >> { %2292 = vmatpush1.bf16.msra.mxu0 %v6042_v13 }
 0x4eb   : >> { %v6198_v36 = vpop.permute.xlu0 %1577  ;;  %v6200_v31 = vpop.permute.xlu1 %1912 }
 0x4ec   : >> { %v1584_v21 = vsel %vm601_vm7, %v5980_v62, %v6198_v36  ;;  %v1921_v62 = vsel %vm7854_vm14, %v6049_v53, %v6200_v31  ;;  %v1629_v53 = vsel %vm643_vm1, %v6005_v27, %v6015_v16  ;;  %vm7859_vm14 = vcmask 867328  }
 0x4ed   : >> { %1970 = vrot.lane.b32.xlu0 %v1584_v21, %s7839_s12  ;;  %2293 = vmatprep.subr.bf16.mxu0 %v1584_v21 }
 0x4ee   : >> { %2294 = vmatpush1.bf16.msra.mxu0 %v6057_v20 }
 0x4ef   : >> { %v6207_v12 = vpop.permute.xlu0 %1600  ;;  %v6209_v5 = vpop.permute.xlu1 %1669 }
 0x4f0   : >> { %v1607_v13 = vsel %vm625_vm8, %v5999_v44, %v6207_v12  ;;  %v1676_v44 = vsel %vm7857_vm9, %v6030_v19, %v6209_v5  ;;  %vm7860_vm9 = vmmov %vm7859_vm14 }
 0x4f1   : >> { %1984 = vrot.lane.b32.xlu1 %v1607_v13, %s7839_s12  ;;  %2295 = vmatprep.subr.bf16.mxu0 %v1607_v13 }
 0x4f2   : >> { %1998 = vrot.lane.b32.xlu0 %v1921_v62, %s7839_s12  ;;  %2296 = vmatpush1.bf16.msra.mxu0 %v6070_v7 }
 0x4f3   : >> { %v6220_v20 = vpop.permute.xlu0 %1623  ;;  %v6222_v56 = vpop.permute.xlu1 %1692 }
 0x4f4   : >> { %v1630_v0 = vsel %vm643_vm1, %v6015_v16, %v6220_v20  ;;  %v1698_v16 = vsel %vm7859_vm14, %v6038_v23, %v6047_v52 }
 0x4f5   : >> { %2297 = vmatprep.subr.bf16.mxu0 %v1630_v0 }
 0x4f6   : >> { %2026 = vrot.lane.b32.xlu0 %v1676_v44, %s7839_s12  ;;  %2298 = vmatpush1.bf16.msra.mxu0 %v1629_v53 }
 0x4f7   : >> { %v6234_v7 = vpop.permute.xlu0 %1646  ;;  %v6236_v33 = vpop.permute.xlu1 %1715 }
 0x4f8   : >> { %v1653_v35 = vsel %vm7858_vm10, %v6032_v29, %v6234_v7  ;;  %v1699_v29 = vsel %vm7860_vm9, %v6047_v52, %v6222_v56  ;;  %vm7861_vm10 = vcmask 859136   ;;  %vm7863_vm9 = vcmask 891904  }
 0x4f9   : >> { %2012 = vrot.lane.b32.xlu1 %v1653_v35, %s7839_s12  ;;  %2299 = vmatprep.subr.bf16.mxu0 %v1653_v35  ;;  %v6262_v21 = vsel %vm7861_vm10, %v6066_v18, %v6236_v33  ;;  %vm7862_vm14 = vmmov %vm7861_vm10  ;;  %v1767_v35 = vsel %vm751_vm3, %v6113_v50, %v6126_v25  ;;  %v1790_v50 = vsel %vm769_vm4, %v6128_v47, %v6132_v42  ;;  %vm7762_vm10 = vcmask 130048  }
 0x4fa   : >> { %2300 = vmatpush1.bf16.msra.mxu0 %v6117_v45  ;;  %v6272_v52 = vsel %vm7862_vm14, %v6053_v15, %v6066_v18  ;;  %v1813_v47 = vsel %vm787_vm5, %v6146_v55, %v6152_v9  ;;  %v1836_v55 = vsel %vm805_vm0, %v6154_v61, %v6156_v46  ;;  %v1859_v61 = vsel %vm823_vm12, %v6162_v58, %v6168_v22 }
 0x4fb   : >> { %v6243_v19 = vpop.permute.xlu0 %1784  ;;  %2301 = vmatprep.subr.bf16.mxu0 %v1676_v44  ;;  %v6245_v27 = vpop.permute.xlu1 %1738  ;;  %v1744_v44 = vsel %vm733_vm2, %v6085_v59, %v6101_v28  ;;  %vm7866_vm14 = vcmask 883712  }
 0x4fc   : >> { %v1745_v13 = vsel %vm733_vm2, %v6101_v28, %v6245_v27 }
 0x4fd   : >> { %2038 = vrot.lane.b32.xlu1 %v1698_v16, %s7839_s12 }
 0x4fe   : >> { %2302 = vmatpush1.bf16.msra.mxu0 %v6137_v26 }
 0x4ff   : >> { %v6255_v60 = vpop.permute.xlu0 %1830  ;;  %2303 = vmatprep.subr.bf16.mxu0 %v1699_v29  ;;  %v6257_v45 = vpop.permute.xlu1 %1761 }
 0x500   : >> { %v1768_v15 = vsel %vm751_vm3, %v6126_v25, %v6257_v45 }
 0x502   : >> { %2304 = vmatpush1.bf16.msra.mxu0 %v1698_v16  ;;  %v1791_v16 = vsel %vm769_vm4, %v6132_v42, %v6243_v19  ;;  %v1837_v42 = vsel %vm805_vm0, %v6156_v46, %v6255_v60 }
 0x503   : >> { %v6264_v23 = vpop.permute.xlu0 %1877  ;;  %2305 = vmatprep.subr.bf16.mxu0 %v6262_v21  ;;  %v6267_v26 = vpop.permute.xlu1 %1807 }
 0x504   : >> { %v1814_v25 = vsel %vm787_vm5, %v6152_v9, %v6267_v26  ;;  %v1886_v46 = vsel %vm845_vm15, %v6172_v63, %v6264_v23 }
 0x506   : >> { %2306 = vmatpush1.bf16.msra.mxu0 %v6272_v52 }
 0x507   : >> { %v6278_v62 = vpop.permute.xlu0 %1914  ;;  %2307 = vmatprep.subr.bf16.mxu0 %v1745_v13  ;;  %v6280_v0 = vpop.permute.xlu1 %1853 }
 0x508   : >> { %v1860_v9 = vsel %vm823_vm12, %v6168_v22, %v6280_v0  ;;  %v1885_v22 = vsel %vm845_vm15, %v6170_v43, %v6172_v63  ;;  %v2064_v63 = vsel %vm7763_vm13, %v6182_v51, %v6189_v40  ;;  %v1525_v51 = vld [vmem:[#allocation3 + $0x30] sm:$0xff] }
 0x50a   : >> { %2308 = vmatpush1.bf16.msra.mxu0 %v1744_v44 }
 0x50b   : >> { %v6288_v18 = vpop.permute.xlu0 %1648  ;;  %2309 = vmatprep.subr.bf16.mxu0 %v1768_v15  ;;  %v6290_v53 = vpop.permute.xlu1 %1944 }
 0x50c   : >> { %v6376_v58 = vsel %vm7866_vm14, %v6234_v7, %v6288_v18  ;;  %v2065_v7 = vsel %vm7763_vm13, %v6189_v40, %v6290_v53  ;;  %vm7868_vm14 = vcmask 867328   ;;  %v1532_v40 = vld [vmem:[#allocation3 + $0x68] sm:$0xff] }
 0x50e   : >> { %2310 = vmatpush1.bf16.msra.mxu0 %v1767_v35 }
 0x50f   : >> { %v6298_v59 = vpop.permute.xlu0 %1671  ;;  %2311 = vmatprep.subr.bf16.mxu0 %v1791_v16  ;;  %v6300_v28 = vpop.permute.xlu1 %1556 }
 0x510   : >> { %v6305_v13 = vsel %vm577_vm6, %v6191_v8, %v6300_v28 }
 0x511   : >> { %1958 = vrot.lane.b32.xlu0 %v6305_v13, %s7839_s12 }
 0x512   : >> { %2312 = vmatpush1.bf16.msra.mxu0 %v1790_v50 }
 0x513   : >> { %v6315_v44 = vpop.permute.xlu0 %1694  ;;  %2313 = vmatprep.subr.bf16.mxu0 %v1814_v25  ;;  %v6317_v15 = vpop.permute.xlu1 %1579  ;;  %v7864_v25 = vld [vmem:[#allocation34_spill] sm:$0xff] }
 0x514   : >> { %v6322_v8 = vsel %vm601_vm7, %v6198_v36, %v6317_v15 }
 0x515   : >> { %2036 = vrot.lane.b32.xlu0 %v6074_v14, %s7839_s12  ;;  %1972 = vrot.lane.b32.xlu1 %v6322_v8, %s7839_s12 }
 0x516   : >> { %2314 = vmatpush1.bf16.msra.mxu0 %v1813_v47 }
 0x517   : >> { %v6334_v35 = vpop.permute.xlu0 %1717  ;;  %2315 = vmatprep.subr.bf16.mxu0 %v1837_v42  ;;  %v6336_v36 = vpop.permute.xlu1 %1602 }
 0x518   : >> { %v6341_v14 = vsel %vm625_vm8, %v6207_v12, %v6336_v36  ;;  %v1922_v12 = vsel %vm7863_vm9, %v6200_v31, %v6278_v62  ;;  %v7865_v31 = vld [vmem:[#allocation32_spill] sm:$0xff]  ;;  %vm7867_vm9 = vcmask 875520  }
 0x519   : >> { %2040 = vrot.lane.b32.xlu1 %v1699_v29, %s7839_s12  ;;  %1986 = vrot.lane.b32.xlu0 %v6341_v14, %s7839_s12  ;;  %v6370_v47 = vcombine.high %v7865_v31, %v7864_v25 }
 0x51a   : >> { %2316 = vmatpush1.bf16.msra.mxu0 %v1836_v55 }
 0x51b   : >> { %v1953_v16 = vpop.permute.xlu0 %1952  ;;  %2317 = vmatprep.subr.bf16.mxu0 %v1860_v9  ;;  %v6352_v50 = vpop.permute.xlu1 %1954  ;;  %3936 = vmatprep.mubr.msk.bf16.mxu1 %vm7762_vm10, %v6370_v47 }
 0x51c   : >> { %v2069_v29 = vsel %vm7763_vm13, %v1953_v16, %v6352_v50 }
 0x51d   : >> { %2000 = vrot.lane.b32.xlu1 %v1922_v12, %s7839_s12  ;;  %2034 = vrot.lane.b32.xlu0 %v6078_v48, %s7839_s12 }
 0x51e   : >> { %2248 = vmatprep.subr.bf16.mxu1 %v2069_v29  ;;  %2318 = vmatpush1.bf16.msra.mxu0 %v1859_v61  ;;  %v6413_v61 = vsel %vm7868_vm14, %v6222_v56, %v6315_v44  ;;  %vm7870_vm14 = vcmask 891904  }
 0x51f   : >> { %v1951_v42 = vpop.permute.xlu0 %1950  ;;  %2319 = vmatprep.subr.bf16.mxu0 %v1886_v46  ;;  %v1967_v55 = vpop.permute.xlu1 %1966 }
 0x520   : >> { %v2068_v48 = vsel %vm7763_vm13, %v1951_v42, %v1953_v16 }
 0x521   : >> { %2050 = vrot.lane.b32.xlu1 %v6090_v37, %s7839_s12  ;;  %2014 = vrot.lane.b32.xlu0 %v6376_v58, %s7839_s12  ;;  %v6396_v37 = vsel %vm7867_vm9, %v6209_v5, %v6298_v59  ;;  %vm7869_vm9 = vcmask 859136  }
 0x522   : >> { %2249 = vmatpush1.bf16.msra.mxu1 %v2068_v48  ;;  %2320 = vmatpush1.bf16.msra.mxu0 %v1885_v22 }
 0x523   : >> { %v6390_v9 = vpop.permute.xlu0 %1968  ;;  %2332 = vmatprep.subr.bf16.mxu0 %v2065_v7  ;;  %v1965_v16 = vpop.permute.xlu1 %1964 }
 0x524   : >> { %v2074_v12 = vsel %vm7763_vm13, %v1965_v16, %v1967_v55  ;;  %v2075_v43 = vsel %vm7763_vm13, %v1967_v55, %v6390_v9  ;;  %v6427_v55 = vsel %vm7869_vm9, %v6236_v33, %v6334_v35  ;;  %vm7871_vm9 = vcmask 883712  }
 0x525   : >> { %2028 = vrot.lane.b32.xlu1 %v6396_v37, %s7839_s12  ;;  %2052 = vrot.lane.b32.xlu0 %v6272_v52, %s7839_s12 }
 0x526   : >> { %2250 = vmatprep.subr.bf16.mxu1 %v2075_v43  ;;  %2322 = vmatmul.mubr.bf16.vlgmr.msra.gmra.mrb[8].mxu0 %v6180_v32 }
 0x527   : >> { %2251 = vmatpush1.bf16.msra.mxu1 %v2074_v12  ;;  %2333 = vmatpush1.bf16.msra.mxu0 %v2064_v63  ;;  %v1981_v5 = vpop.permute.xlu0 %1980  ;;  %v6408_v29 = vpop.permute.xlu1 %1982 }
 0x528   : >> { %v2081_v52 = vsel %vm7763_vm13, %v1981_v5, %v6408_v29  ;;  %3937 = vmatprep.mubr.msk.bf16.mxu0 %vm7762_vm10, %v6370_v47 }
 0x529   : >> { %2048 = vrot.lane.b32.xlu1 %v6094_v54, %s7839_s12  ;;  %2042 = vrot.lane.b32.xlu0 %v6413_v61, %s7839_s12  ;;  %v1539_v54 = vpack.c.bf16 %v1532_v40, %v1525_v51 }
 0x52a   : >> { %2252 = vmatprep.subr.bf16.mxu1 %v2081_v52 }
 0x52b   : >> { %v1979_v46 = vpop.permute.xlu0 %1978  ;;  %v1995_v42 = vpop.permute.xlu1 %1994 }
 0x52c   : >> { %v2080_v56 = vsel %vm7763_vm13, %v1979_v46, %v1981_v5 }
 0x52d   : >> { %2056 = vrot.lane.b32.xlu1 %v6427_v55, %s7839_s12  ;;  %2054 = vrot.lane.b32.xlu0 %v6262_v21, %s7839_s12 }
 0x52e   : >> { %2253 = vmatpush1.bf16.msra.mxu1 %v2080_v56 }
 0x52f   : >> { %v6433_v48 = vpop.permute.xlu0 %1996  ;;  %v1993_v22 = vpop.permute.xlu1 %1992 }
 0x530   : >> { %v2086_v7 = vsel %vm7763_vm13, %v1993_v22, %v1995_v42  ;;  %v2087_v16 = vsel %vm7763_vm13, %v1995_v42, %v6433_v48 }
 0x531   : >> { %1898 = vrot.lane.b32.xlu1 %v1539_v54, %s7841_s16  ;;  %1895 = vrot.lane.b32.xlu0 %v1539_v54, %s7840_s23 }
 0x532   : >> { %2254 = vmatprep.subr.bf16.mxu1 %v2087_v16 }
 0x533   : >> { %2255 = vmatpush1.bf16.msra.mxu1 %v2086_v7  ;;  %v2009_v33 = vpop.permute.xlu0 %2008  ;;  %v6440_v12 = vpop.permute.xlu1 %2010 }
 0x534   : >> { %v2093_v21 = vsel %vm7763_vm13, %v2009_v33, %v6440_v12 }
 0x535   : >> { %1901 = vrot.lane.b32.xlu1 %v1539_v54, %s7829_s18  ;;  %1625 = vrot.lane.b32.xlu0 %v5996_v38, %s7842_s5 }
 0x536   : >> { %2256 = vmatprep.subr.bf16.mxu1 %v2093_v21 }
 0x537   : >> { %v2007_v43 = vpop.permute.xlu0 %2006  ;;  %v2023_v63 = vpop.permute.xlu1 %2022 }
 0x538   : >> { %v2092_v5 = vsel %vm7763_vm13, %v2007_v43, %v2009_v33 }
 0x539   : >> { %1924 = vrot.lane.b32.xlu1 %v1539_v54, %s7832_s1  ;;  %1916 = vrot.lane.b32.xlu0 %v1539_v54, %s7833_s2 }
 0x53a   : >> { %2257 = vmatpush1.bf16.msra.mxu1 %v2092_v5 }
 0x53b   : >> { %v6450_v52 = vpop.permute.xlu0 %2024  ;;  %v2021_v51 = vpop.permute.xlu1 %2020 }
 0x53c   : >> { %v2098_v40 = vsel %vm7763_vm13, %v2021_v51, %v2023_v63  ;;  %v2099_v46 = vsel %vm7763_vm13, %v2023_v63, %v6450_v52 }
 0x53d   : >> { %1930 = vrot.lane.b32.xlu1 %v1539_v54, %s7830_s14  ;;  %1927 = vrot.lane.b32.xlu0 %v1539_v54, %s7828_s26 }
 0x53e   : >> { %2258 = vmatprep.subr.bf16.mxu1 %v2099_v46 }
 0x53f   : >> { %2259 = vmatpush1.bf16.msra.mxu1 %v2098_v40 }
 0x541   : >> { %1933 = vrot.lane.b32.xlu1 %v1539_v54, %s7831_s20  ;;  %1740 = vrot.lane.b32.xlu0 %v5996_v38, %s7843_s6 }
 0x545   : >> { %1786 = vrot.lane.b32.xlu1 %v5996_v38, %s7834_s10  ;;  %1763 = vrot.lane.b32.xlu0 %v5996_v38, %s7844_s7 }
 0x549   : >> { %1832 = vrot.lane.b32.xlu1 %v5996_v38, %s7836_s0  ;;  %1809 = vrot.lane.b32.xlu0 %v5996_v38, %s7835_s24 }
 0x54d   : >> { %1879 = vrot.lane.b32.xlu1 %v5996_v38, %s7838_s4  ;;  %1855 = vrot.lane.b32.xlu0 %v5996_v38, %s7837_s3 }
 0x551   : >> { %1946 = vrot.lane.b32.xlu1 %v5996_v38, %s7839_s12  ;;  %1881 = vrot.lane.b32.xlu0 %v1539_v54, %s7838_s4 }
 0x555   : >> { %1948 = vrot.lane.b32.xlu0 %v1539_v54, %s7839_s12 }
 0x55b   : >> { %v1957_v56 = vpop.permute.xlu1 %1956 }
 0x55c   : >> { %v2070_v5 = vsel %vm7763_vm13, %v6352_v50, %v1957_v56 }
 0x55f   : >> { %v1971_v42 = vpop.permute.xlu0 %1970 }
 0x560   : >> { %v2076_v1 = vsel %vm7763_vm13, %v6390_v9, %v1971_v42 }
 0x563   : >> { %v1985_v7 = vpop.permute.xlu1 %1984 }
 0x564   : >> { %v1999_v22 = vpop.permute.xlu0 %1998 }
 0x568   : >> { %v2027_v33 = vpop.permute.xlu0 %2026 }
 0x56b   : >> { %v2013_v16 = vpop.permute.xlu1 %2012 }
 0x56f   : >> { %v2039_v21 = vpop.permute.xlu1 %2038 }
 0x583   : >> { %v6476_v43 = vpop.permute.xlu0 %1958 }
 0x584   : >> { %v2071_v63 = vsel %vm7763_vm13, %v1957_v56, %v6476_v43  ;;  %v2082_v56 = vsel %vm7763_vm13, %v6408_v29, %v1985_v7 }
 0x585   : >> { %2334 = vmatprep.subr.bf16.mxu0 %v2071_v63 }
 0x586   : >> { %2335 = vmatpush1.bf16.msra.mxu0 %v2070_v5 }
 0x587   : >> { %v2037_v51 = vpop.permute.xlu0 %2036  ;;  %v6482_v40 = vpop.permute.xlu1 %1972 }
 0x588   : >> { %v2105_v54 = vsel %vm7763_vm13, %v2037_v51, %v2039_v21  ;;  %v2077_v46 = vsel %vm7763_vm13, %v1971_v42, %v6482_v40 }
 0x589   : >> { %2260 = vmatprep.subr.bf16.mxu1 %v2105_v54  ;;  %2336 = vmatprep.subr.bf16.mxu0 %v2077_v46 }
 0x58a   : >> { %2337 = vmatpush1.bf16.msra.mxu0 %v2076_v1  ;;  %v2088_v1 = vsel %vm7763_vm13, %v6433_v48, %v1999_v22 }
 0x58b   : >> { %v6489_v2 = vpop.permute.xlu0 %1986  ;;  %v2041_v63 = vpop.permute.xlu1 %2040 }
 0x58c   : >> { %v2083_v50 = vsel %vm7763_vm13, %v1985_v7, %v6489_v2  ;;  %v2094_v7 = vsel %vm7763_vm13, %v6440_v12, %v2013_v16 }
 0x58d   : >> { %2338 = vmatprep.subr.bf16.mxu0 %v2083_v50 }
 0x58e   : >> { %2339 = vmatpush1.bf16.msra.mxu0 %v2082_v56 }
 0x58f   : >> { %v2035_v5 = vpop.permute.xlu0 %2034  ;;  %v6495_v3 = vpop.permute.xlu1 %2000 }
 0x590   : >> { %v2104_v54 = vsel %vm7763_vm13, %v2035_v5, %v2037_v51  ;;  %v2089_v9 = vsel %vm7763_vm13, %v1999_v22, %v6495_v3  ;;  %v2100_v22 = vsel %vm7763_vm13, %v6450_v52, %v2027_v33 }
 0x591   : >> { %2261 = vmatpush1.bf16.msra.mxu1 %v2104_v54  ;;  %2340 = vmatprep.subr.bf16.mxu0 %v2089_v9  ;;  %v6522_v9 = vcombine.low %v7865_v31, %v7864_v25 }
 0x592   : >> { %2341 = vmatpush1.bf16.msra.mxu0 %v2088_v1  ;;  %v2106_v1 = vsel %vm7763_vm13, %v2039_v21, %v2041_v63 }
 0x593   : >> { %v6502_v42 = vpop.permute.xlu0 %2014  ;;  %v2051_v46 = vpop.permute.xlu1 %2050 }
 0x594   : >> { %v2095_v29 = vsel %vm7763_vm13, %v2013_v16, %v6502_v42 }
 0x595   : >> { %2342 = vmatprep.subr.bf16.mxu0 %v2095_v29 }
 0x596   : >> { %2343 = vmatpush1.bf16.msra.mxu0 %v2094_v7 }
 0x597   : >> { %v2053_v51 = vpop.permute.xlu0 %2052  ;;  %v6508_v50 = vpop.permute.xlu1 %2028 }
 0x598   : >> { %v2111_v56 = vsel %vm7763_vm13, %v2051_v46, %v2053_v51  ;;  %v2101_v48 = vsel %vm7763_vm13, %v2027_v33, %v6508_v50 }
 0x599   : >> { %2262 = vmatprep.subr.bf16.mxu1 %v2111_v56  ;;  %2344 = vmatprep.subr.bf16.mxu0 %v2101_v48  ;;  %v2561_v48 = vld [vmem:[#allocation4 + $0x30] sm:$0xff] }
 0x59a   : >> { %2345 = vmatpush1.bf16.msra.mxu0 %v2100_v22  ;;  %v2568_v22 = vld [vmem:[#allocation4 + $0x68] sm:$0xff] }
 0x59b   : >> { %v6515_v5 = vpop.permute.xlu0 %2042  ;;  %v2049_v54 = vpop.permute.xlu1 %2048 }
 0x59c   : >> { %v2110_v12 = vsel %vm7763_vm13, %v2049_v54, %v2051_v46  ;;  %v2107_v16 = vsel %vm7763_vm13, %v2041_v63, %v6515_v5  ;;  %v7876_v54 = vld [vmem:[#allocation39_spill] sm:$0xff] }
 0x59d   : >> { %2263 = vmatpush1.bf16.msra.mxu1 %v2110_v12  ;;  %2346 = vmatprep.subr.bf16.mxu0 %v2107_v16  ;;  %v6587_v12 = vpack.c.bf16 %v2568_v22, %v2561_v48 }
 0x59e   : >> { %2347 = vmatpush1.bf16.msra.mxu0 %v2106_v1  ;;  %2375 = vmatprep.subr.bf16.mxu1 %v5996_v38 }
 0x59f   : >> { %v2055_v52 = vpop.permute.xlu0 %2054  ;;  %v6526_v33 = vpop.permute.xlu1 %2056 }
 0x5a0   : >> { %2279 = vmatmul.mubr.bf16.vlgmr.msra.gmra.mrb[4].mxu1 %v6522_v9  ;;  %v2113_v46 = vsel %vm7763_vm13, %v2055_v52, %v6526_v33  ;;  %v2112_v29 = vsel %vm7763_vm13, %v2053_v51, %v2055_v52 }
 0x5a1   : >> { %2348 = vmatprep.subr.bf16.mxu0 %v2113_v46  ;;  %2376 = vmatpush1.bf16.msra.mxu1 %v5814_v41 }
 0x5a2   : >> { %2349 = vmatpush1.bf16.msra.mxu0 %v2112_v29  ;;  %2377 = vmatprep.subr.bf16.mxu1 %v6300_v28 }
 0x5a3   : >> { %v1896_v21 = vpop.permute.xlu0 %1895  ;;  %v1899_v63 = vpop.permute.xlu1 %1898  ;;  %2407 = vmatprep.mubr.bf16.mxu1 %v5912_v30 }
 0x5a4   : >> { %1962 = vrot.lane.b32.xlu0 %v1896_v21, %s7839_s12  ;;  %v1897_v38 = vsel %vm577_vm6, %v6300_v28, %v1896_v21  ;;  %v1900_v7 = vsel %vm601_vm7, %v6317_v15, %v1899_v63 }
 0x5a5   : >> { %1960 = vrot.lane.b32.xlu1 %v1897_v38, %s7839_s12  ;;  %2365 = vmatmul.mubr.bf16.vlgmr.msra.gmra.mrb[8].mxu0 %v6522_v9 }
 0x5a6   : >> { %2378 = vmatpush1.bf16.msra.mxu1 %v6305_v13 }
 0x5a7   : >> { %2379 = vmatprep.subr.bf16.mxu1 %v6317_v15  ;;  %v1626_v41 = vpop.permute.xlu0 %1625  ;;  %v1902_v30 = vpop.permute.xlu1 %1901 }
 0x5a8   : >> { %1976 = vrot.lane.b32.xlu0 %v1899_v63, %s7839_s12  ;;  %v1903_v28 = vsel %vm625_vm8, %v6336_v36, %v1902_v30 }
 0x5a9   : >> { %1974 = vrot.lane.b32.xlu1 %v1900_v7, %s7839_s12 }
 0x5aa   : >> { %2380 = vmatpush1.bf16.msra.mxu1 %v6322_v8  ;;  %v1631_v8 = vsel %vm643_vm1, %v6220_v20, %v1626_v41 }
 0x5ab   : >> { %2381 = vmatprep.subr.bf16.mxu1 %v6336_v36  ;;  %v1917_v13 = vpop.permute.xlu0 %1916  ;;  %v1925_v51 = vpop.permute.xlu1 %1924 }
 0x5ac   : >> { %1990 = vrot.lane.b32.xlu0 %v1902_v30, %s7839_s12  ;;  %v1923_v15 = vsel %vm7870_vm14, %v6278_v62, %v1917_v13  ;;  %v1926_v36 = vsel %vm7871_vm9, %v6288_v18, %v1925_v51  ;;  %vm7872_vm14 = vcmask 875520   ;;  %vm7873_vm9 = vcmask 867328  }
 0x5ad   : >> { %1988 = vrot.lane.b32.xlu1 %v1903_v28, %s7839_s12 }
 0x5ae   : >> { %2382 = vmatpush1.bf16.msra.mxu1 %v6341_v14 }
 0x5af   : >> { %2383 = vmatprep.subr.bf16.mxu1 %v1626_v41  ;;  %v1928_v14 = vpop.permute.xlu0 %1927  ;;  %v1931_v62 = vpop.permute.xlu1 %1930 }
 0x5b0   : >> { %2004 = vrot.lane.b32.xlu0 %v1917_v13, %s7839_s12  ;;  %v1929_v20 = vsel %vm7872_vm14, %v6298_v59, %v1928_v14  ;;  %vm7874_vm14 = vcmask 859136  }
 0x5b1   : >> { %2002 = vrot.lane.b32.xlu1 %v1923_v15, %s7839_s12 }
 0x5b2   : >> { %2384 = vmatpush1.bf16.msra.mxu1 %v1631_v8 }
 0x5b3   : >> { %2385 = vmatprep.subr.bf16.mxu1 %v6288_v18  ;;  %v1932_v18 = vsel %vm7873_vm9, %v6315_v44, %v1931_v62  ;;  %v1934_v56 = vpop.permute.xlu1 %1933  ;;  %vm7878_vm9 = vcmask 343040  }
 0x5b4   : >> { %2018 = vrot.lane.b32.xlu0 %v1925_v51, %s7839_s12 }
 0x5b5   : >> { %2016 = vrot.lane.b32.xlu1 %v1926_v36, %s7839_s12 }
 0x5b6   : >> { %2386 = vmatpush1.bf16.msra.mxu1 %v6376_v58  ;;  %v1741_v58 = vpop.permute.xlu0 %1740 }
 0x5b7   : >> { %2387 = vmatprep.subr.bf16.mxu1 %v6298_v59  ;;  %v1935_v59 = vsel %vm7874_vm14, %v6334_v35, %v1934_v56  ;;  %v1787_v16 = vpop.permute.xlu1 %1786  ;;  %vm7879_vm14 = vmmov %vm7878_vm9 }
 0x5b8   : >> { %2032 = vrot.lane.b32.xlu0 %v1928_v14, %s7839_s12 }
 0x5b9   : >> { %2030 = vrot.lane.b32.xlu1 %v1929_v20, %s7839_s12 }
 0x5ba   : >> { %2388 = vmatpush1.bf16.msra.mxu1 %v6396_v37  ;;  %v1764_v37 = vpop.permute.xlu0 %1763 }
 0x5bb   : >> { %2389 = vmatprep.subr.bf16.mxu1 %v6315_v44  ;;  %v7875_v44 = vld [vmem:[#allocation40_spill] sm:$0xff] }
 0x5bc   : >> { %2046 = vrot.lane.b32.xlu0 %v1931_v62, %s7839_s12 }
 0x5bd   : >> { %2044 = vrot.lane.b32.xlu1 %v1932_v18, %s7839_s12 }
 0x5be   : >> { %2390 = vmatpush1.bf16.msra.mxu1 %v6413_v61  ;;  %v1746_v61 = vsel %vm733_vm2, %v6245_v27, %v1741_v58  ;;  %v1792_v27 = vsel %vm769_vm4, %v6243_v19, %v1787_v16 }
 0x5bf   : >> { %2391 = vmatprep.subr.bf16.mxu1 %v6334_v35  ;;  %v1810_v35 = vpop.permute.xlu0 %1809 }
 0x5c0   : >> { %2060 = vrot.lane.b32.xlu0 %v1934_v56, %s7839_s12  ;;  %v1815_v52 = vsel %vm787_vm5, %v6267_v26, %v1810_v35 }
 0x5c1   : >> { %2058 = vrot.lane.b32.xlu1 %v1935_v59, %s7839_s12 }
 0x5c2   : >> { %2392 = vmatpush1.bf16.msra.mxu1 %v6427_v55  ;;  %v1769_v55 = vsel %vm751_vm3, %v6257_v45, %v1764_v37  ;;  %v1833_v45 = vpop.permute.xlu1 %1832 }
 0x5c3   : >> { %2393 = vmatprep.subr.bf16.mxu1 %v1741_v58  ;;  %v1856_v1 = vpop.permute.xlu0 %1855  ;;  %v1838_v19 = vsel %vm805_vm0, %v6255_v60, %v1833_v45 }
 0x5c4   : >> { %2177 = vperm.xlu0 %4158, %v7875_v44   ;;  %v1861_v21 = vsel %vm823_vm12, %v6280_v0, %v1856_v1 }
 0x5c5   : >> { %2172 = vperm.xlu1 %4159, %v7876_v54  }
 0x5c6   : >> { %2394 = vmatpush1.bf16.msra.mxu1 %v1746_v61  ;;  %v1880_v29 = vpop.permute.xlu1 %1879 }
 0x5c7   : >> { %2395 = vmatprep.subr.bf16.mxu1 %v1764_v37  ;;  %v1882_v46 = vpop.permute.xlu0 %1881  ;;  %v1887_v41 = vsel %vm845_vm15, %v6264_v23, %v1880_v29 }
 0x5c8   : >> { %2931 = vrot.lane.b32.xlu0 %v6587_v12, %s7840_s23  ;;  %v1888_v26 = vsel %vm845_vm15, %v1880_v29, %v1882_v46 }
 0x5c9   : >> { %2934 = vrot.lane.b32.xlu1 %v6587_v12, %s7841_s16 }
 0x5ca   : >> { %2396 = vmatpush1.bf16.msra.mxu1 %v1769_v55  ;;  %v1947_v38 = vpop.permute.xlu1 %1946 }
 0x5cb   : >> { %2397 = vmatprep.subr.bf16.mxu1 %v1787_v16  ;;  %v1949_v63 = vpop.permute.xlu0 %1948  ;;  %v2066_v7 = vsel %vm7763_vm13, %v6290_v53, %v1947_v38 }
 0x5cc   : >> { %2952 = vrot.lane.b32.xlu0 %v6587_v12, %s7833_s2  ;;  %v2067_v60 = vsel %vm7763_vm13, %v1947_v38, %v1949_v63 }
 0x5cd   : >> { %2937 = vrot.lane.b32.xlu1 %v6587_v12, %s7829_s18 }
 0x5ce   : >> { %2398 = vmatpush1.bf16.msra.mxu1 %v1792_v27 }
 0x5cf   : >> { %2399 = vmatprep.subr.bf16.mxu1 %v1810_v35 }
 0x5d0   : >> { %2963 = vrot.lane.b32.xlu0 %v6587_v12, %s7828_s26 }
 0x5d1   : >> { %2960 = vrot.lane.b32.xlu1 %v6587_v12, %s7832_s1 }
 0x5d2   : >> { %2400 = vmatpush1.bf16.msra.mxu1 %v1815_v52 }
 0x5d3   : >> { %2401 = vmatprep.subr.bf16.mxu1 %v1833_v45 }
 0x5d5   : >> { %2966 = vrot.lane.b32.xlu1 %v6587_v12, %s7830_s14 }
 0x5d6   : >> { %2402 = vmatpush1.bf16.msra.mxu1 %v1838_v19 }
 0x5d7   : >> { %2403 = vmatprep.subr.bf16.mxu1 %v1856_v1 }
 0x5da   : >> { %2404 = vmatpush1.bf16.msra.mxu1 %v1861_v21 }
 0x5db   : >> { %2405 = vmatprep.subr.bf16.mxu1 %v1888_v26 }
 0x5de   : >> { %2406 = vmatpush1.bf16.msra.mxu1 %v1887_v41 }
 0x5df   : >> { %2418 = vmatprep.subr.bf16.mxu1 %v2067_v60 }
 0x5e1   : >> { %2408 = vmatmul.mubr.bf16.vlgmr.msra.gmra.mrb[8].mxu1 %v6180_v32 }
 0x5e2   : >> { %2419 = vmatpush1.bf16.msra.mxu1 %v2066_v7  ;;  %3938 = vmatprep.mubr.msk.bf16.mxu1 %vm7762_vm10, %v6370_v47  ;;  %vm7880_vm10 = vmmov %vm7878_vm9 }
 0x616   : >> { %v1963_v0 = vpop.permute.xlu0 %1962 }
 0x617   : >> { %v1961_v30 = vpop.permute.xlu1 %1960 }
 0x618   : >> { %v2073_v28 = vsel %vm7763_vm13, %v1961_v30, %v1963_v0  ;;  %v2072_v23 = vsel %vm7763_vm13, %v6476_v43, %v1961_v30 }
 0x619   : >> { %2420 = vmatprep.subr.bf16.mxu1 %v2073_v28 }
 0x61a   : >> { %v1977_v13 = vpop.permute.xlu0 %1976  ;;  %2421 = vmatpush1.bf16.msra.mxu1 %v2072_v23 }
 0x61b   : >> { %v1975_v15 = vpop.permute.xlu1 %1974 }
 0x61c   : >> { %v2079_v32 = vsel %vm7763_vm13, %v1975_v15, %v1977_v13  ;;  %v2078_v53 = vsel %vm7763_vm13, %v6482_v40, %v1975_v15 }
 0x61d   : >> { %2422 = vmatprep.subr.bf16.mxu1 %v2079_v32 }
 0x61e   : >> { %v1991_v51 = vpop.permute.xlu0 %1990  ;;  %2423 = vmatpush1.bf16.msra.mxu1 %v2078_v53 }
 0x61f   : >> { %v1989_v47 = vpop.permute.xlu1 %1988 }
 0x620   : >> { %v2085_v8 = vsel %vm7763_vm13, %v1989_v47, %v1991_v51  ;;  %v2084_v36 = vsel %vm7763_vm13, %v6489_v2, %v1989_v47 }
 0x621   : >> { %2424 = vmatprep.subr.bf16.mxu1 %v2085_v8 }
 0x622   : >> { %v2005_v43 = vpop.permute.xlu0 %2004  ;;  %2425 = vmatpush1.bf16.msra.mxu1 %v2084_v36 }
 0x623   : >> { %v2003_v14 = vpop.permute.xlu1 %2002 }
 0x624   : >> { %v2091_v62 = vsel %vm7763_vm13, %v2003_v14, %v2005_v43  ;;  %v2090_v20 = vsel %vm7763_vm13, %v6495_v3, %v2003_v14 }
 0x625   : >> { %2426 = vmatprep.subr.bf16.mxu1 %v2091_v62 }
 0x626   : >> { %v2019_v40 = vpop.permute.xlu0 %2018  ;;  %2427 = vmatpush1.bf16.msra.mxu1 %v2090_v20 }
 0x627   : >> { %v2017_v18 = vpop.permute.xlu1 %2016 }
 0x628   : >> { %v2097_v58 = vsel %vm7763_vm13, %v2017_v18, %v2019_v40  ;;  %v2096_v56 = vsel %vm7763_vm13, %v6502_v42, %v2017_v18 }
 0x629   : >> { %2428 = vmatprep.subr.bf16.mxu1 %v2097_v58 }
 0x62a   : >> { %v2033_v2 = vpop.permute.xlu0 %2032  ;;  %2429 = vmatpush1.bf16.msra.mxu1 %v2096_v56 }
 0x62b   : >> { %v2031_v59 = vpop.permute.xlu1 %2030 }
 0x62c   : >> { %v2103_v37 = vsel %vm7763_vm13, %v2031_v59, %v2033_v2  ;;  %v2102_v44 = vsel %vm7763_vm13, %v6508_v50, %v2031_v59 }
 0x62d   : >> { %2430 = vmatprep.subr.bf16.mxu1 %v2103_v37 }
 0x62e   : >> { %v2047_v3 = vpop.permute.xlu0 %2046  ;;  %2431 = vmatpush1.bf16.msra.mxu1 %v2102_v44 }
 0x62f   : >> { %v2045_v48 = vpop.permute.xlu1 %2044 }
 0x630   : >> { %v2109_v22 = vsel %vm7763_vm13, %v2045_v48, %v2047_v3  ;;  %v2108_v61 = vsel %vm7763_vm13, %v6515_v5, %v2045_v48 }
 0x631   : >> { %2432 = vmatprep.subr.bf16.mxu1 %v2109_v22 }
 0x632   : >> { %v2061_v42 = vpop.permute.xlu0 %2060  ;;  %2433 = vmatpush1.bf16.msra.mxu1 %v2108_v61 }
 0x633   : >> { %v2059_v54 = vpop.permute.xlu1 %2058 }
 0x634   : >> { %v2115_v35 = vsel %vm7763_vm13, %v2059_v54, %v2061_v42  ;;  %v2114_v55 = vsel %vm7763_vm13, %v6526_v33, %v2059_v54  ;;  %vm7881_vm13 = vmmov %vm7878_vm9 }
 0x635   : >> { %2434 = vmatprep.subr.bf16.mxu1 %v2115_v35 }
 0x636   : >> { %2435 = vmatpush1.bf16.msra.mxu1 %v2114_v55 }
 0x639   : >> { %2451 = vmatmul.mubr.bf16.vlgmr.msra.gmra.mrb[8].mxu1 %v6522_v9 }
 0x643   : >> { %v6650_v5 = vpop.permute.xlu0 %2177 }
 0x644   : >> { %v6647_v50 = vpop.permute.xlu1 %2172 }
 0x647   : >> { %v6679_v18 = vpop.permute.xlu0 %2931 }
 0x648   : >> { %v6675_v20 = vpop.permute.xlu1 %2934 }
 0x64b   : >> { %v6683_v56 = vpop.permute.xlu0 %2952 }
 0x64c   : >> { %v6677_v40 = vpop.permute.xlu1 %2937 }
 0x64f   : >> { %v6687_v59 = vpop.permute.xlu0 %2963 }
 0x650   : >> { %v6681_v58 = vpop.permute.xlu1 %2960 }
 0x654   : >> { %v6685_v2 = vpop.permute.xlu1 %2966 }
 0x673   : >> { %v2280_v16 = vpop.f32.mrb[4].mxu1 }
 0x674   : >> { %v3955_v27 = vadd.f32 %v2280_v16, %v6647_v50  ;;  %v2282_v1 = vpop.f32.mrb[5].mxu1 }
 0x675   : >> { %v3956_v45 = vadd.f32 %v2282_v1, %v6647_v50  ;;  %v2284_v52 = vpop.f32.mrb[6].mxu1 }
 0x676   : >> { %v2461_v46 = vmax.f32 %v3955_v27, 0.0  ;;  %v3957_v19 = vadd.f32 %v2284_v52, %v6650_v5  ;;  %v2286_v29 = vpop.f32.mrb[7].mxu1 }
 0x677   : >> { %v2462_v33 = vmax.f32 %v3956_v45, 0.0  ;;  %v3958_v21 = vadd.f32 %v2286_v29, %v6650_v5 }
 0x678   : >> { %v2473_v9 = vmul.f32 %v2461_v46, %v5731_v24  ;;  %v2366_v26 = vpop.f32.mrb[8].mxu0  ;;  %v2467_v38 = vmax.f32 %v3957_v19, 0.0 }
 0x679   : >> { %v2474_v63 = vmul.f32 %v2462_v33, %v5734_v39  ;;  %v2468_v41 = vmax.f32 %v3958_v21, 0.0  ;;  %v3959_v60 = vadd.f32 %v2366_v26, %v6647_v50  ;;  %v2368_v7 = vpop.f32.mrb[9].mxu0 }
 0x67a   : >> { %v2370_v0 = vpop.f32.mrb[10].mxu0  ;;  %2497 = vrot.lane.b32.xlu1 %v2473_v9, %s7877_s21  ;;  %v3960_v15 = vadd.f32 %v2368_v7, %v6647_v50  ;;  %v2479_v32 = vmul.f32 %v2467_v38, %v5731_v24 }
 0x67b   : >> { %v2480_v30 = vmul.f32 %v2468_v41, %v5734_v39  ;;  %v3961_v28 = vadd.f32 %v2370_v0, %v6650_v5  ;;  %v2372_v23 = vpop.f32.mrb[11].mxu0  ;;  %2499 = vrot.lane.b32.xlu0 %v2474_v63, %s7877_s21  ;;  %v2463_v13 = vmax.f32 %v3959_v60, 0.0 }
 0x67c   : >> { %v3962_v51 = vadd.f32 %v2372_v23, %v6650_v5  ;;  %v2464_v8 = vmax.f32 %v3960_v15, 0.0 }
 0x67d   : >> { %v2469_v53 = vmax.f32 %v3961_v28, 0.0  ;;  %v2475_v47 = vmul.f32 %v2463_v13, %v5745_v34 }
 0x67e   : >> { %2511 = vrot.lane.b32.xlu1 %v2480_v30, %s7877_s21  ;;  %v2470_v43 = vmax.f32 %v3962_v51, 0.0  ;;  %v2476_v14 = vmul.f32 %v2464_v8, %v5749_v49 }
 0x67f   : >> { %2509 = vrot.lane.b32.xlu0 %v2479_v32, %s7877_s21  ;;  %v2481_v36 = vmul.f32 %v2469_v53, %v5745_v34 }
 0x680   : >> { %v2482_v62 = vmul.f32 %v2470_v43, %v5749_v49 }
 0x682   : >> { %2501 = vrot.lane.b32.xlu1 %v2475_v47, %s7877_s21 }
 0x683   : >> { %2513 = vrot.lane.b32.xlu0 %v2481_v36, %s7877_s21 }
 0x686   : >> { %2503 = vrot.lane.b32.xlu1 %v2476_v14, %s7877_s21 }
 0x687   : >> { %2515 = vrot.lane.b32.xlu0 %v2482_v62, %s7877_s21 }
 0x6ec   : >> { %v2498_v37 = vpop.permute.xlu1 %2497 }
 0x6ed   : >> { %2543 = vst.msk [vmem:[#allocation4] sm:$0xff] %vm1505_vm11, %v2498_v37  ;;  %v2500_v44 = vpop.permute.xlu0 %2499 }
 0x6ee   : >> { %v2521_v3 = vsel %vm7878_vm9, %v2498_v37, %v2500_v44 }
 0x6f0   : >> { %v2512_v48 = vpop.permute.xlu1 %2511 }
 0x6f1   : >> { %v2510_v22 = vpop.permute.xlu0 %2509 }
 0x6f2   : >> { %v2526_v61 = vsel %vm7879_vm14, %v2510_v22, %v2512_v48  ;;  %2549 = vst.msk [vmem:[#allocation4 + $0x38] sm:$0xff] %vm1505_vm11, %v2510_v22  ;;  %vm7882_vm11 = vmmov %vm7878_vm9 }
 0x6f3   : >> { %v6693_v42 = vpack.c.bf16 %v2526_v61, %v2521_v3  ;;  %vm7885_vm14 = vmmov %vm7878_vm9  ;;  %v7889_v3 = vld [vmem:[#allocation35_spill] sm:$0xff] }
 0x6f4   : >> { %v2502_v54 = vpop.permute.xlu1 %2501  ;;  %v2555_v1 = vld [vmem:[#allocation4] sm:$0xff] }
 0x6f5   : >> { %v2522_v35 = vsel %vm7880_vm10, %v2500_v44, %v2502_v54  ;;  %v2514_v55 = vpop.permute.xlu0 %2513  ;;  %3227 = vmatprep.subr.bf16.mxu0 %v6693_v42  ;;  %vm7884_vm10 = vmmov %vm7878_vm9 }
 0x6f6   : >> { %v2527_v16 = vsel %vm7881_vm13, %v2512_v48, %v2514_v55  ;;  %vm7883_vm13 = vmmov %vm7878_vm9  ;;  %v6837_v48 = vcombine.high %v7889_v3, %v7889_v3 }
 0x6f7   : >> { %v6708_v21 = vpack.c.bf16 %v2527_v16, %v2522_v35 }
 0x6f8   : >> { %v6698_v27 = vpop.permute.xlu1 %2503  ;;  %3259 = vmatprep.mubr.bf16.mxu0 %v6837_v48  ;;  %3341 = vmatprep.mubr.bf16.mxu1 %v6837_v48 }
 0x6f9   : >> { %v2562_v45 = vld [vmem:[#allocation4 + $0x38] sm:$0xff]  ;;  %v2523_v52 = vsel %vm7878_vm9, %v2502_v54, %v6698_v27  ;;  %v6702_v46 = vpop.permute.xlu0 %2515  ;;  %vm7886_vm9 = vcmask 965632  }
 0x6fa   : >> { %v2569_v19 = vpack.c.bf16 %v2562_v45, %v2555_v1  ;;  %v2528_v29 = vsel %vm7882_vm11, %v2514_v55, %v6702_v46  ;;  %vm7887_vm11 = vmmov %vm7884_vm10 }
 0x6fb   : >> { %v6706_v33 = vpack.c.bf16 %v2528_v29, %v2523_v52 }
 0x6fc   : >> { %3228 = vmatpush1.bf16.msra.mxu0 %v2569_v19 }
 0x6fd   : >> { %3309 = vmatprep.subr.bf16.mxu1 %v6706_v33 }
 0x6fe   : >> { %3310 = vmatpush1.bf16.msra.mxu1 %v6708_v21 }
 0x70c   : >> { %v2452_v9 = vpop.f32.mrb[8].mxu1 }
 0x70d   : >> { %v3963_v26 = vadd.f32 %v2452_v9, %v6647_v50  ;;  %v2454_v63 = vpop.f32.mrb[9].mxu1 }
 0x70e   : >> { %v3964_v38 = vadd.f32 %v2454_v63, %v6647_v50  ;;  %v2456_v41 = vpop.f32.mrb[10].mxu1 }
 0x70f   : >> { %v2465_v60 = vmax.f32 %v3963_v26, 0.0  ;;  %v3965_v7 = vadd.f32 %v2456_v41, %v6650_v5  ;;  %v2458_v0 = vpop.f32.mrb[11].mxu1 }
 0x710   : >> { %v3966_v30 = vadd.f32 %v2458_v0, %v6650_v5  ;;  %v2466_v23 = vmax.f32 %v3964_v38, 0.0 }
 0x711   : >> { %v2477_v28 = vmul.f32 %v2465_v60, %v5754_v17  ;;  %v2471_v13 = vmax.f32 %v3965_v7, 0.0 }
 0x712   : >> { %v2472_v32 = vmax.f32 %v3966_v30, 0.0  ;;  %v2478_v53 = vmul.f32 %v2466_v23, %v5768_v57 }
 0x713   : >> { %v2483_v15 = vmul.f32 %v2471_v13, %v5754_v17  ;;  %2505 = vrot.lane.b32.xlu1 %v2477_v28, %s7877_s21 }
 0x714   : >> { %v2484_v50 = vmul.f32 %v2472_v32, %v5768_v57 }
 0x715   : >> { %2517 = vrot.lane.b32.xlu0 %v2483_v15, %s7877_s21 }
 0x717   : >> { %2507 = vrot.lane.b32.xlu1 %v2478_v53, %s7877_s21 }
 0x719   : >> { %2519 = vrot.lane.b32.xlu0 %v2484_v50, %s7877_s21 }
 0x71b   : >> { %2582 = vrot.lane.b32.xlu1 %v2569_v19, %s7840_s23 }
 0x71d   : >> { %2674 = vrot.lane.b32.xlu0 %v2569_v19, %s7832_s1 }
 0x71f   : >> { %2605 = vrot.lane.b32.xlu1 %v2569_v19, %s7841_s16 }
 0x721   : >> { %2940 = vrot.lane.b32.xlu0 %v2569_v19, %s7833_s2 }
 0x723   : >> { %2628 = vrot.lane.b32.xlu1 %v2569_v19, %s7829_s18 }
 0x725   : >> { %2697 = vrot.lane.b32.xlu0 %v2569_v19, %s7828_s26 }
 0x727   : >> { %2651 = vrot.lane.b32.xlu1 %v2569_v19, %s7842_s5 }
 0x729   : >> { %2720 = vrot.lane.b32.xlu0 %v2569_v19, %s7830_s14 }
 0x72b   : >> { %2789 = vrot.lane.b32.xlu1 %v2569_v19, %s7844_s7 }
 0x72d   : >> { %2743 = vrot.lane.b32.xlu0 %v2569_v19, %s7831_s20 }
 0x72f   : >> { %2835 = vrot.lane.b32.xlu1 %v2569_v19, %s7835_s24 }
 0x731   : >> { %2766 = vrot.lane.b32.xlu0 %v2569_v19, %s7843_s6 }
 0x733   : >> { %2881 = vrot.lane.b32.xlu1 %v2569_v19, %s7837_s3 }
 0x735   : >> { %2812 = vrot.lane.b32.xlu0 %v2569_v19, %s7834_s10 }
 0x737   : >> { %2972 = vrot.lane.b32.xlu1 %v2569_v19, %s7839_s12 }
 0x739   : >> { %2858 = vrot.lane.b32.xlu0 %v2569_v19, %s7836_s0 }
 0x73b   : >> { %2584 = vrot.lane.b32.xlu1 %v6693_v42, %s7840_s23 }
 0x73d   : >> { %2905 = vrot.lane.b32.xlu0 %v2569_v19, %s7838_s4 }
 0x73f   : >> { %2942 = vrot.lane.b32.xlu1 %v6693_v42, %s7833_s2 }
 0x741   : >> { %2607 = vrot.lane.b32.xlu0 %v6693_v42, %s7841_s16 }
 0x743   : >> { %2699 = vrot.lane.b32.xlu1 %v6693_v42, %s7828_s26 }
 0x745   : >> { %2630 = vrot.lane.b32.xlu0 %v6693_v42, %s7829_s18 }
 0x747   : >> { %2722 = vrot.lane.b32.xlu1 %v6693_v42, %s7830_s14 }
 0x749   : >> { %2653 = vrot.lane.b32.xlu0 %v6693_v42, %s7842_s5 }
 0x74b   : >> { %2745 = vrot.lane.b32.xlu1 %v6693_v42, %s7831_s20 }
 0x74d   : >> { %2676 = vrot.lane.b32.xlu0 %v6693_v42, %s7832_s1 }
 0x74f   : >> { %2768 = vrot.lane.b32.xlu1 %v6693_v42, %s7843_s6 }
 0x751   : >> { %2814 = vrot.lane.b32.xlu0 %v6693_v42, %s7834_s10 }
 0x753   : >> { %2791 = vrot.lane.b32.xlu1 %v6693_v42, %s7844_s7 }
 0x755   : >> { %2860 = vrot.lane.b32.xlu0 %v6693_v42, %s7836_s0 }
 0x757   : >> { %2837 = vrot.lane.b32.xlu1 %v6693_v42, %s7835_s24 }
 0x759   : >> { %2907 = vrot.lane.b32.xlu0 %v6693_v42, %s7838_s4 }
 0x75b   : >> { %2883 = vrot.lane.b32.xlu1 %v6693_v42, %s7837_s3 }
 0x75d   : >> { %2586 = vrot.lane.b32.xlu0 %v6708_v21, %s7840_s23 }
 0x75f   : >> { %2974 = vrot.lane.b32.xlu1 %v6693_v42, %s7839_s12 }
 0x761   : >> { %2944 = vrot.lane.b32.xlu0 %v6708_v21, %s7833_s2 }
 0x763   : >> { %2609 = vrot.lane.b32.xlu1 %v6708_v21, %s7841_s16 }
 0x765   : >> { %2701 = vrot.lane.b32.xlu0 %v6708_v21, %s7828_s26 }
 0x767   : >> { %2632 = vrot.lane.b32.xlu1 %v6708_v21, %s7829_s18 }
 0x769   : >> { %2724 = vrot.lane.b32.xlu0 %v6708_v21, %s7830_s14 }
 0x76b   : >> { %2655 = vrot.lane.b32.xlu1 %v6708_v21, %s7842_s5 }
 0x76d   : >> { %2747 = vrot.lane.b32.xlu0 %v6708_v21, %s7831_s20 }
 0x76f   : >> { %2678 = vrot.lane.b32.xlu1 %v6708_v21, %s7832_s1 }
 0x771   : >> { %2770 = vrot.lane.b32.xlu0 %v6708_v21, %s7843_s6 }
 0x773   : >> { %2816 = vrot.lane.b32.xlu1 %v6708_v21, %s7834_s10 }
 0x775   : >> { %2793 = vrot.lane.b32.xlu0 %v6708_v21, %s7844_s7 }
 0x777   : >> { %2862 = vrot.lane.b32.xlu1 %v6708_v21, %s7836_s0 }
 0x779   : >> { %2839 = vrot.lane.b32.xlu0 %v6708_v21, %s7835_s24 }
 0x77b   : >> { %2909 = vrot.lane.b32.xlu1 %v6708_v21, %s7838_s4 }
 0x77d   : >> { %2885 = vrot.lane.b32.xlu0 %v6708_v21, %s7837_s3 }
 0x77f   : >> { %2946 = vrot.lane.b32.xlu1 %v6706_v33, %s7833_s2 }
 0x781   : >> { %2976 = vrot.lane.b32.xlu0 %v6708_v21, %s7839_s12 }
 0x783   : >> { %2680 = vrot.lane.b32.xlu1 %v6706_v33, %s7832_s1 }
 0x785   : >> { %2588 = vrot.lane.b32.xlu0 %v6706_v33, %s7840_s23  ;;  %v2506_v5 = vpop.permute.xlu1 %2505 }
 0x786   : >> { %v2524_v51 = vsel %vm7883_vm13, %v6698_v27, %v2506_v5  ;;  %vm7888_vm13 = vmmov %vm7886_vm9 }
 0x787   : >> { %v2518_v47 = vpop.permute.xlu0 %2517  ;;  %2703 = vrot.lane.b32.xlu1 %v6706_v33, %s7828_s26 }
 0x788   : >> { %v2529_v8 = vsel %vm7884_vm10, %v6702_v46, %v2518_v47  ;;  %vm7890_vm10 = vcmask 891904  }
 0x789   : >> { %2611 = vrot.lane.b32.xlu0 %v6706_v33, %s7841_s16  ;;  %v2508_v36 = vpop.permute.xlu1 %2507  ;;  %v6839_v22 = vpack.c.bf16 %v2529_v8, %v2524_v51 }
 0x78a   : >> { %v2525_v43 = vsel %vm7885_vm14, %v2506_v5, %v2508_v36  ;;  %vm7891_vm14 = vcmask 875520  }
 0x78b   : >> { %2548 = vst.msk [vmem:[#allocation4 + $0x28] sm:$0xff] %vm7886_vm9, %v2525_v43  ;;  %v2520_v14 = vpop.permute.xlu0 %2519  ;;  %2726 = vrot.lane.b32.xlu1 %v6706_v33, %s7830_s14  ;;  %vm7892_vm9 = vcmask 859136  }
 0x78c   : >> { %v2530_v62 = vsel %vm7887_vm11, %v2518_v47, %v2520_v14  ;;  %vm7893_vm11 = vcmask 883712  }
 0x78d   : >> { %2554 = vst.msk [vmem:[#allocation4 + $0x60] sm:$0xff] %vm7888_vm13, %v2530_v62  ;;  %2634 = vrot.lane.b32.xlu0 %v6706_v33, %s7829_s18  ;;  %v2583_v37 = vpop.permute.xlu1 %2582  ;;  %vm7894_vm13 = vcmask 867328  }
 0x78f   : >> { %v6831_v44 = vpop.permute.xlu0 %2674  ;;  %2749 = vrot.lane.b32.xlu1 %v6706_v33, %s7831_s20 }
 0x791   : >> { %2657 = vrot.lane.b32.xlu0 %v6706_v33, %s7842_s5  ;;  %v2606_v61 = vpop.permute.xlu1 %2605 }
 0x792   : >> { %v2560_v52 = vld [vmem:[#allocation4 + $0x28] sm:$0xff] }
 0x793   : >> { %v2941_v42 = vpop.permute.xlu0 %2940  ;;  %2636 = vrot.lane.b32.xlu1 %v6839_v22, %s7829_s18 }
 0x794   : >> { %v2567_v1 = vld [vmem:[#allocation4 + $0x60] sm:$0xff] }
 0x795   : >> { %2772 = vrot.lane.b32.xlu0 %v6706_v33, %s7843_s6  ;;  %v2629_v54 = vpop.permute.xlu1 %2628  ;;  %v6863_v46 = vpack.c.bf16 %v2567_v1, %v2560_v52 }
 0x797   : >> { %v2698_v35 = vpop.permute.xlu0 %2697  ;;  %2659 = vrot.lane.b32.xlu1 %v6839_v22, %s7842_s5 }
 0x799   : >> { %2590 = vrot.lane.b32.xlu0 %v6839_v22, %s7840_s23  ;;  %v6853_v55 = vpop.permute.xlu1 %2651 }
 0x79b   : >> { %v2721_v16 = vpop.permute.xlu0 %2720  ;;  %2705 = vrot.lane.b32.xlu1 %v6839_v22, %s7828_s26 }
 0x79d   : >> { %2613 = vrot.lane.b32.xlu0 %v6839_v22, %s7841_s16  ;;  %v6859_v27 = vpop.permute.xlu1 %2789 }
 0x79f   : >> { %v2744_v45 = vpop.permute.xlu0 %2743  ;;  %2751 = vrot.lane.b32.xlu1 %v6839_v22, %s7831_s20 }
 0x7a1   : >> { %2682 = vrot.lane.b32.xlu0 %v6839_v22, %s7832_s1  ;;  %v6867_v19 = vpop.permute.xlu1 %2835 }
 0x7a3   : >> { %v6869_v29 = vpop.permute.xlu0 %2766  ;;  %2592 = vrot.lane.b32.xlu1 %v6863_v46, %s7840_s23 }
 0x7a5   : >> { %2948 = vrot.lane.b32.xlu0 %v6839_v22, %s7833_s2  ;;  %v6875_v21 = vpop.permute.xlu1 %2881 }
 0x7a7   : >> { %v6877_v9 = vpop.permute.xlu0 %2812  ;;  %2615 = vrot.lane.b32.xlu1 %v6863_v46, %s7841_s16 }
 0x7a9   : >> { %2728 = vrot.lane.b32.xlu0 %v6839_v22, %s7830_s14  ;;  %v6883_v26 = vpop.permute.xlu1 %2972 }
 0x7ab   : >> { %v6885_v63 = vpop.permute.xlu0 %2858  ;;  %2684 = vrot.lane.b32.xlu1 %v6863_v46, %s7832_s1 }
 0x7ad   : >> { %2638 = vrot.lane.b32.xlu0 %v6863_v46, %s7829_s18  ;;  %v2585_v38 = vpop.permute.xlu1 %2584 }
 0x7ae   : >> { %v2594_v32 = vsel %vm577_vm6, %v2583_v37, %v2585_v38 }
 0x7af   : >> { %v6891_v41 = vpop.permute.xlu0 %2905  ;;  %2950 = vrot.lane.b32.xlu1 %v6863_v46, %s7833_s2 }
 0x7b1   : >> { %2661 = vrot.lane.b32.xlu0 %v6863_v46, %s7842_s5  ;;  %v2943_v60 = vpop.permute.xlu1 %2942 }
 0x7b2   : >> { %v2954_v13 = vsel %vm7890_vm10, %v2941_v42, %v2943_v60 }
 0x7b3   : >> { %v2608_v7 = vpop.permute.xlu0 %2607  ;;  %2730 = vrot.lane.b32.xlu1 %v6863_v46, %s7830_s14 }
 0x7b4   : >> { %v2617_v30 = vsel %vm601_vm7, %v2606_v61, %v2608_v7 }
 0x7b5   : >> { %2707 = vrot.lane.b32.xlu0 %v6863_v46, %s7828_s26  ;;  %v2700_v0 = vpop.permute.xlu1 %2699 }
 0x7b6   : >> { %v2709_v50 = vsel %vm7891_vm14, %v2698_v35, %v2700_v0 }
 0x7b7   : >> { %v2631_v28 = vpop.permute.xlu0 %2630  ;;  %3000 = vrot.lane.b32.xlu1 %v2617_v30, %s7839_s12 }
 0x7b8   : >> { %v2640_v51 = vsel %vm625_vm8, %v2629_v54, %v2631_v28 }
 0x7b9   : >> { %2753 = vrot.lane.b32.xlu0 %v6863_v46, %s7831_s20  ;;  %v6905_v23 = vpop.permute.xlu1 %2722 }
 0x7ba   : >> { %v2732_v37 = vsel %vm7894_vm13, %v2721_v16, %v6905_v23 }
 0x7bb   : >> { %v2654_v15 = vpop.permute.xlu0 %2653  ;;  %3028 = vrot.lane.b32.xlu1 %v2954_v13, %s7839_s12 }
 0x7bd   : >> { %2986 = vrot.lane.b32.xlu0 %v2594_v32, %s7839_s12  ;;  %v2746_v53 = vpop.permute.xlu1 %2745 }
 0x7be   : >> { %v2755_v8 = vsel %vm7892_vm9, %v2744_v45, %v2746_v53 }
 0x7bf   : >> { %v2677_v5 = vpop.permute.xlu0 %2676  ;;  %3056 = vrot.lane.b32.xlu1 %v2709_v50, %s7839_s12 }
 0x7c0   : >> { %v2686_v43 = vsel %vm7893_vm11, %v6831_v44, %v2677_v5 }
 0x7c1   : >> { %3014 = vrot.lane.b32.xlu0 %v2640_v51, %s7839_s12  ;;  %v6915_v47 = vpop.permute.xlu1 %2768 }
 0x7c3   : >> { %v6918_v36 = vpop.permute.xlu0 %2814  ;;  %3084 = vrot.lane.b32.xlu1 %v2755_v8, %s7839_s12 }
 0x7c5   : >> { %3042 = vrot.lane.b32.xlu0 %v2686_v43, %s7839_s12  ;;  %v6924_v14 = vpop.permute.xlu1 %2791 }
 0x7c7   : >> { %v6926_v62 = vpop.permute.xlu0 %2860 }
 0x7c9   : >> { %3070 = vrot.lane.b32.xlu0 %v2732_v37, %s7839_s12  ;;  %v6931_v61 = vpop.permute.xlu1 %2837 }
 0x7cb   : >> { %v6933_v42 = vpop.permute.xlu0 %2907 }
 0x7cd   : >> { %v6935_v54 = vpop.permute.xlu1 %2883 }
 0x7cf   : >> { %v6937_v35 = vpop.permute.xlu0 %2586 }
 0x7d0   : >> { %v2595_v44 = vsel %vm577_vm6, %v2585_v38, %v6937_v35 }
 0x7d1   : >> { %3229 = vmatprep.subr.bf16.mxu0 %v2595_v44  ;;  %2988 = vrot.lane.b32.xlu0 %v2595_v44, %s7839_s12  ;;  %v6942_v1 = vpop.permute.xlu1 %2974 }
 0x7d2   : >> { %3230 = vmatpush1.bf16.msra.mxu0 %v2594_v32 }
 0x7d3   : >> { %v6944_v16 = vpop.permute.xlu0 %2944 }
 0x7d4   : >> { %v2955_v44 = vsel %vm7890_vm10, %v2943_v60, %v6944_v16 }
 0x7d5   : >> { %v6946_v45 = vpop.permute.xlu1 %2609 }
 0x7d6   : >> { %v2618_v52 = vsel %vm601_vm7, %v2608_v7, %v6946_v45 }
 0x7d7   : >> { %v6950_v13 = vpop.permute.xlu0 %2701  ;;  %3002 = vrot.lane.b32.xlu1 %v2618_v52, %s7839_s12  ;;  %3231 = vmatprep.subr.bf16.mxu0 %v2618_v52 }
 0x7d8   : >> { %3232 = vmatpush1.bf16.msra.mxu0 %v2617_v30  ;;  %v2710_v30 = vsel %vm7891_vm14, %v2700_v0, %v6950_v13  ;;  %vm7895_vm14 = vmmov %vm7893_vm11 }
 0x7d9   : >> { %v6953_v38 = vpop.permute.xlu1 %2632 }
 0x7da   : >> { %v2641_v32 = vsel %vm625_vm8, %v2631_v28, %v6953_v38  ;;  %v2663_v28 = vsel %vm643_vm1, %v6853_v55, %v2654_v15 }
 0x7db   : >> { %v6959_v4 = vpop.permute.xlu0 %2724  ;;  %3030 = vrot.lane.b32.xlu1 %v2955_v44, %s7839_s12  ;;  %3016 = vrot.lane.b32.xlu0 %v2641_v32, %s7839_s12 }
 0x7dc   : >> { %3233 = vmatprep.subr.bf16.mxu0 %v2641_v32  ;;  %v2733_v55 = vsel %vm7894_vm13, %v6905_v23, %v6959_v4 }
 0x7dd   : >> { %3234 = vmatpush1.bf16.msra.mxu0 %v2640_v51  ;;  %v6963_v7 = vpop.permute.xlu1 %2655 }
 0x7de   : >> { %v2664_v52 = vsel %vm643_vm1, %v2654_v15, %v6963_v7 }
 0x7df   : >> { %v6969_v60 = vpop.permute.xlu0 %2747  ;;  %3058 = vrot.lane.b32.xlu1 %v2710_v30, %s7839_s12  ;;  %3235 = vmatprep.subr.bf16.mxu0 %v2664_v52 }
 0x7e0   : >> { %v2756_v51 = vsel %vm7892_vm9, %v2746_v53, %v6969_v60  ;;  %vm7896_vm9 = vcmask 547840  }
 0x7e1   : >> { %3236 = vmatpush1.bf16.msra.mxu0 %v2663_v28  ;;  %v6974_v44 = vpop.permute.xlu1 %2678  ;;  %vm7899_vm13 = vmmov %vm7896_vm9 }
 0x7e2   : >> { %v2687_v0 = vsel %vm7893_vm11, %v2677_v5, %v6974_v44  ;;  %vm7897_vm11 = vcmask 875520  }
 0x7e3   : >> { %v6980_v32 = vpop.permute.xlu0 %2770  ;;  %3086 = vrot.lane.b32.xlu1 %v2756_v51, %s7839_s12  ;;  %3044 = vrot.lane.b32.xlu0 %v2687_v0, %s7839_s12 }
 0x7e4   : >> { %3237 = vmatprep.subr.bf16.mxu0 %v2687_v0  ;;  %v2779_v23 = vsel %vm733_vm2, %v6915_v47, %v6980_v32  ;;  %v2778_v0 = vsel %vm733_vm2, %v6869_v29, %v6915_v47 }
 0x7e5   : >> { %3238 = vmatpush1.bf16.msra.mxu0 %v2686_v43  ;;  %v6984_v52 = vpop.permute.xlu1 %2816 }
 0x7e6   : >> { %3239 = vmatprep.subr.bf16.mxu0 %v2710_v30  ;;  %v2825_v29 = vsel %vm769_vm4, %v6918_v36, %v6984_v52 }
 0x7e7   : >> { %v6989_v15 = vpop.permute.xlu0 %2793  ;;  %3072 = vrot.lane.b32.xlu0 %v2733_v55, %s7839_s12 }
 0x7e9   : >> { %3240 = vmatpush1.bf16.msra.mxu0 %v2709_v50  ;;  %v6992_v53 = vpop.permute.xlu1 %2862 }
 0x7ea   : >> { %3241 = vmatprep.subr.bf16.mxu0 %v2733_v55  ;;  %v2801_v55 = vsel %vm751_vm3, %v6859_v27, %v6924_v14 }
 0x7eb   : >> { %v6994_v5 = vpop.permute.xlu0 %2839  ;;  %2776 = vrot.lane.b32.xlu0 %v6863_v46, %s7843_s6 }
 0x7ed   : >> { %3242 = vmatpush1.bf16.msra.mxu0 %v2732_v37  ;;  %v6998_v43 = vpop.permute.xlu1 %2909  ;;  %v2802_v37 = vsel %vm751_vm3, %v6924_v14, %v6989_v15  ;;  %v2848_v14 = vsel %vm787_vm5, %v6931_v61, %v6994_v5 }
 0x7ee   : >> { %3243 = vmatprep.subr.bf16.mxu0 %v2756_v51 }
 0x7ef   : >> { %v7000_v30 = vpop.permute.xlu0 %2885 }
 0x7f1   : >> { %3244 = vmatpush1.bf16.msra.mxu0 %v2755_v8  ;;  %v7005_v50 = vpop.permute.xlu1 %2946 }
 0x7f2   : >> { %3245 = vmatprep.subr.bf16.mxu0 %v2779_v23 }
 0x7f3   : >> { %v7007_v28 = vpop.permute.xlu0 %2976 }
 0x7f5   : >> { %3246 = vmatpush1.bf16.msra.mxu0 %v2778_v0  ;;  %v7015_v51 = vpop.permute.xlu1 %2680 }
 0x7f6   : >> { %3247 = vmatprep.subr.bf16.mxu0 %v2802_v37  ;;  %v2824_v37 = vsel %vm769_vm4, %v6877_v9, %v6918_v36  ;;  %v2847_v9 = vsel %vm787_vm5, %v6867_v19, %v6931_v61  ;;  %v2870_v19 = vsel %vm805_vm0, %v6885_v63, %v6926_v62  ;;  %v2894_v61 = vsel %vm823_vm12, %v6935_v54, %v7000_v30 }
 0x7f7   : >> { %v2589_v8 = vpop.permute.xlu0 %2588  ;;  %v2893_v63 = vsel %vm823_vm12, %v6875_v21, %v6935_v54  ;;  %v2919_v21 = vsel %vm845_vm15, %v6891_v41, %v6933_v42 }
 0x7f8   : >> { %v2596_v23 = vsel %vm577_vm6, %v6937_v35, %v2589_v8 }
 0x7f9   : >> { %3248 = vmatpush1.bf16.msra.mxu0 %v2801_v55  ;;  %2990 = vrot.lane.b32.xlu1 %v2596_v23, %s7839_s12  ;;  %v7026_v47 = vpop.permute.xlu1 %2703 }
 0x7fa   : >> { %3249 = vmatprep.subr.bf16.mxu0 %v2825_v29  ;;  %v2711_v41 = vsel %vm7897_vm11, %v6950_v13, %v7026_v47  ;;  %vm7903_vm11 = vcmask 883712  }
 0x7fb   : >> { %v2612_v0 = vpop.permute.xlu0 %2611 }
 0x7fc   : >> { %v2619_v27 = vsel %vm601_vm7, %v6946_v45, %v2612_v0  ;;  %v2871_v45 = vsel %vm805_vm0, %v6926_v62, %v6992_v53  ;;  %v2688_v62 = vsel %vm7895_vm14, %v6974_v44, %v7015_v51  ;;  %v7093_v44 = vcombine.low %v7889_v3, %v7889_v3 }
 0x7fd   : >> { %3250 = vmatpush1.bf16.msra.mxu0 %v2824_v37  ;;  %2774 = vrot.lane.b32.xlu1 %v6839_v22, %s7843_s6  ;;  %v7038_v35 = vpop.permute.xlu1 %2726  ;;  %vm7901_vm14 = vcmask 130048  }
 0x7fe   : >> { %3004 = vrot.lane.b32.xlu0 %v2619_v27, %s7839_s12  ;;  %3251 = vmatprep.subr.bf16.mxu0 %v2848_v14 }
 0x7ff   : >> { %v2635_v55 = vpop.permute.xlu0 %2634 }
 0x800   : >> { %v2642_v36 = vsel %vm625_vm8, %v6953_v38, %v2635_v55  ;;  %v2956_v38 = vsel %vm7890_vm10, %v6944_v16, %v7005_v50  ;;  %v2920_v16 = vsel %vm845_vm15, %v6933_v42, %v6998_v43  ;;  %v7898_v42 = vld [vmem:[#allocation36_spill] sm:$0xff]  ;;  %vm7900_vm10 = vcmask 867328  }
 0x801   : >> { %3252 = vmatpush1.bf16.msra.mxu0 %v2847_v9  ;;  %3018 = vrot.lane.b32.xlu1 %v2642_v36, %s7839_s12  ;;  %v7052_v29 = vpop.permute.xlu1 %2749 }
 0x802   : >> { %2795 = vrot.lane.b32.xlu0 %v6706_v33, %s7844_s7  ;;  %3253 = vmatprep.subr.bf16.mxu0 %v2871_v45 }
 0x803   : >> { %v2658_v37 = vpop.permute.xlu0 %2657 }
 0x805   : >> { %3254 = vmatpush1.bf16.msra.mxu0 %v2870_v19  ;;  %2969 = vrot.lane.b32.xlu1 %v6587_v12, %s7831_s20  ;;  %v7074_v9 = vpop.permute.xlu1 %2636  ;;  %v3099_v19 = vsel %vm7896_vm9, %v6942_v1, %v7007_v28  ;;  %vm7902_vm9 = vcmask 859136  }
 0x806   : >> { %3255 = vmatprep.subr.bf16.mxu0 %v2894_v61  ;;  %3032 = vrot.lane.b32.xlu0 %v2956_v38, %s7839_s12 }
 0x807   : >> { %v7066_v14 = vpop.permute.xlu0 %2772 }
 0x809   : >> { %3256 = vmatpush1.bf16.msra.mxu0 %v2893_v63  ;;  %3046 = vrot.lane.b32.xlu1 %v2688_v62, %s7839_s12  ;;  %v7108_v61 = vpop.permute.xlu1 %2659  ;;  %v3098_v63 = vsel %vm7899_vm13, %v6883_v26, %v6942_v1  ;;  %v2643_v26 = vsel %vm625_vm8, %v2635_v55, %v7074_v9  ;;  %v2665_v55 = vsel %vm643_vm1, %v6963_v7, %v2658_v37  ;;  %vm7904_vm13 = vcmask 875520  }
 0x80a   : >> { %3257 = vmatprep.subr.bf16.mxu0 %v2920_v16  ;;  %2799 = vrot.lane.b32.xlu0 %v6863_v46, %s7844_s7  ;;  %v2734_v16 = vsel %vm7900_vm10, %v6959_v4, %v7038_v35  ;;  %v2757_v4 = vsel %vm7902_vm9, %v6969_v60, %v7052_v29 }
 0x80b   : >> { %v7082_v45 = vpop.permute.xlu0 %2590 }
 0x80c   : >> { %v7089_v54 = vsel %vm577_vm6, %v2589_v8, %v7082_v45  ;;  %v7106_v8 = vcombine.high %v7898_v42, %v7898_v42 }
 0x80d   : >> { %3258 = vmatpush1.bf16.msra.mxu0 %v2919_v21  ;;  %3311 = vmatprep.subr.bf16.mxu1 %v7089_v54 }
 0x80e   : >> { %3268 = vmatprep.subr.bf16.mxu0 %v3099_v19  ;;  %2797 = vrot.lane.b32.xlu1 %v6839_v22, %s7844_s7 }
 0x80f   : >> { %3060 = vrot.lane.b32.xlu0 %v2711_v41, %s7839_s12  ;;  %3312 = vmatpush1.bf16.msra.mxu1 %v2596_v23  ;;  %v7111_v38 = vpop.permute.xlu0 %2613  ;;  %v7134_v23 = vpop.permute.xlu1 %2705 }
 0x810   : >> { %3260 = vmatmul.mubr.bf16.vlgmr.msra.gmra.mrb[12].mxu0 %v7093_v44  ;;  %v7119_v13 = vsel %vm601_vm7, %v2612_v0, %v7111_v38  ;;  %v2666_v0 = vsel %vm643_vm1, %v2658_v37, %v7108_v61  ;;  %v2712_v7 = vsel %vm7904_vm13, %v7026_v47, %v7134_v23 }
 0x811   : >> { %3269 = vmatpush1.bf16.msra.mxu0 %v3098_v63  ;;  %3313 = vmatprep.subr.bf16.mxu1 %v7119_v13 }
 0x812   : >> { %3074 = vrot.lane.b32.xlu1 %v2734_v16, %s7839_s12  ;;  %3943 = vmatprep.mubr.msk.bf16.mxu0 %vm7901_vm14, %v7106_v8  ;;  %vm7905_vm14 = vmmov %vm7902_vm9  ;;  %vm7906_vm9 = vcmask 891904  }
 0x813   : >> { %2820 = vrot.lane.b32.xlu0 %v6839_v22, %s7834_s10  ;;  %3314 = vmatpush1.bf16.msra.mxu1 %v2619_v27  ;;  %v7132_v1 = vpop.permute.xlu0 %2682  ;;  %v7150_v21 = vpop.permute.xlu1 %2751 }
 0x814   : >> { %3315 = vmatprep.subr.bf16.mxu1 %v2643_v26  ;;  %v2689_v60 = vsel %vm7903_vm11, %v7015_v51, %v7132_v1 }
 0x816   : >> { %2818 = vrot.lane.b32.xlu1 %v6706_v33, %s7834_s10 }
 0x817   : >> { %3088 = vrot.lane.b32.xlu0 %v2757_v4, %s7839_s12  ;;  %3316 = vmatpush1.bf16.msra.mxu1 %v2642_v36  ;;  %v7144_v27 = vpop.permute.xlu0 %2948  ;;  %v7166_v37 = vpop.permute.xlu1 %2592 }
 0x818   : >> { %3317 = vmatprep.subr.bf16.mxu1 %v2666_v0 }
 0x81a   : >> { %2822 = vrot.lane.b32.xlu1 %v6863_v46, %s7834_s10 }
 0x81b   : >> { %2841 = vrot.lane.b32.xlu0 %v6706_v33, %s7835_s24  ;;  %3318 = vmatpush1.bf16.msra.mxu1 %v2665_v55  ;;  %v7164_v36 = vpop.permute.xlu0 %2728  ;;  %v7177_v47 = vpop.permute.xlu1 %2615 }
 0x81c   : >> { %3319 = vmatprep.subr.bf16.mxu1 %v2689_v60  ;;  %v2735_v51 = vsel %vm7900_vm10, %v7038_v35, %v7164_v36  ;;  %v2936_v25 = vsel %vm601_vm7, %v7177_v47, %v6675_v20  ;;  %vm7911_vm10 = vmmov %vm7903_vm11 }
 0x81e   : >> { %2843 = vrot.lane.b32.xlu1 %v6839_v22, %s7835_s24 }
 0x81f   : >> { %2845 = vrot.lane.b32.xlu0 %v6863_v46, %s7835_s24  ;;  %3320 = vmatpush1.bf16.msra.mxu1 %v2688_v62  ;;  %v2758_v62 = vsel %vm7905_vm14, %v7052_v29, %v7150_v21  ;;  %v7184_v19 = vpop.permute.xlu0 %2638  ;;  %v7190_v35 = vpop.permute.xlu1 %2684  ;;  %vm7912_vm14 = vcmask 875520  }
 0x820   : >> { %3321 = vmatprep.subr.bf16.mxu1 %v2712_v7 }
 0x822   : >> { %2864 = vrot.lane.b32.xlu1 %v6706_v33, %s7836_s0 }
 0x823   : >> { %2866 = vrot.lane.b32.xlu0 %v6839_v22, %s7836_s0  ;;  %3322 = vmatpush1.bf16.msra.mxu1 %v2711_v41  ;;  %v7196_v41 = vpop.permute.xlu0 %2661  ;;  %v2951_v29 = vpop.permute.xlu1 %2950 }
 0x824   : >> { %3323 = vmatprep.subr.bf16.mxu1 %v2735_v51 }
 0x826   : >> { %2868 = vrot.lane.b32.xlu1 %v6863_v46, %s7836_s0  ;;  %s3954_s0 = smul.u32 12, %s4504_s25  ;;  %s486_s25 = sadd.s32 1, %s4504_s25  }
 0x827   : >> { %2887 = vrot.lane.b32.xlu0 %v6706_v33, %s7837_s3  ;;  %3324 = vmatpush1.bf16.msra.mxu1 %v2734_v16  ;;  %v7202_v63 = vpop.permute.xlu0 %2707  ;;  %v7208_v16 = vpop.permute.xlu1 %2730  ;;  %p483_p11 = scmp.ge.s32.totalorder %s486_s25, 4  }
 0x828   : >> { %3325 = vmatprep.subr.bf16.mxu1 %v2758_v62  ;;  %s3750_s5 = sshll.u32 (%p483_p11), %s4889_s19, 4  ;;  %s3736_s10 = scalar_lea.sflag (%p483_p11), [#allocation8], %s4862_s17  ;;  %s7653_s5 = int_to_ptr.vmem [resolvable:$true] %s3750_s5 }
 0x829   : > { %s4414_s24 = scalar_lea.vmem (%p483_p11), %s7653_s5, 768  ;;  %p7974_p12 = scmp.ne.s32.totalorder (%p483_p11), %s7789_s13, 0 }
 0x82a   : >> { %2889 = vrot.lane.b32.xlu1 %v6839_v22, %s7837_s3  ;;  %p4415_p4 = scmp.ne.s32.totalorder (%p483_p11), %s7653_s5, %s4414_s24  ;;  %s4543_s25 = smov (%p483_p11), [#allocation20]  }
 0x82b   : >> { %2891 = vrot.lane.b32.xlu0 %v6863_v46, %s7837_s3  ;;  %3326 = vmatpush1.bf16.msra.mxu1 %v2757_v4  ;;  %v7214_v4 = vpop.permute.xlu0 %2753  ;;  %v7218_v0 = vpop.permute.xlu1 %3000  ;;  %s3688_s3 = scalar_lea.vmem %s4889_s19, %s3954_s0 [#allocation20]  ;;  %s4418_s26 = sshll.u32 (%p483_p11), %s4543_s25, 4  ;;  %s4419_s26 = int_to_ptr.vmem [resolvable:$false] %s4418_s26 }
 0x82c   : > { %p4416_p13 = pnand (%p483_p11), %p4415_p4, %p7974_p12  ;;  %p4421_p7 = scmp.lt.s32.totalorder (%p483_p11), %s7653_s5, %s4419_s26 }
 0x82e   : >> { %2911 = vrot.lane.b32.xlu1 %v6706_v33, %s7838_s4  ;;  %p4417_p9 = pneg (%p483_p11), %p4416_p13 }
 0x82f   : >> { %2913 = vrot.lane.b32.xlu0 %v6839_v22, %s7838_s4  ;;  %v7226_v55 = vpop.permute.xlu1 %3028 }
 0x832   : >> { %2915 = vrot.lane.b32.xlu1 %v6863_v46, %s7838_s4 }
 0x833   : >> { %2917 = vrot.lane.b32.xlu0 %v6587_v12, %s7838_s4  ;;  %v7237_v3 = vpop.permute.xlu1 %3056  ;;  %s4001_s4 = smul.u32 (%p483_p11), 768, %s4612_s11  ;;  %s4420_s11 = scalar_lea.vmem (%p483_p11), %s4419_s26, 1536 }
 0x834   : > { %p4422_p10 = scmp.lt.s32.totalorder (%p483_p11), %s4420_s11, %s4414_s24 }
 0x836   : >> { %2978 = vrot.lane.b32.xlu1 %v6706_v33, %s7839_s12  ;;  %v2987_v33 = vpop.permute.xlu0 %2986  ;;  %p4423_p3 = por (%p483_p11), %p4422_p10, %p4421_p7 }
 0x837   : >> { %2980 = vrot.lane.b32.xlu0 %v6839_v22, %s7839_s12 }
 0x838   : > { %p4424_p1 = pnand (%p483_p11), %p4423_p3, %p4417_p9 }
 0x83a   : >> { %2982 = vrot.lane.b32.xlu1 %v6863_v46, %s7839_s12 }
 0x83b   : >> { %2984 = vrot.lane.b32.xlu0 %v6587_v12, %s7839_s12  ;;  %v7231_v12 = vpop.permute.xlu0 %3014 }
 0x83e   : >> { %2992 = vrot.lane.b32.xlu1 %v7089_v54, %s7839_s12  ;;  %v2957_v54 = vsel %vm7906_vm9, %v7005_v50, %v7144_v27 }
 0x83f   : >> { %2998 = vrot.lane.b32.xlu0 %v6679_v18, %s7839_s12 }
 0x842   : >> { %3006 = vrot.lane.b32.xlu1 %v7119_v13, %s7839_s12  ;;  %v7241_v13 = vpop.permute.xlu0 %3042 }
 0x843   : >> { %3012 = vrot.lane.b32.xlu0 %v6675_v20, %s7839_s12 }
 0x846   : >> { %3020 = vrot.lane.b32.xlu1 %v2643_v26, %s7839_s12  ;;  %v7246_v26 = vpop.permute.xlu1 %3084  ;;  %v7251_v50 = vpop.permute.xlu0 %3070 }
 0x847   : >> { %3026 = vrot.lane.b32.xlu0 %v6677_v40, %s7839_s12 }
 0x84a   : >> { %3034 = vrot.lane.b32.xlu1 %v2957_v54, %s7839_s12  ;;  %v3003_v54 = vpop.permute.xlu1 %3002  ;;  %v2989_v6 = vpop.permute.xlu0 %2988 }
 0x84b   : >> { %3040 = vrot.lane.b32.xlu0 %v6683_v56, %s7839_s12 }
 0x84e   : >> { %3048 = vrot.lane.b32.xlu1 %v2689_v60, %s7839_s12  ;;  %v7260_v60 = vsel %vm577_vm6, %v7082_v45, %v7166_v37  ;;  %v3017_v10 = vpop.permute.xlu0 %3016 }
 0x84f   : >> { %3054 = vrot.lane.b32.xlu0 %v6681_v58, %s7839_s12 }
 0x852   : >> { %3062 = vrot.lane.b32.xlu1 %v2712_v7, %s7839_s12  ;;  %v3031_v7 = vpop.permute.xlu1 %3030 }
 0x853   : >> { %3068 = vrot.lane.b32.xlu0 %v6687_v59, %s7839_s12 }
 0x855   : >> { %v7275_v45 = vpop.permute.xlu0 %3044 }
 0x856   : >> { %3076 = vrot.lane.b32.xlu1 %v2735_v51, %s7839_s12  ;;  %v2933_v51 = vsel %vm577_vm6, %v7166_v37, %v6679_v18  ;;  %v7277_v11 = vpop.permute.xlu1 %3058  ;;  %v7286_v18 = vsel %vm625_vm8, %v7074_v9, %v7184_v19  ;;  %vm7907_vm6 = vmmov %vm7906_vm9 }
 0x857   : >> { %3082 = vrot.lane.b32.xlu0 %v6685_v2, %s7839_s12  ;;  %vm7913_vm9 = vmmov %vm7912_vm14 }
 0x859   : >> { %v7295_v31 = vpop.permute.xlu0 %3072 }
 0x85a   : >> { %3090 = vrot.lane.b32.xlu1 %v2758_v62, %s7839_s12  ;;  %v7271_v62 = vsel %vm601_vm7, %v7111_v38, %v7177_v47  ;;  %v2939_v38 = vsel %vm625_vm8, %v7184_v19, %v6677_v40  ;;  %vm7908_vm7 = vmmov %vm7907_vm6  ;;  %v7307_v40 = vsel %vm7903_vm11, %v7132_v1, %v7190_v35  ;;  %vm7909_vm8 = vcmask 547840  }
 0x85b   : >> { %2994 = vrot.lane.b32.xlu0 %v7260_v60, %s7839_s12  ;;  %v2959_v20 = vsel %vm7908_vm7, %v2951_v29, %v6683_v56  ;;  %vm7910_vm13 = vmmov %vm7909_vm8  ;;  %v2962_v56 = vsel %vm7911_vm10, %v7190_v35, %v6681_v58  ;;  %v7325_v1 = vsel %vm7912_vm14, %v7134_v23, %v7202_v63  ;;  %v2965_v58 = vsel %vm7913_vm9, %v7202_v63, %v6687_v59 }
 0x85c   : >> { %vm7916_vm11 = vcmask 867328   ;;  %v2780_v59 = vsel %vm733_vm2, %v6980_v32, %v7066_v14  ;;  %vm7920_vm14 = vcmask 859136  }
 0x85d   : >> { %v7367_v32 = vsel %vm7920_vm14, %v7150_v21, %v7214_v4  ;;  %vm7921_vm9 = vmmov %vm7920_vm14 }
 0x85e   : >> { %2996 = vrot.lane.b32.xlu1 %v2933_v51, %s7839_s12  ;;  %v2958_v51 = vsel %vm7907_vm6, %v7144_v27, %v2951_v29  ;;  %v7313_v27 = vpop.permute.xlu0 %2776  ;;  %vm7914_vm6 = vmmov %vm7909_vm8 }
 0x85f   : >> { %3008 = vrot.lane.b32.xlu0 %v7271_v62, %s7839_s12  ;;  %vm7915_vm7 = vmmov %vm7914_vm6 }
 0x860   : >> { %vm7919_vm10 = vmmov %vm7914_vm6 }
 0x861   : >> { %vm7928_vm14 = vmmov %vm7914_vm6 }
 0x862   : >> { %3010 = vrot.lane.b32.xlu1 %v2936_v25, %s7839_s12  ;;  %v7298_v25 = vpop.permute.xlu1 %3086 }
 0x863   : >> { %3022 = vrot.lane.b32.xlu0 %v7286_v18, %s7839_s12 }
 0x866   : >> { %3024 = vrot.lane.b32.xlu1 %v2939_v38, %s7839_s12 }
 0x867   : >> { %3036 = vrot.lane.b32.xlu0 %v2958_v51, %s7839_s12  ;;  %v3104_v51 = vsel %vm7910_vm13, %v2987_v33, %v2989_v6  ;;  %v3110_v33 = vsel %vm7915_vm7, %v7218_v0, %v3003_v54  ;;  %vm7918_vm13 = vmmov %vm7916_vm11 }
 0x868   : >> { %vm7922_vm7 = vmmov %vm7914_vm6 }
 0x86a   : >> { %3038 = vrot.lane.b32.xlu1 %v2959_v20, %s7839_s12 }
 0x86b   : >> { %3050 = vrot.lane.b32.xlu0 %v7307_v40, %s7839_s12  ;;  %v7311_v9 = vpop.permute.xlu1 %2990 }
 0x86c   : >> { %v3105_v38 = vsel %vm7909_vm8, %v2989_v6, %v7311_v9  ;;  %vm7917_vm8 = vmmov %vm7914_vm6 }
 0x86d   : >> { %3270 = vmatprep.subr.bf16.mxu0 %v3105_v38  ;;  %v7347_v38 = vsel %vm7916_vm11, %v7164_v36, %v7208_v16  ;;  %v2968_v36 = vsel %vm7918_vm13, %v7208_v16, %v6685_v2  ;;  %vm7923_vm11 = vmmov %vm7914_vm6 }
 0x86e   : >> { %3052 = vrot.lane.b32.xlu1 %v2962_v56, %s7839_s12  ;;  %3271 = vmatpush1.bf16.msra.mxu0 %v3104_v51  ;;  %v3116_v56 = vsel %vm7919_vm10, %v7231_v12, %v3017_v10  ;;  %v3122_v12 = vsel %vm7922_vm7, %v7226_v55, %v3031_v7  ;;  %v7925_v55 = vld [vmem:[#allocation41_spill] sm:$0xff]  ;;  %vm7926_vm13 = vmmov %vm7914_vm6 }
 0x86f   : >> { %3064 = vrot.lane.b32.xlu0 %v7325_v1, %s7839_s12  ;;  %v7329_v29 = vpop.permute.xlu1 %2774  ;;  %vm7927_vm10 = vmmov %vm7914_vm6 }
 0x870   : >> { %v7331_v20 = vpop.permute.xlu0 %3004  ;;  %v2781_v6 = vsel %vm733_vm2, %v7066_v14, %v7329_v29  ;;  %vm7930_vm7 = vmmov %vm7914_vm6 }
 0x871   : >> { %v3111_v23 = vsel %vm7914_vm6, %v3003_v54, %v7331_v20  ;;  %3327 = vmatprep.subr.bf16.mxu1 %v2781_v6 }
 0x872   : >> { %3066 = vrot.lane.b32.xlu1 %v2965_v58, %s7839_s12  ;;  %3272 = vmatprep.subr.bf16.mxu0 %v3111_v23 }
 0x873   : >> { %3078 = vrot.lane.b32.xlu0 %v7347_v38, %s7839_s12  ;;  %3273 = vmatpush1.bf16.msra.mxu0 %v3110_v33  ;;  %v7354_v51 = vpop.permute.xlu1 %3018 }
 0x874   : >> { %3328 = vmatpush1.bf16.msra.mxu1 %v2780_v59  ;;  %v2796_v0 = vpop.permute.xlu0 %2795  ;;  %v3117_v54 = vsel %vm7917_vm8, %v3017_v10, %v7354_v51  ;;  %vm7924_vm8 = vmmov %vm7914_vm6 }
 0x875   : >> { %3274 = vmatprep.subr.bf16.mxu0 %v3117_v54  ;;  %v3128_v33 = vsel %vm7924_vm8, %v7241_v13, %v7275_v45  ;;  %v3134_v13 = vsel %vm7927_vm10, %v7237_v3, %v7277_v11  ;;  %vm7933_vm8 = vmmov %vm7914_vm6 }
 0x876   : >> { %3080 = vrot.lane.b32.xlu1 %v2968_v36, %s7839_s12  ;;  %v2803_v36 = vsel %vm751_vm3, %v6989_v15, %v2796_v0 }
 0x877   : >> { %3092 = vrot.lane.b32.xlu0 %v7367_v32, %s7839_s12  ;;  %3275 = vmatpush1.bf16.msra.mxu0 %v3116_v56  ;;  %v2970_v14 = vpop.permute.xlu1 %2969 }
 0x878   : >> { %v7371_v6 = vpop.permute.xlu0 %3032  ;;  %v2971_v2 = vsel %vm7921_vm9, %v7214_v4, %v2970_v14  ;;  %vm7929_vm9 = vmmov %vm7914_vm6 }
 0x879   : >> { %v3123_v10 = vsel %vm7914_vm6, %v3031_v7, %v7371_v6 }
 0x87a   : >> { %3276 = vmatprep.subr.bf16.mxu0 %v3123_v10  ;;  %3094 = vrot.lane.b32.xlu1 %v2971_v2, %s7839_s12 }
 0x87b   : >> { %3096 = vrot.lane.b32.xlu0 %v2970_v14, %s7839_s12  ;;  %3277 = vmatpush1.bf16.msra.mxu0 %v3122_v12  ;;  %v7381_v21 = vpop.permute.xlu1 %3046 }
 0x87c   : >> { %v7383_v58 = vpop.permute.xlu0 %2799  ;;  %v3129_v23 = vsel %vm7923_vm11, %v7275_v45, %v7381_v21  ;;  %vm7932_vm11 = vmmov %vm7914_vm6 }
 0x87d   : >> { %3278 = vmatprep.subr.bf16.mxu0 %v3129_v23  ;;  %v3146_v23 = vsel %vm7930_vm7, %v7246_v26, %v7298_v25 }
 0x87e   : >> { %3208 = vperm.xlu1 %4159, %v7925_v55  }
 0x87f   : >> { %3279 = vmatpush1.bf16.msra.mxu0 %v3128_v33 }
 0x880   : >> { %v7392_v7 = vpop.permute.xlu1 %2797 }
 0x881   : >> { %v7394_v59 = vpop.permute.xlu0 %3060  ;;  %v2804_v54 = vsel %vm751_vm3, %v2796_v0, %v7392_v7  ;;  %v3140_v0 = vsel %vm7929_vm9, %v7251_v50, %v7295_v31 }
 0x882   : >> { %v3135_v56 = vsel %vm7926_vm13, %v7277_v11, %v7394_v59  ;;  %3329 = vmatprep.subr.bf16.mxu1 %v2804_v54 }
 0x883   : >> { %3280 = vmatprep.subr.bf16.mxu0 %v3135_v56  ;;  %3330 = vmatpush1.bf16.msra.mxu1 %v2803_v36 }
 0x884   : >> { %3281 = vmatpush1.bf16.msra.mxu0 %v3134_v13  ;;  %v7406_v45 = vpop.permute.xlu1 %3074 }
 0x885   : >> { %v7408_v14 = vpop.permute.xlu0 %2820  ;;  %v3141_v15 = vsel %vm7928_vm14, %v7295_v31, %v7406_v45  ;;  %v7430_v31 = vcombine.low %v7898_v42, %v7898_v42 }
 0x886   : >> { %3282 = vmatprep.subr.bf16.mxu0 %v3141_v15 }
 0x888   : >> { %3283 = vmatpush1.bf16.msra.mxu0 %v3140_v0  ;;  %v2819_v2 = vpop.permute.xlu1 %2818 }
 0x889   : >> { %v7416_v10 = vpop.permute.xlu0 %3088  ;;  %v2826_v11 = vsel %vm769_vm4, %v6984_v52, %v2819_v2  ;;  %v2827_v3 = vsel %vm769_vm4, %v2819_v2, %v7408_v14 }
 0x88a   : >> { %v3147_v12 = vsel %vm7914_vm6, %v7298_v25, %v7416_v10  ;;  %3331 = vmatprep.subr.bf16.mxu1 %v2827_v3 }
 0x88b   : >> { %3284 = vmatprep.subr.bf16.mxu0 %v3147_v12  ;;  %3332 = vmatpush1.bf16.msra.mxu1 %v2826_v11 }
 0x88c   : >> { %3285 = vmatpush1.bf16.msra.mxu0 %v3146_v23  ;;  %v7432_v52 = vpop.permute.xlu1 %2822 }
 0x88d   : >> { %v2842_v50 = vpop.permute.xlu0 %2841  ;;  %3391 = vmatprep.subr.bf16.mxu0 %v6863_v46  ;;  %v2828_v11 = vsel %vm769_vm4, %v7408_v14, %v7432_v52 }
 0x88e   : >> { %v2849_v55 = vsel %vm787_vm5, %v6994_v5, %v2842_v50 }
 0x88f   : >> { %3301 = vmatmul.mubr.bf16.vlgmr.msra.gmra.mrb[12].mxu0 %v7430_v31 }
 0x890   : >> { %3392 = vmatpush1.bf16.msra.mxu0 %v6839_v22  ;;  %v7437_v33 = vpop.permute.xlu1 %2843  ;;  %3423 = vmatprep.mubr.bf16.mxu0 %v6837_v48 }
 0x891   : >> { %v7440_v26 = vpop.permute.xlu0 %2845  ;;  %3393 = vmatprep.subr.bf16.mxu0 %v7166_v37  ;;  %v2850_v25 = vsel %vm787_vm5, %v2842_v50, %v7437_v33 }
 0x892   : >> { %3333 = vmatprep.subr.bf16.mxu1 %v2850_v25  ;;  %v2851_v3 = vsel %vm787_vm5, %v7437_v33, %v7440_v26 }
 0x893   : >> { %3334 = vmatpush1.bf16.msra.mxu1 %v2849_v55 }
 0x894   : >> { %3394 = vmatpush1.bf16.msra.mxu0 %v7260_v60  ;;  %v2865_v46 = vpop.permute.xlu1 %2864 }
 0x895   : >> { %v7448_v22 = vpop.permute.xlu0 %2866  ;;  %3395 = vmatprep.subr.bf16.mxu0 %v7177_v47  ;;  %v2872_v48 = vsel %vm805_vm0, %v6992_v53, %v2865_v46 }
 0x896   : >> { %v2873_v37 = vsel %vm805_vm0, %v2865_v46, %v7448_v22 }
 0x897   : >> { %3335 = vmatprep.subr.bf16.mxu1 %v2873_v37 }
 0x898   : >> { %3336 = vmatpush1.bf16.msra.mxu1 %v2872_v48  ;;  %3396 = vmatpush1.bf16.msra.mxu0 %v7271_v62  ;;  %v7456_v5 = vpop.permute.xlu1 %2868  ;;  %v2667_v62 = vsel %vm643_vm1, %v7108_v61, %v7196_v41  ;;  %vm7931_vm1 = vcmask 130048  }
 0x899   : >> { %v2888_v54 = vpop.permute.xlu0 %2887  ;;  %3397 = vmatprep.subr.bf16.mxu0 %v7184_v19  ;;  %v2874_v14 = vsel %vm805_vm0, %v7448_v22, %v7456_v5  ;;  %vm7934_vm0 = vmmov %vm7914_vm6 }
 0x89a   : >> { %v2895_v36 = vsel %vm823_vm12, %v7000_v30, %v2888_v54  ;;  %vm7939_vm4 = vmmov %vm7934_vm0 }
 0x89b   : >> { %vm7940_vm5 = vmmov %vm7931_vm1 }
 0x89c   : >> { %3398 = vmatpush1.bf16.msra.mxu0 %v7286_v18  ;;  %v7460_v60 = vpop.permute.xlu1 %2889  ;;  %vm7941_vm13 = vmmov %vm7934_vm0 }
 0x89d   : >> { %v7462_v47 = vpop.permute.xlu0 %2891  ;;  %3399 = vmatprep.subr.bf16.mxu0 %v7196_v41  ;;  %v2896_v53 = vsel %vm823_vm12, %v2888_v54, %v7460_v60  ;;  %vm7942_vm10 = vmmov %vm7934_vm0 }
 0x89e   : >> { %3337 = vmatprep.subr.bf16.mxu1 %v2896_v53  ;;  %vm7943_vm14 = vmmov %vm7934_vm0 }
 0x89f   : >> { %3338 = vmatpush1.bf16.msra.mxu1 %v2895_v36  ;;  %vm7944_vm9 = vmmov %vm7934_vm0 }
 0x8a0   : >> { %3400 = vmatpush1.bf16.msra.mxu0 %v2667_v62  ;;  %v2912_v19 = vpop.permute.xlu1 %2911  ;;  %vm7945_vm6 = vmmov %vm7934_vm0 }
 0x8a1   : >> { %v2914_v18 = vpop.permute.xlu0 %2913  ;;  %3401 = vmatprep.subr.bf16.mxu0 %v7190_v35  ;;  %v2921_v56 = vsel %vm845_vm15, %v6998_v43, %v2912_v19  ;;  %vm7946_vm7 = vmmov %vm7934_vm0 }
 0x8a2   : >> { %v2922_v13 = vsel %vm845_vm15, %v2912_v19, %v2914_v18 }
 0x8a3   : >> { %3339 = vmatprep.subr.bf16.mxu1 %v2922_v13 }
 0x8a4   : >> { %3340 = vmatpush1.bf16.msra.mxu1 %v2921_v56  ;;  %3402 = vmatpush1.bf16.msra.mxu0 %v7307_v40  ;;  %v2916_v30 = vpop.permute.xlu1 %2915 }
 0x8a5   : >> { %v2918_v15 = vpop.permute.xlu0 %2917  ;;  %3403 = vmatprep.subr.bf16.mxu0 %v7202_v63  ;;  %v2923_v25 = vsel %vm845_vm15, %v2914_v18, %v2916_v30 }
 0x8a6   : >> { %v2924_v50 = vsel %vm845_vm15, %v2916_v30, %v2918_v15  ;;  %vm7938_vm15 = vmmov %vm7934_vm0 }
 0x8a7   : >> { %3342 = vmatmul.mubr.bf16.vlgmr.msra.gmra.mrb[12].mxu1 %v7093_v44 }
 0x8a8   : >> { %3404 = vmatpush1.bf16.msra.mxu0 %v7325_v1  ;;  %v2979_v61 = vpop.permute.xlu1 %2978  ;;  %3944 = vmatprep.mubr.msk.bf16.mxu1 %vm7931_vm1, %v7106_v8  ;;  %vm7947_vm1 = vmmov %vm7934_vm0 }
 0x8a9   : >> { %v2981_v35 = vpop.permute.xlu0 %2980  ;;  %3405 = vmatprep.subr.bf16.mxu0 %v7208_v16  ;;  %v3100_v43 = vsel %vm7932_vm11, %v7007_v28, %v2979_v61  ;;  %v2782_v28 = vsel %vm733_vm2, %v7329_v29, %v7313_v27  ;;  %vm7935_vm2 = vmmov %vm7934_vm0 }
 0x8aa   : >> { %v3101_v41 = vsel %vm7933_vm8, %v2979_v61, %v2981_v35  ;;  %vm7948_vm11 = vmmov %vm7934_vm0 }
 0x8ab   : >> { %3350 = vmatprep.subr.bf16.mxu1 %v3101_v41  ;;  %vm7949_vm8 = vmmov %vm7934_vm0 }
 0x8ac   : >> { %3351 = vmatpush1.bf16.msra.mxu1 %v3100_v43  ;;  %3406 = vmatpush1.bf16.msra.mxu0 %v7347_v38  ;;  %v2983_v63 = vpop.permute.xlu1 %2982  ;;  %v2805_v38 = vsel %vm751_vm3, %v7392_v7, %v7383_v58  ;;  %vm7937_vm3 = vmmov %vm7934_vm0 }
 0x8ad   : >> { %v2985_v40 = vpop.permute.xlu0 %2984  ;;  %3407 = vmatprep.subr.bf16.mxu0 %v7214_v4 }
 0x8ae   : >> { %v3103_v55 = vsel %vm7934_vm0, %v2983_v63, %v2985_v40 }
 0x8b0   : >> { %3408 = vmatpush1.bf16.msra.mxu0 %v7367_v32  ;;  %v2993_v1 = vpop.permute.xlu1 %2992 }
 0x8b1   : >> { %v2999_v0 = vpop.permute.xlu0 %2998  ;;  %3409 = vmatprep.subr.bf16.mxu0 %v7313_v27 }
 0x8b4   : >> { %3410 = vmatpush1.bf16.msra.mxu0 %v2782_v28  ;;  %v3007_v16 = vpop.permute.xlu1 %3006 }
 0x8b5   : >> { %v3013_v2 = vpop.permute.xlu0 %3012  ;;  %3411 = vmatprep.subr.bf16.mxu0 %v7383_v58 }
 0x8b8   : >> { %3412 = vmatpush1.bf16.msra.mxu0 %v2805_v38  ;;  %v3021_v4 = vpop.permute.xlu1 %3020 }
 0x8b9   : >> { %v3027_v32 = vpop.permute.xlu0 %3026  ;;  %3413 = vmatprep.subr.bf16.mxu0 %v7432_v52  ;;  %v2897_v52 = vsel %vm823_vm12, %v7460_v60, %v7462_v47  ;;  %vm7936_vm12 = vmmov %vm7934_vm0 }
 0x8ba   : >> { %v3102_v37 = vsel %vm7936_vm12, %v2981_v35, %v2983_v63  ;;  %vm7951_vm12 = vmmov %vm7934_vm0 }
 0x8bc   : >> { %3414 = vmatpush1.bf16.msra.mxu0 %v2828_v11  ;;  %v3035_v27 = vpop.permute.xlu1 %3034 }
 0x8bd   : >> { %v7501_v29 = vpop.permute.xlu0 %3040  ;;  %3415 = vmatprep.subr.bf16.mxu0 %v7440_v26  ;;  %v3124_v35 = vsel %vm7934_vm0, %v7371_v6, %v3035_v27 }
 0x8c0   : >> { %3416 = vmatpush1.bf16.msra.mxu0 %v2851_v3  ;;  %v7507_v58 = vpop.permute.xlu1 %3048 }
 0x8c1   : >> { %v7509_v7 = vpop.permute.xlu0 %3054  ;;  %3417 = vmatprep.subr.bf16.mxu0 %v7456_v5  ;;  %v3106_v5 = vsel %vm7937_vm3, %v7311_v9, %v2993_v1  ;;  %v3112_v9 = vsel %vm7942_vm10, %v7331_v20, %v3007_v16  ;;  %vm7952_vm3 = vmmov %vm7934_vm0 }
 0x8c2   : >> { %vm7957_vm10 = vmmov %vm7934_vm0 }
 0x8c4   : >> { %3418 = vmatpush1.bf16.msra.mxu0 %v2874_v14  ;;  %v7515_v12 = vpop.permute.xlu1 %3062 }
 0x8c5   : >> { %v7517_v23 = vpop.permute.xlu0 %3068  ;;  %3419 = vmatprep.subr.bf16.mxu0 %v7462_v47  ;;  %v3136_v38 = vsel %vm7957_vm10, %v7394_v59, %v7515_v12 }
 0x8c8   : >> { %3420 = vmatpush1.bf16.msra.mxu0 %v2897_v52  ;;  %v7524_v33 = vpop.permute.xlu1 %3076 }
 0x8c9   : >> { %v7526_v26 = vpop.permute.xlu0 %3082  ;;  %3421 = vmatprep.subr.bf16.mxu0 %v2924_v50 }
 0x8cc   : >> { %3422 = vmatpush1.bf16.msra.mxu0 %v2923_v25  ;;  %v7530_v46 = vpop.permute.xlu1 %3090 }
 0x8cd   : >> { %v2995_v22 = vpop.permute.xlu0 %2994  ;;  %3432 = vmatprep.subr.bf16.mxu0 %v3103_v55 }
 0x8ce   : >> { %v3107_v48 = vsel %vm7935_vm2, %v2993_v1, %v2995_v22  ;;  %vm7950_vm2 = vmmov %vm7934_vm0 }
 0x8cf   : >> { %3352 = vmatprep.subr.bf16.mxu1 %v3107_v48  ;;  %3424 = vmatmul.mubr.bf16.vlgmr.msra.gmra.mrb[16].mxu0 %v7093_v44 }
 0x8d0   : >> { %3353 = vmatpush1.bf16.msra.mxu1 %v3106_v5  ;;  %3433 = vmatpush1.bf16.msra.mxu0 %v3102_v37  ;;  %v2997_v54 = vpop.permute.xlu1 %2996 }
 0x8d1   : >> { %v3009_v60 = vpop.permute.xlu0 %3008  ;;  %v3108_v47 = vsel %vm7938_vm15, %v2995_v22, %v2997_v54  ;;  %v3109_v53 = vsel %vm7939_vm4, %v2997_v54, %v2999_v0  ;;  %3945 = vmatprep.mubr.msk.bf16.mxu0 %vm7940_vm5, %v7106_v8  ;;  %v3118_v8 = vsel %vm7946_vm7, %v7354_v51, %v3021_v4  ;;  %vm7953_vm15 = vmmov %vm7934_vm0 }
 0x8d2   : >> { %v3113_v36 = vsel %vm7941_vm13, %v3007_v16, %v3009_v60  ;;  %3434 = vmatprep.subr.bf16.mxu0 %v3109_v53  ;;  %v3130_v1 = vsel %vm7953_vm15, %v7381_v21, %v7507_v58  ;;  %vm7954_vm4 = vmmov %vm7934_vm0  ;;  %vm7968_vm15 = vcmask 1041408  }
 0x8d3   : >> { %3354 = vmatprep.subr.bf16.mxu1 %v3113_v36  ;;  %vm7955_vm5 = vmmov %vm7934_vm0 }
 0x8d4   : >> { %3355 = vmatpush1.bf16.msra.mxu1 %v3112_v9  ;;  %3435 = vmatpush1.bf16.msra.mxu0 %v3108_v47  ;;  %v3011_v44 = vpop.permute.xlu1 %3010  ;;  %vm7956_vm13 = vmmov %vm7934_vm0  ;;  %v7967_v9 = vld [vmem:[#allocation42_spill] sm:$0xff] }
 0x8d5   : >> { %v3023_v62 = vpop.permute.xlu0 %3022  ;;  %v3114_v19 = vsel %vm7943_vm14, %v3009_v60, %v3011_v44  ;;  %v3115_v18 = vsel %vm7944_vm9, %v3011_v44, %v3013_v2  ;;  %vm7958_vm14 = vmmov %vm7934_vm0 }
 0x8d6   : >> { %v3119_v56 = vsel %vm7945_vm6, %v3021_v4, %v3023_v62  ;;  %3436 = vmatprep.subr.bf16.mxu0 %v3115_v18  ;;  %vm7959_vm9 = vmmov %vm7934_vm0 }
 0x8d7   : >> { %3356 = vmatprep.subr.bf16.mxu1 %v3119_v56  ;;  %vm7960_vm6 = vmmov %vm7934_vm0 }
 0x8d8   : >> { %3357 = vmatpush1.bf16.msra.mxu1 %v3118_v8  ;;  %3437 = vmatpush1.bf16.msra.mxu0 %v3114_v19  ;;  %v3025_v13 = vpop.permute.xlu1 %3024  ;;  %vm7961_vm7 = vmmov %vm7934_vm0 }
 0x8d9   : >> { %v3037_v20 = vpop.permute.xlu0 %3036  ;;  %v3120_v30 = vsel %vm7947_vm1, %v3023_v62, %v3025_v13  ;;  %v3121_v15 = vsel %vm7948_vm11, %v3025_v13, %v3027_v32  ;;  %vm7962_vm1 = vmmov %vm7934_vm0 }
 0x8da   : >> { %v3125_v61 = vsel %vm7949_vm8, %v3035_v27, %v3037_v20  ;;  %3438 = vmatprep.subr.bf16.mxu0 %v3121_v15  ;;  %vm7963_vm11 = vmmov %vm7934_vm0 }
 0x8db   : >> { %3358 = vmatprep.subr.bf16.mxu1 %v3125_v61  ;;  %vm7964_vm8 = vmmov %vm7934_vm0 }
 0x8dc   : >> { %3359 = vmatpush1.bf16.msra.mxu1 %v3124_v35  ;;  %3439 = vmatpush1.bf16.msra.mxu0 %v3120_v30  ;;  %v3039_v43 = vpop.permute.xlu1 %3038 }
 0x8dd   : >> { %v3051_v51 = vpop.permute.xlu0 %3050  ;;  %v3126_v41 = vsel %vm7950_vm2, %v3037_v20, %v3039_v43  ;;  %v3127_v63 = vsel %vm7951_vm12, %v3039_v43, %v7501_v29  ;;  %v3142_v29 = vsel %vm7961_vm7, %v7406_v45, %v7524_v33  ;;  %vm7965_vm2 = vmmov %vm7934_vm0  ;;  %vm7970_vm7 = vcmask 1043456  }
 0x8de   : >> { %v3131_v40 = vsel %vm7952_vm3, %v7507_v58, %v3051_v51  ;;  %3440 = vmatprep.subr.bf16.mxu0 %v3127_v63  ;;  %vm7966_vm12 = vmmov %vm7934_vm0  ;;  %vm3650_vm3 = vcmask 617474  }
 0x8df   : >> { %3360 = vmatprep.subr.bf16.mxu1 %v3131_v40 }
 0x8e0   : >> { %3361 = vmatpush1.bf16.msra.mxu1 %v3130_v1  ;;  %3441 = vmatpush1.bf16.msra.mxu0 %v3126_v41  ;;  %v3053_v6 = vpop.permute.xlu1 %3052 }
 0x8e1   : >> { %v3065_v0 = vpop.permute.xlu0 %3064  ;;  %v3132_v28 = vsel %vm7954_vm4, %v3051_v51, %v3053_v6  ;;  %v3133_v16 = vsel %vm7955_vm5, %v3053_v6, %v7509_v7  ;;  %vm3651_vm4 = vmor %vm3650_vm3, %vm7968_vm15  ;;  %vm3726_vm5 = vcmask 1043794  }
 0x8e2   : >> { %v3137_v2 = vsel %vm7956_vm13, %v7515_v12, %v3065_v0  ;;  %3442 = vmatprep.subr.bf16.mxu0 %v3133_v16  ;;  %v3148_v12 = vsel %vm7934_vm0, %v7416_v10, %v7530_v46  ;;  %vm3727_vm13 = vcmask 1047558  }
 0x8e3   : >> { %3362 = vmatprep.subr.bf16.mxu1 %v3137_v2  ;;  %vm3728_vm10 = vmor %vm3727_vm13, %vm3726_vm5 }
 0x8e4   : >> { %3363 = vmatpush1.bf16.msra.mxu1 %v3136_v38  ;;  %3443 = vmatpush1.bf16.msra.mxu0 %v3132_v28  ;;  %v3067_v21 = vpop.permute.xlu1 %3066 }
 0x8e5   : >> { %v3079_v4 = vpop.permute.xlu0 %3078  ;;  %v3138_v32 = vsel %vm7958_vm14, %v3065_v0, %v3067_v21  ;;  %v3139_v11 = vsel %vm7959_vm9, %v3067_v21, %v7517_v23  ;;  %vm7969_vm14 = vcmask 343040   ;;  %vm3731_vm9 = vcmask 1043458  }
 0x8e6   : >> { %v3143_v27 = vsel %vm7960_vm6, %v7524_v33, %v3079_v4  ;;  %3444 = vmatprep.subr.bf16.mxu0 %v3139_v11  ;;  %vm3732_vm6 = vcmask 965638  }
 0x8e7   : >> { %3364 = vmatprep.subr.bf16.mxu1 %v3143_v27 }
 0x8e8   : >> { %3365 = vmatpush1.bf16.msra.mxu1 %v3142_v29  ;;  %3445 = vmatpush1.bf16.msra.mxu0 %v3138_v32  ;;  %v3081_v59 = vpop.permute.xlu1 %3080 }
 0x8e9   : >> { %v3093_v3 = vpop.permute.xlu0 %3092  ;;  %v3144_v58 = vsel %vm7962_vm1, %v3079_v4, %v3081_v59  ;;  %v3145_v7 = vsel %vm7963_vm11, %v3081_v59, %v7526_v26  ;;  %vm7971_vm1 = vmmov %vm7969_vm14 }
 0x8ea   : >> { %v3149_v14 = vsel %vm7964_vm8, %v7530_v46, %v3093_v3  ;;  %3446 = vmatprep.subr.bf16.mxu0 %v3145_v7  ;;  %vm3733_vm11 = vmor %vm3732_vm6, %vm3731_vm9 }
 0x8eb   : >> { %3366 = vmatprep.subr.bf16.mxu1 %v3149_v14  ;;  %vm7972_vm8 = vmmov %vm7970_vm7 }
 0x8ec   : >> { %3367 = vmatpush1.bf16.msra.mxu1 %v3148_v12  ;;  %3447 = vmatpush1.bf16.msra.mxu0 %v3144_v58  ;;  %v3095_v45 = vpop.permute.xlu1 %3094  ;;  %vm7973_vm0 = vmmov %vm7971_vm1 }
 0x8ed   : >> { %v3097_v23 = vpop.permute.xlu0 %3096  ;;  %v3150_v52 = vsel %vm7965_vm2, %v3093_v3, %v3095_v45 }
 0x8ee   : >> { %v3151_v50 = vsel %vm7966_vm12, %v3095_v45, %v3097_v23 }
 0x8ef   : >> { %3383 = vmatmul.mubr.bf16.vlgmr.msra.gmra.mrb[12].mxu1 %v7430_v31  ;;  %3448 = vmatprep.subr.bf16.mxu0 %v3151_v50 }
 0x8f0   : >> { %3449 = vmatpush1.bf16.msra.mxu0 %v3150_v52 }
 0x8f3   : >> { %3465 = vmatmul.mubr.bf16.vlgmr.msra.gmra.mrb[16].mxu0 %v7430_v31  ;;  %v7590_v31 = vld [vmem:[#allocation5] sm:$0xff] }
 0x8f4   : >> { %v3514_v44 = vrot.slane %v7590_v31, %v7967_v9 }
 0x8f6   : >> { %v3522_v18 = vcombine.high %v3514_v44, %v3514_v44 }
 0x8fd   : >> { %v3209_v33 = vpop.permute.xlu1 %3208 }
 0x962   : >> { %v3302_v26 = vpop.f32.mrb[12].mxu0 }
 0x963   : >> { %v3967_v25 = vadd.f32 %v3302_v26, %v3209_v33  ;;  %v3304_v55 = vpop.f32.mrb[13].mxu0 }
 0x964   : >> { %v3968_v10 = vadd.f32 %v3304_v55, %v3209_v33  ;;  %v3306_v46 = vpop.f32.mrb[14].mxu0 }
 0x965   : >> { %v3473_v22 = vsub.f32 0.0, %v3967_v25  ;;  %v3307_v48 = vpop.f32.mrb[15].mxu0  ;;  %v3550_v62 = vrot.slane %v3967_v25, 4 }
 0x966   : >> { %v3474_v37 = vsub.f32 0.0, %v3968_v10  ;;  %v3551_v56 = vrot.slane %v3968_v10, 4 }
 0x967   : >> { %v3479_v5 = vmul.f32 1.442695, %v3473_v22 }
 0x968   : >> { %v3481_v54 = vmul.f32 1.442695, %v3474_v37 }
 0x969   : >> { %4164 = vpow2.f32 %v3479_v5 }
 0x96a   : >> { %4166 = vpow2.f32 %v3481_v54 }
 0x973   : >> { %v4165_v60 = vpop.eup %4164 }
 0x974   : >> { %v4167_v47 = vpop.eup %4166  ;;  %v3491_v53 = vadd.f32 1.0, %v4165_v60 }
 0x975   : >> { %v3492_v36 = vadd.f32 1.0, %v4167_v47 }
 0x976   : >> { %4168 = vrcp.f32 %v3491_v53 }
 0x977   : >> { %4170 = vrcp.f32 %v3492_v36 }
 0x980   : >> { %v4169_v19 = vpop.eup %4168 }
 0x981   : >> { %v4171_v8 = vpop.eup %4170  ;;  %v3562_v13 = vmul.f32 %v4169_v19, %v3550_v62  ;;  %v3538_v30 = vmul.f32 %v4169_v19, %v3514_v44  ;;  %v3598_v51 = vrot.slane %v4169_v19, 4 }
 0x982   : >> { %v3563_v20 = vmul.f32 %v4171_v8, %v3551_v56  ;;  %v3539_v61 = vmul.f32 %v4171_v8, %v3522_v18  ;;  %v3599_v63 = vrot.slane %v4171_v8, 4  ;;  %v3946_v18 = vld.sshfl [vmem:[#allocation5 + $0x8] sm:$0x33 pattern:$0x76325410] }
 0x983   : >> { %v3574_v15 = vrot.slane %v3562_v13, 2 }
 0x984   : >> { %v3575_v35 = vrot.slane %v3563_v20, 2 }
 0x985   : >> { %v7594_v43 = vadd.f32 %v3574_v15, %v3538_v30 }
 0x986   : >> { %v7596_v41 = vadd.f32 %v3575_v35, %v3539_v61  ;;  %v3531_v61 = vcombine.high %v3946_v18, %v3946_v18 }
 0x987   : >> { %v7599_v40 = vmul.f32 %v3598_v51, %v7594_v43 }
 0x988   : >> { %v7602_v1 = vmul.f32 %v3599_v63, %v7596_v41  ;;  %v3622_v6 = vcombine.low %v7594_v43, %v7596_v41 }
 0x989   : >> { %v3691_v0 = vmul.f32 %v7599_v40, %v5731_v24 }
 0x98a   : >> { %v3659_v28 = vcombine.low %v7599_v40, %v7602_v1  ;;  %v3692_v16 = vmul.f32 %v7602_v1, %v5734_v39 }
 0x98c   : >> { %v3703_v2 = vcombine.low %v3691_v0, %v3692_v16  ;;  %v3667_v41 = vrot.slane %v3659_v28, %v7967_v9 }
 0x98e   : >> { %v3706_v38 = vrot.slane %v3703_v2, 6 }
 0x990   : >> { %3709 = vrot.lane.b32.xlu0 %v3706_v38, %s7877_s21 }
 0x9c2   : >> { %v3384_v21 = vpop.f32.mrb[12].mxu1 }
 0x9c3   : >> { %v3969_v4 = vadd.f32 %v3384_v21, %v3209_v33  ;;  %v3386_v32 = vpop.f32.mrb[13].mxu1 }
 0x9c4   : >> { %v3970_v11 = vadd.f32 %v3386_v32, %v3209_v33  ;;  %v3388_v27 = vpop.f32.mrb[14].mxu1 }
 0x9c5   : >> { %v3475_v29 = vsub.f32 0.0, %v3969_v4  ;;  %v3389_v59 = vpop.f32.mrb[15].mxu1  ;;  %v3552_v47 = vrot.slane %v3969_v4, 4  ;;  %v3630_v4 = vrot.slane %v3622_v6, %v7967_v9 }
 0x9c6   : >> { %v3476_v3 = vsub.f32 0.0, %v3970_v11  ;;  %v3466_v58 = vpop.f32.mrb[16].mxu0  ;;  %v3553_v44 = vrot.slane %v3970_v11, 4 }
 0x9c7   : >> { %v3483_v24 = vmul.f32 1.442695, %v3475_v29  ;;  %v3971_v7 = vadd.f32 %v3466_v58, %v3209_v33  ;;  %v3468_v14 = vpop.f32.mrb[17].mxu0 }
 0x9c8   : >> { %v3485_v12 = vmul.f32 1.442695, %v3476_v3  ;;  %v3972_v45 = vadd.f32 %v3468_v14, %v3209_v33  ;;  %v3470_v23 = vpop.f32.mrb[18].mxu0  ;;  %v3507_v33 = vcombine.high %v7590_v31, %v7590_v31 }
 0x9c9   : >> { %4172 = vpow2.f32 %v3483_v24  ;;  %v3477_v39 = vsub.f32 0.0, %v3971_v7  ;;  %v3471_v52 = vpop.f32.mrb[19].mxu0  ;;  %v3554_v20 = vrot.slane %v3971_v7, 4 }
 0x9ca   : >> { %4174 = vpow2.f32 %v3485_v12  ;;  %v3478_v50 = vsub.f32 0.0, %v3972_v45  ;;  %v3521_v60 = vrot.slane %v3507_v33, %v7967_v9  ;;  %v3555_v35 = vrot.slane %v3972_v45, 4 }
 0x9cb   : >> { %v3487_v26 = vmul.f32 1.442695, %v3477_v39 }
 0x9cc   : >> { %v3489_v25 = vmul.f32 1.442695, %v3478_v50  ;;  %v3523_v36 = vcombine.high %v3521_v60, %v3521_v60 }
 0x9cd   : >> { %4176 = vpow2.f32 %v3487_v26 }
 0x9ce   : >> { %4178 = vpow2.f32 %v3489_v25 }
 0x9d3   : >> { %v4173_v55 = vpop.eup %4172 }
 0x9d4   : >> { %v4175_v10 = vpop.eup %4174  ;;  %v3493_v46 = vadd.f32 1.0, %v4173_v55 }
 0x9d5   : >> { %v3494_v22 = vadd.f32 1.0, %v4175_v10 }
 0x9d6   : >> { %4180 = vrcp.f32 %v3493_v46 }
 0x9d7   : >> { %v4177_v48 = vpop.eup %4176  ;;  %4182 = vrcp.f32 %v3494_v22 }
 0x9d8   : >> { %v4179_v37 = vpop.eup %4178  ;;  %v3495_v5 = vadd.f32 1.0, %v4177_v48 }
 0x9d9   : >> { %v3496_v54 = vadd.f32 1.0, %v4179_v37 }
 0x9da   : >> { %4184 = vrcp.f32 %v3495_v5 }
 0x9db   : >> { %4186 = vrcp.f32 %v3496_v54 }
 0x9e0   : >> { %v4181_v53 = vpop.eup %4180 }
 0x9e1   : >> { %v4183_v62 = vpop.eup %4182  ;;  %v3564_v19 = vmul.f32 %v4181_v53, %v3552_v47  ;;  %v3540_v8 = vmul.f32 %v4181_v53, %v3521_v60  ;;  %v3600_v0 = vrot.slane %v4181_v53, 4 }
 0x9e2   : >> { %v3565_v56 = vmul.f32 %v4183_v62, %v3553_v44  ;;  %v3541_v15 = vmul.f32 %v4183_v62, %v3523_v36  ;;  %v3601_v38 = vrot.slane %v4183_v62, 4 }
 0x9e3   : >> { %v3576_v13 = vrot.slane %v3564_v19, 2 }
 0x9e4   : >> { %v4185_v30 = vpop.eup %4184  ;;  %v3577_v31 = vrot.slane %v3565_v56, 2 }
 0x9e5   : >> { %v4187_v51 = vpop.eup %4186  ;;  %v3588_v63 = vadd.f32 %v3576_v13, %v3540_v8  ;;  %v3566_v16 = vmul.f32 %v4185_v30, %v3554_v20  ;;  %v3542_v11 = vmul.f32 %v4185_v30, %v3946_v18  ;;  %v3602_v7 = vrot.slane %v4185_v30, 4 }
 0x9e6   : >> { %v3589_v2 = vadd.f32 %v3577_v31, %v3541_v15  ;;  %v3567_v21 = vmul.f32 %v4187_v51, %v3555_v35  ;;  %v3543_v3 = vmul.f32 %v4187_v51, %v3531_v61  ;;  %v3603_v14 = vrot.slane %v4187_v51, 4 }
 0x9e7   : >> { %v3612_v32 = vmul.f32 %v3600_v0, %v3588_v63  ;;  %v3578_v27 = vrot.slane %v3566_v16, 2 }
 0x9e8   : >> { %v3613_v29 = vmul.f32 %v3601_v38, %v3589_v2  ;;  %v3623_v59 = vcombine.low %v3588_v63, %v3589_v2  ;;  %v3579_v58 = vrot.slane %v3567_v21, 2 }
 0x9e9   : >> { %v3590_v24 = vadd.f32 %v3578_v27, %v3542_v11  ;;  %v3693_v12 = vmul.f32 %v3612_v32, %v5745_v34 }
 0x9ea   : >> { %v3637_v45 = vrot.slane %v3623_v59, %v7967_v9  ;;  %v3660_v23 = vcombine.low %v3612_v32, %v3613_v29  ;;  %v3591_v39 = vadd.f32 %v3579_v58, %v3543_v3  ;;  %v3694_v43 = vmul.f32 %v3613_v29, %v5749_v49 }
 0x9eb   : >> { %v3614_v6 = vmul.f32 %v3602_v7, %v3590_v24 }
 0x9ec   : >> { %v3638_v52 = vcombine.low %v3630_v4, %v3637_v45  ;;  %v3674_v50 = vrot.slane %v3660_v23, %v7967_v9  ;;  %v3615_v26 = vmul.f32 %v3603_v14, %v3591_v39  ;;  %v3639_v25 = vcombine.low %v3590_v24, %v3591_v39 }
 0x9ed   : >> { %v3704_v34 = vcombine.low %v3693_v12, %v3694_v43  ;;  %v3695_v55 = vmul.f32 %v3614_v6, %v5754_v17 }
 0x9ee   : >> { %3649 = vst [vmem:[#allocation5] sm:$0xff] %v3638_v52  ;;  %v3675_v49 = vcombine.low %v3667_v41, %v3674_v50  ;;  %v3646_v10 = vrot.slane %v3639_v25, %v7967_v9  ;;  %v3676_v46 = vcombine.low %v3614_v6, %v3615_v26  ;;  %v3696_v40 = vmul.f32 %v3615_v26, %v5768_v57 }
 0x9ef   : >> { %v3707_v1 = vrot.slane %v3704_v34, 6 }
 0x9f0   : >> { %3689 = vst [vmem:[%s3688_s3] sm:$0xff] %v3675_v49  ;;  %3652 = vst.msk [vmem:[#allocation5 + $0x8] sm:$0xf] %vm3651_vm4, %v3646_v10  ;;  %v3683_v28 = vrot.slane %v3676_v46, %v7967_v9  ;;  %v3705_v22 = vcombine.low %v3695_v55, %v3696_v40 }
 0x9f1   : >> { %3711 = vrot.lane.b32.xlu1 %v3707_v1, %s7877_s21 }
 0x9f2   : >> { %3690 = vst.msk [vmem:[%s3688_s3 + $0x8] sm:$0xf] %vm3651_vm4, %v3683_v28  ;;  %v3708_v48 = vrot.slane %v3705_v22, 6 }
 0x9f4   : >> { %3713 = vrot.lane.b32.xlu0 %v3708_v48, %s7877_s21  ;;  %s7651_s21 = scalar_lea.hbm (%p483_p11), %s7705_s8, %s4001_s4 }
 0xa02   : >> { %v3710_v17 = vpop.permute.xlu0 %3709 }
 0xa03   : >> { %v3715_v37 = vrot.slane %v3710_v17, 4 }
 0xa05   : >> { %v3718_v33 = vsel %vm7969_vm14, %v3715_v37, %v3710_v17 }
 0xa06   : >> { %3729 = vst.msk [vmem:[#allocation2] sm:$0xcc] %vm3728_vm10, %v3718_v33 }
 0xa63   : >> { %v3712_v57 = vpop.permute.xlu1 %3711 }
 0xa64   : >> { %v3716_v5 = vrot.slane %v3712_v57, 4 }
 0xa65   : > { %485 = sbr.rel (!%p483_p11) target bundleno = 307 (0x133), region = 138 }
 0xa66   : >> { %v3719_v9 = vsel %vm7970_vm7, %v3715_v37, %v3716_v5  ;;  %v3714_v54 = vpop.permute.xlu0 %3713 }
 0xa67   : >> { %v3720_v60 = vsel %vm7971_vm1, %v3719_v9, %v3712_v57  ;;  %v3717_v47 = vrot.slane %v3714_v54, 4 }
 0xa68   : >> { %3730 = vst [vmem:[#allocation2 + $0x8] sm:$0xcc] %v3720_v60 }
 0xa69   : >> { %v3721_v53 = vsel %vm7972_vm8, %v3716_v5, %v3717_v47 }
 0xa6a   : >> { %v3722_v36 = vsel %vm7973_vm0, %v3721_v53, %v3714_v54 }
 0xa6b   : >> { %3734 = vst.msk [vmem:[#allocation2 + $0x10] sm:$0xcc] %vm3733_vm11, %v3722_v36 }
 0xa6c   : > { %4427 = shalt.err (!%p4424_p1)
}
 0xa6d   : > { %s4428_s19 = scalar_lea.hbm %s7651_s21, 768  ;;  %s4432_s18 = scalar_lea.hbm %s7705_s8, 1536 }
 0xa6e   : > { %p4429_p0 = scmp.ne.s32.totalorder %s7651_s21, %s4428_s19  ;;  %p4433_p8 = scmp.lt.u32.totalorder %s7651_s21, %s7705_s8 }
 0xa6f   : > { %p4434_p5 = scmp.lt.u32.totalorder %s4432_s18, %s4428_s19  ;;  %p4436_p4 = scmp.lt.u32.totalorder %s4428_s19, %s7651_s21 }
 0xa70   : > { %p4430_p6 = pnand %p4429_p0, %p7974_p12 }
 0xa71   : > { %p4435_p11 = por %p4434_p5, %p4433_p8 }
 0xa72   : > { %p4431_p2 = pneg %p4430_p6 }
 0xa73   : > { %p4437_p13 = por %p4436_p4, %p4435_p11 }
 0xa75   : > { %p4438_p9 = pnand %p4437_p13, %p4431_p2 }
 0xa77   : > { %4441 = shalt.err (!%p4438_p9)
}
 0xa78   : > { %s4544_s12 = smov 192   ;;  %s4545_s16 = smov 12  }
 0xa79   : > { %4032 = dma.vmem_to_hbm [thread:$0]  (%p7974_p12), %s7653_s5, 768, %s7651_s21, %s3736_s10, %s4544_s12, %s4544_s12, %s4545_s16  }
 0xa7a PF: > { %s3765_s23 = sand.u32 1, %s4488_s27   ;;  %p7975_p7 = scmp.ne.s32.totalorder %s7790_s22, 0 }
 0xa7b   : > { %p7976_p10 = scmp.ge.s32.totalorder %s4500_s30, 2  ;;  %s3766_s0 = scalar_lea.sflag [#allocation8], %s3765_s23 }
 0xa7d   : > { %p4061_p3 = pnand %p7976_p10, %p7975_p7 }
 0xa7f   : > { %4483 = dma.done.wait (!%p4061_p3), %s3766_s0, 768  }
 0xa80   : > { %4485 = vsyncadd (!%p4061_p3), %s3766_s0, 4294966528  ;;  %p25_p1 = scmp.ge.s32.totalorder %s4789_s15, 4   ;;  %s7977_s27 = smov %s4492_s28 }
 0xa81   : > { %s7978_s28 = smov %s4496_s29  ;;  %s7979_s29 = smov %s4801_s9 }
 0xa82   : > { %s7980_s30 = smov %s4789_s15  ;;  %27 = sbr.rel (!%p25_p1) target bundleno = 18 (0x12), region = 149 }
 0xa89   :  { %3771 = vsyncpa [#allocation7], 1 }
 0xa8a   :  { %3773 = vsyncpa [#allocation7 + $0x1], 1 }
 0xa8b   :  { %3774 = vsyncpa [#allocation10], 1 }
 0xa8c   :  { %3775 = vsyncpa [#allocation13], 1 }
 0xa8d   :  { %3776 = vsyncpa [#allocation16], 1 }
 0xa8e   :  { %3777 = vsyncpa [#allocation19], 1 }
 0xa8f   :  { %3778 = vsyncpa [#allocation8], 1 }
 0xa90   :  { %3780 = vsyncpa [#allocation8 + $0x1], 1 }

</bundles_post_ra>
